<compile_context>
chip_gen: v6e
topology: v6e:2x2x1
jax: 0.10.0
libtpu: 0.0.40
codegen_flags: <defaults>
</compile_context>

<pallas_src>
import jax
import jax.numpy as jnp
from jax.experimental import pallas as pl
from jax.experimental.pallas import tpu as pltpu

EPS = 1e-5


def _vmem_limit_bytes():
    """Per-generation scoped-VMEM budget: ~3/4 of physical, capped at 100 MiB."""
    try:
        cap = pltpu.get_tpu_info().vmem_capacity_bytes
    except Exception:
        cap = 128 * 1024 * 1024
    return int(min(100 * 1024 * 1024, cap * 3 // 4))


def _make_conv_stats_kernel(H, W, TH, Cin, Cout, with_prologue):
    """One row-tile of a 3x3 'same' conv as a single im2col matmul, plus per-tile
    partial BatchNorm statistics.  If `with_prologue`, the previous layer's finalized
    BN scale/shift + ReLU are applied to the loaded activations first (fusing
    BN1+ReLU+conv2 into one pass over the activations)."""

    def body(x_ref, w_ref, z_ref, sum_ref, ssq_ref, scale=None, shift=None):
        r0 = pl.multiple_of(pl.program_id(1) * TH, TH)

        # Row slab [r0-1, r0+TH+1): clamped loads from the resident full-image block;
        # out-of-image rows are zeroed AFTER the (optional) activation so zero padding
        # applies to the activated input, exactly like the reference conv.
        top = x_ref[0, pl.ds(jnp.maximum(r0 - 1, 0), 1)]
        mid = x_ref[0, pl.ds(r0, TH)]
        bot = x_ref[0, pl.ds(jnp.minimum(r0 + TH, H - 1), 1)]
        slab = jnp.concatenate([top, mid, bot], axis=0).astype(jnp.float32)  # (TH+2,W,Cin)

        if with_prologue:
            slab = jnp.maximum(slab * scale + shift, 0.0)

        row = jax.lax.broadcasted_iota(jnp.int32, (TH + 2, 1, 1), 0) + (r0 - 1)
        valid = jnp.logical_and(row >= 0, row < H)
        slab = slab * valid.astype(jnp.float32)

        # Zero-pad W and build the 9 shifted taps as full-tile value slices
        # (no masked / lane-offset scratch stores).
        zcol = jnp.zeros((TH + 2, 1, Cin), jnp.float32)
        padded = jnp.concatenate([zcol, slab, zcol], axis=1)          # (TH+2, W+2, Cin)
        taps = [padded[dy:dy + TH, dx:dx + W, :]
                for dy in range(3) for dx in range(3)]
        col = jnp.concatenate(taps, axis=-1)                          # (TH, W, 9*Cin)

        # ONE MXU matmul in bf16 with f32 accumulation: (TH*W, 9*Cin) @ (9*Cin, Cout).
        # Conv bias intentionally omitted: it cancels under batch-stat BatchNorm.
        z = jnp.dot(col.reshape(TH * W, 9 * Cin).astype(jnp.bfloat16),
                    w_ref[...],
                    preferred_element_type=jnp.float32)               # (TH*W, Cout) f32

        # Per-grid-step PARTIAL BN statistics (reduced in the JAX glue) -> the grid
        # stays fully "parallel" (v7x megacore-friendly).
        sum_ref[...] = jnp.sum(z, axis=0).reshape(1, 1, 1, Cout)
        ssq_ref[...] = jnp.sum(z * z, axis=0).reshape(1, 1, 1, Cout)

        z_ref[0] = z.reshape(TH, W, Cout).astype(z_ref.dtype)

    if with_prologue:
        def kernel(scale_ref, shift_ref, x_ref, w_ref, z_ref, sum_ref, ssq_ref):
            body(x_ref, w_ref, z_ref, sum_ref, ssq_ref,
                 scale=scale_ref[0], shift=shift_ref[0])
    else:
        def kernel(x_ref, w_ref, z_ref, sum_ref, ssq_ref):
            body(x_ref, w_ref, z_ref, sum_ref, ssq_ref)
    return kernel


def _bn_relu_kernel(scale_ref, shift_ref, z_ref, o_ref):
    # Final BatchNorm + ReLU: purely elementwise on the (1, TH, W, C) tile.
    o_ref[0] = jnp.maximum(
        z_ref[0].astype(jnp.float32) * scale_ref[0] + shift_ref[0], 0.0)


def _bn_affine(s_part, q_part, gamma, beta, count):
    """Reduce per-tile partial sums and fold training-mode BN (batch mean, biased
    variance) into per-channel scale/shift.  Tiny (C,)-sized plain-JAX glue."""
    s = jnp.sum(s_part, axis=(0, 1, 2))
    q = jnp.sum(q_part, axis=(0, 1, 2))
    mean = s / count
    var = q / count - mean * mean
    scale = gamma.reshape(-1) * jax.lax.rsqrt(var + EPS)
    shift = beta.reshape(-1) - mean * scale
    return (scale.reshape(1, -1).astype(jnp.float32),
            shift.reshape(1, -1).astype(jnp.float32))


def double_conv_forward(x_nchw, params, *, row_tile=8):
    """Forward of DoubleConv(in_channels, out_channels) on an NCHW f32 input."""
    N, Cin, H, W = x_nchw.shape
    Cmid = params["w1"].shape[-1]
    Cout = params["w2"].shape[-1]
    M = N * H * W  # element count behind each BatchNorm channel statistic

    TH = row_tile if (H % row_tile == 0) else H   # row tile (multiple of 8 preferred)
    T = H // TH

    x = jnp.transpose(x_nchw, (0, 2, 3, 1)).astype(jnp.float32)          # NHWC
    w1 = params["w1"].reshape(9 * Cin, Cmid).astype(jnp.bfloat16)        # (ky,kx,ci)->rows
    w2 = params["w2"].reshape(9 * Cmid, Cout).astype(jnp.bfloat16)

    cp = pltpu.CompilerParams(dimension_semantics=("parallel", "parallel"),
                              vmem_limit_bytes=_vmem_limit_bytes())

    def full_img_spec(c):     # whole image, resident across the row-tile axis
        return pl.BlockSpec((1, H, W, c), lambda n, t: (n, 0, 0, 0))

    def row_spec(c):          # one row tile per grid step
        return pl.BlockSpec((1, TH, W, c), lambda n, t: (n, t, 0, 0))

    def fixed_spec(r, c):     # resident across the whole grid (weights / affine)
        return pl.BlockSpec((r, c), lambda n, t: (0, 0))

    def stat_spec(c):         # per-grid-step partial BN stats
        return pl.BlockSpec((1, 1, 1, c), lambda n, t: (n, t, 0, 0))

    def conv_cost(ci, co, in_bpe, out_bpe):
        return pl.CostEstimate(
            flops=2 * M * 9 * ci * co,
            transcendentals=0,
            bytes_accessed=M * ci * in_bpe + M * co * out_bpe + 9 * ci * co * 2)

    # --- pass 1: conv1 + partial BN1 statistics --------------------------------
    z1, s1, q1 = pl.pallas_call(
        _make_conv_stats_kernel(H, W, TH, Cin, Cmid, with_prologue=False),
        grid=(N, T),
        in_specs=[full_img_spec(Cin), fixed_spec(9 * Cin, Cmid)],
        out_specs=(row_spec(Cmid), stat_spec(Cmid), stat_spec(Cmid)),
        out_shape=(jax.ShapeDtypeStruct((N, H, W, Cmid), jnp.bfloat16),
                   jax.ShapeDtypeStruct((N, T, 1, Cmid), jnp.float32),
                   jax.ShapeDtypeStruct((N, T, 1, Cmid), jnp.float32)),
        compiler_params=cp,
        cost_estimate=conv_cost(Cin, Cmid, 4, 2),
    )(x, w1)

    scale1, shift1 = _bn_affine(s1, q1, params["g1"], params["be1"], M)

    # --- pass 2: BN1 + ReLU + conv2 + partial BN2 statistics (fused) -----------
    z2, s2, q2 = pl.pallas_call(
        _make_conv_stats_kernel(H, W, TH, Cmid, Cout, with_prologue=True),
        grid=(N, T),
        in_specs=[fixed_spec(1, Cmid), fixed_spec(1, Cmid),
                  full_img_spec(Cmid), fixed_spec(9 * Cmid, Cout)],
        out_specs=(row_spec(Cout), stat_spec(Cout), stat_spec(Cout)),
        out_shape=(jax.ShapeDtypeStruct((N, H, W, Cout), jnp.bfloat16),
                   jax.ShapeDtypeStruct((N, T, 1, Cout), jnp.float32),
                   jax.ShapeDtypeStruct((N, T, 1, Cout), jnp.float32)),
        compiler_params=cp,
        cost_estimate=conv_cost(Cmid, Cout, 2, 2),
    )(scale1, shift1, z1, w2)

    scale2, shift2 = _bn_affine(s2, q2, params["g2"], params["be2"], M)

    # --- pass 3: BN2 + ReLU (elementwise, fully parallel) ----------------------
    out_nhwc = pl.pallas_call(
        _bn_relu_kernel,
        grid=(N, T),
        in_specs=[fixed_spec(1, Cout), fixed_spec(1, Cout), row_spec(Cout)],
        out_specs=row_spec(Cout),
        out_shape=jax.ShapeDtypeStruct((N, H, W, Cout), jnp.float32),
        compiler_params=cp,
    )(scale2, shift2, z2)

    # TODO(synk): fuse this transpose into pass 3 (NCHW-blocked out_spec) to drop one
    # HBM pass; kept in the wrapper for lowering robustness.
    return jnp.transpose(out_nhwc, (0, 3, 1, 2))                          # back to NCHW


def init_params(key, in_channels, out_channels, mid_channels=None):
    """Synthetic parameters with the same shapes/semantics as the PyTorch module."""
    mid = mid_channels if mid_channels else out_channels
    k1, k2, k3, k4 = jax.random.split(key, 4)
    return {
        # conv weights in HWIO layout (3, 3, Cin, Cout)
        "w1": jax.random.normal(k1, (3, 3, in_channels, mid), jnp.float32) * 0.1,
        "b1": jax.random.normal(k2, (1, mid), jnp.float32) * 0.1,   # cancels under batch-stat BN
        "w2": jax.random.normal(k3, (3, 3, mid, out_channels), jnp.float32) * 0.1,
        "b2": jax.random.normal(k4, (1, out_channels), jnp.float32) * 0.1,
        # BatchNorm affine params (PyTorch defaults: weight=1, bias=0)
        "g1": jnp.ones((1, mid), jnp.float32),
        "be1": jnp.zeros((1, mid), jnp.float32),
        "g2": jnp.ones((1, out_channels), jnp.float32),
        "be2": jnp.zeros((1, out_channels), jnp.float32),
    }


def _reference(x_nchw, params):
    """Pure-JAX/XLA f32 reference of the same forward (including the conv biases)."""
    x = jnp.transpose(x_nchw, (0, 2, 3, 1)).astype(jnp.float32)

    def conv(h, w, b):
        y = jax.lax.conv_general_dilated(
            h, w, window_strides=(1, 1), padding="SAME",
            dimension_numbers=("NHWC", "HWIO", "NHWC"),
            precision=jax.lax.Precision.HIGHEST)
        return y + b.reshape(1, 1, 1, -1)

    def bn_relu(z, g, be):
        mean = jnp.mean(z, axis=(0, 1, 2), keepdims=True)
        var = jnp.mean((z - mean) ** 2, axis=(0, 1, 2), keepdims=True)
        zn = (z - mean) * jax.lax.rsqrt(var + EPS)
        return jnp.maximum(zn * g.reshape(1, 1, 1, -1) + be.reshape(1, 1, 1, -1), 0.0)

    y = bn_relu(conv(x, params["w1"], params["b1"]), params["g1"], params["be1"])
    y = bn_relu(conv(y, params["w2"], params["b2"]), params["g2"], params["be2"])
    return jnp.transpose(y, (0, 3, 1, 2))


if __name__ == "__main__":
    key = jax.random.PRNGKey(0)
    kx, kp = jax.random.split(key)

    N, Cin, H, W = 2, 4, 16, 16
    Cout = 8

    x = jax.random.normal(kx, (N, Cin, H, W), jnp.float32)   # NCHW, like PyTorch
    params = init_params(kp, Cin, Cout)

    out = jax.block_until_ready(jax.jit(double_conv_forward)(x, params))
    ref = jax.block_until_ready(_reference(x, params))

    assert out.shape == (N, Cout, H, W), out.shape
    assert bool(jnp.all(jnp.isfinite(out)))
    # bf16 MXU operands + bf16 intermediates -> slightly relaxed tolerance vs f32 ref.
    assert bool(jnp.allclose(out, ref, atol=4e-2, rtol=4e-2)), \
        float(jnp.max(jnp.abs(out - ref)))
    print("KERNEL_OK")
</pallas_src>

<mosaic_0001>
module attributes {stable_mosaic.version = 11 : i64} {
  func.func @kernel(%arg0: i32, %arg1: i32, %arg2: memref<1x16x16x4xf32, #tpu.memory_space<vmem>>, %arg3: memref<36x8xbf16, #tpu.memory_space<vmem>>, %arg4: memref<1x8x16x8xbf16, #tpu.memory_space<vmem>>, %arg5: memref<1x1x1x8xf32, #tpu.memory_space<vmem>>, %arg6: memref<1x1x1x8xf32, #tpu.memory_space<vmem>>) attributes {dimension_semantics = [#tpu.dimension_semantics<parallel>, #tpu.dimension_semantics<parallel>], iteration_bounds = array<i64: 2, 2>, scalar_prefetch = 0 : i64, scratch_operands = 0 : i64, tpu.core_type = #tpu.core_type<tc>, window_params = [{transform_indices = @transform_0, window_bounds = array<i64: 1, 16, 16, 4>}, {pipeline_mode = #tpu.pipeline_mode<synchronous>, transform_indices = @transform_1, window_bounds = array<i64: 36, 8>}, {transform_indices = @transform_2, window_bounds = array<i64: 1, 8, 16, 8>}, {transform_indices = @transform_3, window_bounds = array<i64: 1, 1, 1, 8>}, {transform_indices = @transform_4, window_bounds = array<i64: 1, 1, 1, 8>}]} {
    %c8_i32 = arith.constant 8 : i32
    %0 = arith.muli %arg1, %c8_i32 : i32
    %1 = tpu.assume_multiple %0, 8 : i32
    %c1_i32 = arith.constant 1 : i32
    %2 = arith.subi %1, %c1_i32 : i32
    %c0_i32 = arith.constant 0 : i32
    %3 = arith.maxsi %2, %c0_i32 : i32
    %c0 = arith.constant 0 : index
    %4 = arith.index_cast %3 : i32 to index
    %c0_0 = arith.constant 0 : index
    %c0_1 = arith.constant 0 : index
    %5 = vector.load %arg2[%c0, %4, %c0_0, %c0_1] : memref<1x16x16x4xf32, #tpu.memory_space<vmem>>, vector<1x1x16x4xf32>
    %6 = vector.shape_cast %5 : vector<1x1x16x4xf32> to vector<1x16x4xf32>
    %c0_2 = arith.constant 0 : index
    %7 = arith.index_cast %1 : i32 to index
    %c0_3 = arith.constant 0 : index
    %c0_4 = arith.constant 0 : index
    %8 = vector.load %arg2[%c0_2, %7, %c0_3, %c0_4] : memref<1x16x16x4xf32, #tpu.memory_space<vmem>>, vector<1x8x16x4xf32>
    %9 = vector.shape_cast %8 : vector<1x8x16x4xf32> to vector<8x16x4xf32>
    %c8_i32_5 = arith.constant 8 : i32
    %10 = arith.addi %1, %c8_i32_5 : i32
    %c15_i32 = arith.constant 15 : i32
    %11 = arith.minsi %10, %c15_i32 : i32
    %c0_6 = arith.constant 0 : index
    %12 = arith.index_cast %11 : i32 to index
    %c0_7 = arith.constant 0 : index
    %c0_8 = arith.constant 0 : index
    %13 = vector.load %arg2[%c0_6, %12, %c0_7, %c0_8] : memref<1x16x16x4xf32, #tpu.memory_space<vmem>>, vector<1x1x16x4xf32>
    %14 = vector.shape_cast %13 : vector<1x1x16x4xf32> to vector<1x16x4xf32>
    %15 = tpu.concatenate %6, %9, %14 in 0 : vector<1x16x4xf32>, vector<8x16x4xf32>, vector<1x16x4xf32> -> vector<10x16x4xf32>
    %16 = tpu.iota {dimensions = array<i32: 0>} : vector<10x1x1xi32>
    %c1_i32_9 = arith.constant 1 : i32
    %17 = arith.subi %1, %c1_i32_9 : i32
    %18 = vector.broadcast %17 : i32 to vector<10x1x1xi32>
    %19 = arith.addi %16, %18 : vector<10x1x1xi32>
    %c0_i32_10 = arith.constant 0 : i32
    %20 = vector.broadcast %c0_i32_10 : i32 to vector<10x1x1xi32>
    %21 = arith.cmpi sge, %19, %20 : vector<10x1x1xi32>
    %c16_i32 = arith.constant 16 : i32
    %22 = vector.broadcast %c16_i32 : i32 to vector<10x1x1xi32>
    %23 = arith.cmpi slt, %19, %22 : vector<10x1x1xi32>
    %24 = arith.andi %21, %23 : vector<10x1x1xi1>
    %25 = arith.extui %24 : vector<10x1x1xi1> to vector<10x1x1xi32>
    %26 = arith.sitofp %25 : vector<10x1x1xi32> to vector<10x1x1xf32>
    %27 = vector.broadcast %26 : vector<10x1x1xf32> to vector<10x16x4xf32>
    %28 = arith.mulf %15, %27 : vector<10x16x4xf32>
    %cst = arith.constant 0.000000e+00 : f32
    %29 = vector.broadcast %cst : f32 to vector<10x1x4xf32>
    %30 = tpu.concatenate %29, %28, %29 in 1 : vector<10x1x4xf32>, vector<10x16x4xf32>, vector<10x1x4xf32> -> vector<10x18x4xf32>
    %31 = vector.extract_strided_slice %30 {offsets = [0, 0, 0], sizes = [8, 16, 4], strides = [1, 1, 1]} : vector<10x18x4xf32> to vector<8x16x4xf32>
    %32 = vector.extract_strided_slice %30 {offsets = [0, 1, 0], sizes = [8, 16, 4], strides = [1, 1, 1]} : vector<10x18x4xf32> to vector<8x16x4xf32>
    %33 = vector.extract_strided_slice %30 {offsets = [0, 2, 0], sizes = [8, 16, 4], strides = [1, 1, 1]} : vector<10x18x4xf32> to vector<8x16x4xf32>
    %34 = vector.extract_strided_slice %30 {offsets = [1, 0, 0], sizes = [8, 16, 4], strides = [1, 1, 1]} : vector<10x18x4xf32> to vector<8x16x4xf32>
    %35 = vector.extract_strided_slice %30 {offsets = [1, 1, 0], sizes = [8, 16, 4], strides = [1, 1, 1]} : vector<10x18x4xf32> to vector<8x16x4xf32>
    %36 = vector.extract_strided_slice %30 {offsets = [1, 2, 0], sizes = [8, 16, 4], strides = [1, 1, 1]} : vector<10x18x4xf32> to vector<8x16x4xf32>
    %37 = vector.extract_strided_slice %30 {offsets = [2, 0, 0], sizes = [8, 16, 4], strides = [1, 1, 1]} : vector<10x18x4xf32> to vector<8x16x4xf32>
    %38 = vector.extract_strided_slice %30 {offsets = [2, 1, 0], sizes = [8, 16, 4], strides = [1, 1, 1]} : vector<10x18x4xf32> to vector<8x16x4xf32>
    %39 = vector.extract_strided_slice %30 {offsets = [2, 2, 0], sizes = [8, 16, 4], strides = [1, 1, 1]} : vector<10x18x4xf32> to vector<8x16x4xf32>
    %40 = tpu.concatenate %31, %32, %33, %34, %35, %36, %37, %38, %39 in 2 : vector<8x16x4xf32>, vector<8x16x4xf32>, vector<8x16x4xf32>, vector<8x16x4xf32>, vector<8x16x4xf32>, vector<8x16x4xf32>, vector<8x16x4xf32>, vector<8x16x4xf32>, vector<8x16x4xf32> -> vector<8x16x36xf32>
    %41 = vector.shape_cast %40 : vector<8x16x36xf32> to vector<128x36xf32>
    %42 = arith.truncf %41 : vector<128x36xf32> to vector<128x36xbf16>
    %c0_11 = arith.constant 0 : index
    %c0_12 = arith.constant 0 : index
    %43 = vector.load %arg3[%c0_11, %c0_12] : memref<36x8xbf16, #tpu.memory_space<vmem>>, vector<36x8xbf16>
    %cst_13 = arith.constant dense<0.000000e+00> : vector<128x8xf32>
    %44 = tpu.matmul %42, %43, %cst_13 {dimension_numbers = #tpu.dot_dimension_numbers<[1], [0], [0], [1], [0, 0, 1, 1], [], []>} : vector<128x36xbf16>, vector<36x8xbf16>, vector<128x8xf32> -> vector<128x8xf32>
    %cst_14 = arith.constant dense<0.000000e+00> : vector<8xf32>
    %45 = vector.multi_reduction <add>, %44, %cst_14 [0] : vector<128x8xf32> to vector<8xf32>
    %46 = vector.shape_cast %45 : vector<8xf32> to vector<1x1x1x8xf32>
    %c0_15 = arith.constant 0 : index
    %c0_16 = arith.constant 0 : index
    %c0_17 = arith.constant 0 : index
    %c0_18 = arith.constant 0 : index
    %47 = vector.load %arg5[%c0_15, %c0_16, %c0_17, %c0_18] : memref<1x1x1x8xf32, #tpu.memory_space<vmem>>, vector<1x1x1x8xf32>
    tpu.vector_store %arg5[%c0_15, %c0_16, %c0_17, %c0_18], %46 {strides = array<i32>} : memref<1x1x1x8xf32, #tpu.memory_space<vmem>>, vector<1x1x1x8xf32>,
    %48 = arith.mulf %44, %44 : vector<128x8xf32>
    %cst_19 = arith.constant dense<0.000000e+00> : vector<8xf32>
    %49 = vector.multi_reduction <add>, %48, %cst_19 [0] : vector<128x8xf32> to vector<8xf32>
    %50 = vector.shape_cast %49 : vector<8xf32> to vector<1x1x1x8xf32>
    %c0_20 = arith.constant 0 : index
    %c0_21 = arith.constant 0 : index
    %c0_22 = arith.constant 0 : index
    %c0_23 = arith.constant 0 : index
    %51 = vector.load %arg6[%c0_20, %c0_21, %c0_22, %c0_23] : memref<1x1x1x8xf32, #tpu.memory_space<vmem>>, vector<1x1x1x8xf32>
    tpu.vector_store %arg6[%c0_20, %c0_21, %c0_22, %c0_23], %50 {strides = array<i32>} : memref<1x1x1x8xf32, #tpu.memory_space<vmem>>, vector<1x1x1x8xf32>,
    %52 = vector.shape_cast %44 : vector<128x8xf32> to vector<8x16x8xf32>
    %53 = arith.truncf %52 : vector<8x16x8xf32> to vector<8x16x8xbf16>
    %c0_24 = arith.constant 0 : index
    %c0_25 = arith.constant 0 : index
    %c0_26 = arith.constant 0 : index
    %c0_27 = arith.constant 0 : index
    %54 = vector.load %arg4[%c0_24, %c0_25, %c0_26, %c0_27] : memref<1x8x16x8xbf16, #tpu.memory_space<vmem>>, vector<1x8x16x8xbf16>
    %55 = vector.shape_cast %54 : vector<1x8x16x8xbf16> to vector<8x16x8xbf16>
    %56 = vector.shape_cast %53 : vector<8x16x8xbf16> to vector<1x8x16x8xbf16>
    tpu.vector_store %arg4[%c0_24, %c0_25, %c0_26, %c0_27], %56 {strides = array<i32>} : memref<1x8x16x8xbf16, #tpu.memory_space<vmem>>, vector<1x8x16x8xbf16>,
    return
  }
  func.func @transform_0(%arg0: i32, %arg1: i32) -> (i32, i32, i32, i32) {
    %c0_i32 = arith.constant 0 : i32
    %c0_i32_0 = arith.constant 0 : i32
    %c0_i32_1 = arith.constant 0 : i32
    %c0_i32_2 = arith.constant 0 : i32
    return %arg0, %c0_i32, %c0_i32_0, %c0_i32_1 : i32, i32, i32, i32
  }
  func.func @transform_1(%arg0: i32, %arg1: i32) -> (i32, i32) {
    %c0_i32 = arith.constant 0 : i32
    %c0_i32_0 = arith.constant 0 : i32
    %c0_i32_1 = arith.constant 0 : i32
    return %c0_i32, %c0_i32_0 : i32, i32
  }
  func.func @transform_2(%arg0: i32, %arg1: i32) -> (i32, i32, i32, i32) {
    %c0_i32 = arith.constant 0 : i32
    %c0_i32_0 = arith.constant 0 : i32
    %c0_i32_1 = arith.constant 0 : i32
    return %arg0, %arg1, %c0_i32, %c0_i32_0 : i32, i32, i32, i32
  }
  func.func @transform_3(%arg0: i32, %arg1: i32) -> (i32, i32, i32, i32) {
    %c0_i32 = arith.constant 0 : i32
    %c0_i32_0 = arith.constant 0 : i32
    %c0_i32_1 = arith.constant 0 : i32
    return %arg0, %arg1, %c0_i32, %c0_i32_0 : i32, i32, i32, i32
  }
  func.func @transform_4(%arg0: i32, %arg1: i32) -> (i32, i32, i32, i32) {
    %c0_i32 = arith.constant 0 : i32
    %c0_i32_0 = arith.constant 0 : i32
    %c0_i32_1 = arith.constant 0 : i32
    return %arg0, %arg1, %c0_i32, %c0_i32_0 : i32, i32, i32, i32
  }
}

module attributes {stable_mosaic.version = 11 : i64} {
  func.func @kernel(%arg0: i32, %arg1: i32, %arg2: memref<1x8xf32, #tpu.memory_space<vmem>>, %arg3: memref<1x8xf32, #tpu.memory_space<vmem>>, %arg4: memref<1x16x16x8xbf16, #tpu.memory_space<vmem>>, %arg5: memref<72x8xbf16, #tpu.memory_space<vmem>>, %arg6: memref<1x8x16x8xbf16, #tpu.memory_space<vmem>>, %arg7: memref<1x1x1x8xf32, #tpu.memory_space<vmem>>, %arg8: memref<1x1x1x8xf32, #tpu.memory_space<vmem>>) attributes {dimension_semantics = [#tpu.dimension_semantics<parallel>, #tpu.dimension_semantics<parallel>], iteration_bounds = array<i64: 2, 2>, scalar_prefetch = 0 : i64, scratch_operands = 0 : i64, tpu.core_type = #tpu.core_type<tc>, window_params = [{pipeline_mode = #tpu.pipeline_mode<synchronous>, transform_indices = @transform_0, window_bounds = array<i64: 1, 8>}, {pipeline_mode = #tpu.pipeline_mode<synchronous>, transform_indices = @transform_1, window_bounds = array<i64: 1, 8>}, {transform_indices = @transform_2, window_bounds = array<i64: 1, 16, 16, 8>}, {pipeline_mode = #tpu.pipeline_mode<synchronous>, transform_indices = @transform_3, window_bounds = array<i64: 72, 8>}, {transform_indices = @transform_4, window_bounds = array<i64: 1, 8, 16, 8>}, {transform_indices = @transform_5, window_bounds = array<i64: 1, 1, 1, 8>}, {transform_indices = @transform_6, window_bounds = array<i64: 1, 1, 1, 8>}]} {
    %c0 = arith.constant 0 : index
    %c0_0 = arith.constant 0 : index
    %0 = vector.load %arg2[%c0, %c0_0] : memref<1x8xf32, #tpu.memory_space<vmem>>, vector<1x8xf32>
    %1 = vector.shape_cast %0 : vector<1x8xf32> to vector<8xf32>
    %c0_1 = arith.constant 0 : index
    %c0_2 = arith.constant 0 : index
    %2 = vector.load %arg3[%c0_1, %c0_2] : memref<1x8xf32, #tpu.memory_space<vmem>>, vector<1x8xf32>
    %3 = vector.shape_cast %2 : vector<1x8xf32> to vector<8xf32>
    %c8_i32 = arith.constant 8 : i32
    %4 = arith.muli %arg1, %c8_i32 : i32
    %5 = tpu.assume_multiple %4, 8 : i32
    %c1_i32 = arith.constant 1 : i32
    %6 = arith.subi %5, %c1_i32 : i32
    %c0_i32 = arith.constant 0 : i32
    %7 = arith.maxsi %6, %c0_i32 : i32
    %c0_3 = arith.constant 0 : index
    %8 = arith.index_cast %7 : i32 to index
    %c0_4 = arith.constant 0 : index
    %c0_5 = arith.constant 0 : index
    %9 = vector.load %arg4[%c0_3, %8, %c0_4, %c0_5] : memref<1x16x16x8xbf16, #tpu.memory_space<vmem>>, vector<1x1x16x8xbf16>
    %10 = vector.shape_cast %9 : vector<1x1x16x8xbf16> to vector<1x16x8xbf16>
    %c0_6 = arith.constant 0 : index
    %11 = arith.index_cast %5 : i32 to index
    %c0_7 = arith.constant 0 : index
    %c0_8 = arith.constant 0 : index
    %12 = vector.load %arg4[%c0_6, %11, %c0_7, %c0_8] : memref<1x16x16x8xbf16, #tpu.memory_space<vmem>>, vector<1x8x16x8xbf16>
    %13 = vector.shape_cast %12 : vector<1x8x16x8xbf16> to vector<8x16x8xbf16>
    %c8_i32_9 = arith.constant 8 : i32
    %14 = arith.addi %5, %c8_i32_9 : i32
    %c15_i32 = arith.constant 15 : i32
    %15 = arith.minsi %14, %c15_i32 : i32
    %c0_10 = arith.constant 0 : index
    %16 = arith.index_cast %15 : i32 to index
    %c0_11 = arith.constant 0 : index
    %c0_12 = arith.constant 0 : index
    %17 = vector.load %arg4[%c0_10, %16, %c0_11, %c0_12] : memref<1x16x16x8xbf16, #tpu.memory_space<vmem>>, vector<1x1x16x8xbf16>
    %18 = vector.shape_cast %17 : vector<1x1x16x8xbf16> to vector<1x16x8xbf16>
    %19 = tpu.concatenate %10, %13, %18 in 0 : vector<1x16x8xbf16>, vector<8x16x8xbf16>, vector<1x16x8xbf16> -> vector<10x16x8xbf16>
    %20 = arith.extf %19 : vector<10x16x8xbf16> to vector<10x16x8xf32>
    %21 = vector.shape_cast %1 : vector<8xf32> to vector<1x1x8xf32>
    %22 = vector.broadcast %21 : vector<1x1x8xf32> to vector<10x16x8xf32>
    %23 = arith.mulf %20, %22 : vector<10x16x8xf32>
    %24 = vector.shape_cast %3 : vector<8xf32> to vector<1x1x8xf32>
    %25 = vector.broadcast %24 : vector<1x1x8xf32> to vector<10x16x8xf32>
    %26 = arith.addf %23, %25 : vector<10x16x8xf32>
    %cst = arith.constant 0.000000e+00 : f32
    %27 = vector.broadcast %cst : f32 to vector<10x16x8xf32>
    %28 = arith.maximumf %26, %27 : vector<10x16x8xf32>
    %29 = tpu.iota {dimensions = array<i32: 0>} : vector<10x1x1xi32>
    %c1_i32_13 = arith.constant 1 : i32
    %30 = arith.subi %5, %c1_i32_13 : i32
    %31 = vector.broadcast %30 : i32 to vector<10x1x1xi32>
    %32 = arith.addi %29, %31 : vector<10x1x1xi32>
    %c0_i32_14 = arith.constant 0 : i32
    %33 = vector.broadcast %c0_i32_14 : i32 to vector<10x1x1xi32>
    %34 = arith.cmpi sge, %32, %33 : vector<10x1x1xi32>
    %c16_i32 = arith.constant 16 : i32
    %35 = vector.broadcast %c16_i32 : i32 to vector<10x1x1xi32>
    %36 = arith.cmpi slt, %32, %35 : vector<10x1x1xi32>
    %37 = arith.andi %34, %36 : vector<10x1x1xi1>
    %38 = arith.extui %37 : vector<10x1x1xi1> to vector<10x1x1xi32>
    %39 = arith.sitofp %38 : vector<10x1x1xi32> to vector<10x1x1xf32>
    %40 = vector.broadcast %39 : vector<10x1x1xf32> to vector<10x16x8xf32>
    %41 = arith.mulf %28, %40 : vector<10x16x8xf32>
    %cst_15 = arith.constant 0.000000e+00 : f32
    %42 = vector.broadcast %cst_15 : f32 to vector<10x1x8xf32>
    %43 = tpu.concatenate %42, %41, %42 in 1 : vector<10x1x8xf32>, vector<10x16x8xf32>, vector<10x1x8xf32> -> vector<10x18x8xf32>
    %44 = vector.extract_strided_slice %43 {offsets = [0, 0, 0], sizes = [8, 16, 8], strides = [1, 1, 1]} : vector<10x18x8xf32> to vector<8x16x8xf32>
    %45 = vector.extract_strided_slice %43 {offsets = [0, 1, 0], sizes = [8, 16, 8], strides = [1, 1, 1]} : vector<10x18x8xf32> to vector<8x16x8xf32>
    %46 = vector.extract_strided_slice %43 {offsets = [0, 2, 0], sizes = [8, 16, 8], strides = [1, 1, 1]} : vector<10x18x8xf32> to vector<8x16x8xf32>
    %47 = vector.extract_strided_slice %43 {offsets = [1, 0, 0], sizes = [8, 16, 8], strides = [1, 1, 1]} : vector<10x18x8xf32> to vector<8x16x8xf32>
    %48 = vector.extract_strided_slice %43 {offsets = [1, 1, 0], sizes = [8, 16, 8], strides = [1, 1, 1]} : vector<10x18x8xf32> to vector<8x16x8xf32>
    %49 = vector.extract_strided_slice %43 {offsets = [1, 2, 0], sizes = [8, 16, 8], strides = [1, 1, 1]} : vector<10x18x8xf32> to vector<8x16x8xf32>
    %50 = vector.extract_strided_slice %43 {offsets = [2, 0, 0], sizes = [8, 16, 8], strides = [1, 1, 1]} : vector<10x18x8xf32> to vector<8x16x8xf32>
    %51 = vector.extract_strided_slice %43 {offsets = [2, 1, 0], sizes = [8, 16, 8], strides = [1, 1, 1]} : vector<10x18x8xf32> to vector<8x16x8xf32>
    %52 = vector.extract_strided_slice %43 {offsets = [2, 2, 0], sizes = [8, 16, 8], strides = [1, 1, 1]} : vector<10x18x8xf32> to vector<8x16x8xf32>
    %53 = tpu.concatenate %44, %45, %46, %47, %48, %49, %50, %51, %52 in 2 : vector<8x16x8xf32>, vector<8x16x8xf32>, vector<8x16x8xf32>, vector<8x16x8xf32>, vector<8x16x8xf32>, vector<8x16x8xf32>, vector<8x16x8xf32>, vector<8x16x8xf32>, vector<8x16x8xf32> -> vector<8x16x72xf32>
    %54 = vector.shape_cast %53 : vector<8x16x72xf32> to vector<128x72xf32>
    %55 = arith.truncf %54 : vector<128x72xf32> to vector<128x72xbf16>
    %c0_16 = arith.constant 0 : index
    %c0_17 = arith.constant 0 : index
    %56 = vector.load %arg5[%c0_16, %c0_17] : memref<72x8xbf16, #tpu.memory_space<vmem>>, vector<72x8xbf16>
    %cst_18 = arith.constant dense<0.000000e+00> : vector<128x8xf32>
    %57 = tpu.matmul %55, %56, %cst_18 {dimension_numbers = #tpu.dot_dimension_numbers<[1], [0], [0], [1], [0, 0, 1, 1], [], []>} : vector<128x72xbf16>, vector<72x8xbf16>, vector<128x8xf32> -> vector<128x8xf32>
    %cst_19 = arith.constant dense<0.000000e+00> : vector<8xf32>
    %58 = vector.multi_reduction <add>, %57, %cst_19 [0] : vector<128x8xf32> to vector<8xf32>
    %59 = vector.shape_cast %58 : vector<8xf32> to vector<1x1x1x8xf32>
    %c0_20 = arith.constant 0 : index
    %c0_21 = arith.constant 0 : index
    %c0_22 = arith.constant 0 : index
    %c0_23 = arith.constant 0 : index
    %60 = vector.load %arg7[%c0_20, %c0_21, %c0_22, %c0_23] : memref<1x1x1x8xf32, #tpu.memory_space<vmem>>, vector<1x1x1x8xf32>
    tpu.vector_store %arg7[%c0_20, %c0_21, %c0_22, %c0_23], %59 {strides = array<i32>} : memref<1x1x1x8xf32, #tpu.memory_space<vmem>>, vector<1x1x1x8xf32>,
    %61 = arith.mulf %57, %57 : vector<128x8xf32>
    %cst_24 = arith.constant dense<0.000000e+00> : vector<8xf32>
    %62 = vector.multi_reduction <add>, %61, %cst_24 [0] : vector<128x8xf32> to vector<8xf32>
    %63 = vector.shape_cast %62 : vector<8xf32> to vector<1x1x1x8xf32>
    %c0_25 = arith.constant 0 : index
    %c0_26 = arith.constant 0 : index
    %c0_27 = arith.constant 0 : index
    %c0_28 = arith.constant 0 : index
    %64 = vector.load %arg8[%c0_25, %c0_26, %c0_27, %c0_28] : memref<1x1x1x8xf32, #tpu.memory_space<vmem>>, vector<1x1x1x8xf32>
    tpu.vector_store %arg8[%c0_25, %c0_26, %c0_27, %c0_28], %63 {strides = array<i32>} : memref<1x1x1x8xf32, #tpu.memory_space<vmem>>, vector<1x1x1x8xf32>,
    %65 = vector.shape_cast %57 : vector<128x8xf32> to vector<8x16x8xf32>
    %66 = arith.truncf %65 : vector<8x16x8xf32> to vector<8x16x8xbf16>
    %c0_29 = arith.constant 0 : index
    %c0_30 = arith.constant 0 : index
    %c0_31 = arith.constant 0 : index
    %c0_32 = arith.constant 0 : index
    %67 = vector.load %arg6[%c0_29, %c0_30, %c0_31, %c0_32] : memref<1x8x16x8xbf16, #tpu.memory_space<vmem>>, vector<1x8x16x8xbf16>
    %68 = vector.shape_cast %67 : vector<1x8x16x8xbf16> to vector<8x16x8xbf16>
    %69 = vector.shape_cast %66 : vector<8x16x8xbf16> to vector<1x8x16x8xbf16>
    tpu.vector_store %arg6[%c0_29, %c0_30, %c0_31, %c0_32], %69 {strides = array<i32>} : memref<1x8x16x8xbf16, #tpu.memory_space<vmem>>, vector<1x8x16x8xbf16>,
    return
  }
  func.func @transform_0(%arg0: i32, %arg1: i32) -> (i32, i32) {
    %c0_i32 = arith.constant 0 : i32
    %c0_i32_0 = arith.constant 0 : i32
    %c0_i32_1 = arith.constant 0 : i32
    return %c0_i32, %c0_i32_0 : i32, i32
  }
  func.func @transform_1(%arg0: i32, %arg1: i32) -> (i32, i32) {
    %c0_i32 = arith.constant 0 : i32
    %c0_i32_0 = arith.constant 0 : i32
    %c0_i32_1 = arith.constant 0 : i32
    return %c0_i32, %c0_i32_0 : i32, i32
  }
  func.func @transform_2(%arg0: i32, %arg1: i32) -> (i32, i32, i32, i32) {
    %c0_i32 = arith.constant 0 : i32
    %c0_i32_0 = arith.constant 0 : i32
    %c0_i32_1 = arith.constant 0 : i32
    %c0_i32_2 = arith.constant 0 : i32
    return %arg0, %c0_i32, %c0_i32_0, %c0_i32_1 : i32, i32, i32, i32
  }
  func.func @transform_3(%arg0: i32, %arg1: i32) -> (i32, i32) {
    %c0_i32 = arith.constant 0 : i32
    %c0_i32_0 = arith.constant 0 : i32
    %c0_i32_1 = arith.constant 0 : i32
    return %c0_i32, %c0_i32_0 : i32, i32
  }
  func.func @transform_4(%arg0: i32, %arg1: i32) -> (i32, i32, i32, i32) {
    %c0_i32 = arith.constant 0 : i32
    %c0_i32_0 = arith.constant 0 : i32
    %c0_i32_1 = arith.constant 0 : i32
    return %arg0, %arg1, %c0_i32, %c0_i32_0 : i32, i32, i32, i32
  }
  func.func @transform_5(%arg0: i32, %arg1: i32) -> (i32, i32, i32, i32) {
    %c0_i32 = arith.constant 0 : i32
    %c0_i32_0 = arith.constant 0 : i32
    %c0_i32_1 = arith.constant 0 : i32
    return %arg0, %arg1, %c0_i32, %c0_i32_0 : i32, i32, i32, i32
  }
  func.func @transform_6(%arg0: i32, %arg1: i32) -> (i32, i32, i32, i32) {
    %c0_i32 = arith.constant 0 : i32
    %c0_i32_0 = arith.constant 0 : i32
    %c0_i32_1 = arith.constant 0 : i32
    return %arg0, %arg1, %c0_i32, %c0_i32_0 : i32, i32, i32, i32
  }
}

module attributes {stable_mosaic.version = 11 : i64} {
  func.func @_bn_relu_kernel(%arg0: i32, %arg1: i32, %arg2: memref<1x8xf32, #tpu.memory_space<vmem>>, %arg3: memref<1x8xf32, #tpu.memory_space<vmem>>, %arg4: memref<1x8x16x8xbf16, #tpu.memory_space<vmem>>, %arg5: memref<1x8x16x8xf32, #tpu.memory_space<vmem>>) attributes {dimension_semantics = [#tpu.dimension_semantics<parallel>, #tpu.dimension_semantics<parallel>], iteration_bounds = array<i64: 2, 2>, scalar_prefetch = 0 : i64, scratch_operands = 0 : i64, tpu.core_type = #tpu.core_type<tc>, window_params = [{pipeline_mode = #tpu.pipeline_mode<synchronous>, transform_indices = @transform_0, window_bounds = array<i64: 1, 8>}, {pipeline_mode = #tpu.pipeline_mode<synchronous>, transform_indices = @transform_1, window_bounds = array<i64: 1, 8>}, {transform_indices = @transform_2, window_bounds = array<i64: 1, 8, 16, 8>}, {transform_indices = @transform_3, window_bounds = array<i64: 1, 8, 16, 8>}]} {
    %c0 = arith.constant 0 : index
    %c0_0 = arith.constant 0 : index
    %c0_1 = arith.constant 0 : index
    %c0_2 = arith.constant 0 : index
    %0 = vector.load %arg4[%c0, %c0_0, %c0_1, %c0_2] : memref<1x8x16x8xbf16, #tpu.memory_space<vmem>>, vector<1x8x16x8xbf16>
    %1 = vector.shape_cast %0 : vector<1x8x16x8xbf16> to vector<8x16x8xbf16>
    %2 = arith.extf %1 : vector<8x16x8xbf16> to vector<8x16x8xf32>
    %c0_3 = arith.constant 0 : index
    %c0_4 = arith.constant 0 : index
    %3 = vector.load %arg2[%c0_3, %c0_4] : memref<1x8xf32, #tpu.memory_space<vmem>>, vector<1x8xf32>
    %4 = vector.shape_cast %3 : vector<1x8xf32> to vector<8xf32>
    %5 = vector.shape_cast %4 : vector<8xf32> to vector<1x1x8xf32>
    %6 = vector.broadcast %5 : vector<1x1x8xf32> to vector<8x16x8xf32>
    %7 = arith.mulf %2, %6 : vector<8x16x8xf32>
    %c0_5 = arith.constant 0 : index
    %c0_6 = arith.constant 0 : index
    %8 = vector.load %arg3[%c0_5, %c0_6] : memref<1x8xf32, #tpu.memory_space<vmem>>, vector<1x8xf32>
    %9 = vector.shape_cast %8 : vector<1x8xf32> to vector<8xf32>
    %10 = vector.shape_cast %9 : vector<8xf32> to vector<1x1x8xf32>
    %11 = vector.broadcast %10 : vector<1x1x8xf32> to vector<8x16x8xf32>
    %12 = arith.addf %7, %11 : vector<8x16x8xf32>
    %cst = arith.constant 0.000000e+00 : f32
    %13 = vector.broadcast %cst : f32 to vector<8x16x8xf32>
    %14 = arith.maximumf %12, %13 : vector<8x16x8xf32>
    %c0_7 = arith.constant 0 : index
    %c0_8 = arith.constant 0 : index
    %c0_9 = arith.constant 0 : index
    %c0_10 = arith.constant 0 : index
    %15 = vector.load %arg5[%c0_7, %c0_8, %c0_9, %c0_10] : memref<1x8x16x8xf32, #tpu.memory_space<vmem>>, vector<1x8x16x8xf32>
    %16 = vector.shape_cast %15 : vector<1x8x16x8xf32> to vector<8x16x8xf32>
    %17 = vector.shape_cast %14 : vector<8x16x8xf32> to vector<1x8x16x8xf32>
    tpu.vector_store %arg5[%c0_7, %c0_8, %c0_9, %c0_10], %17 {strides = array<i32>} : memref<1x8x16x8xf32, #tpu.memory_space<vmem>>, vector<1x8x16x8xf32>,
    return
  }
  func.func @transform_0(%arg0: i32, %arg1: i32) -> (i32, i32) {
    %c0_i32 = arith.constant 0 : i32
    %c0_i32_0 = arith.constant 0 : i32
    %c0_i32_1 = arith.constant 0 : i32
    return %c0_i32, %c0_i32_0 : i32, i32
  }
  func.func @transform_1(%arg0: i32, %arg1: i32) -> (i32, i32) {
    %c0_i32 = arith.constant 0 : i32
    %c0_i32_0 = arith.constant 0 : i32
    %c0_i32_1 = arith.constant 0 : i32
    return %c0_i32, %c0_i32_0 : i32, i32
  }
  func.func @transform_2(%arg0: i32, %arg1: i32) -> (i32, i32, i32, i32) {
    %c0_i32 = arith.constant 0 : i32
    %c0_i32_0 = arith.constant 0 : i32
    %c0_i32_1 = arith.constant 0 : i32
    return %arg0, %arg1, %c0_i32, %c0_i32_0 : i32, i32, i32, i32
  }
  func.func @transform_3(%arg0: i32, %arg1: i32) -> (i32, i32, i32, i32) {
    %c0_i32 = arith.constant 0 : i32
    %c0_i32_0 = arith.constant 0 : i32
    %c0_i32_1 = arith.constant 0 : i32
    return %arg0, %arg1, %c0_i32, %c0_i32_0 : i32, i32, i32, i32
  }
}

</mosaic_0001>

<bundles_post_ra>
// kernel: double_conv_forward.3
= control target key start
LH: loop header
LB: loop body
LE: loop exit
PB: predicated region body
PF: predicated region fallthrough
CT: control target
= control target key end

     0   :  { %s2183_s15 = smov 0   ;;  %s2185_s16 = smov 0   ;;  %s2918_s0 = inlined_call_operand.vmem [shape: f32[2,16,16,4], index: 0, kind: input, shape index: {}]   ;;  %s2919_s1 = inlined_call_operand.vmem [shape: bf16[36,8], index: 1, kind: input, shape index: {}]   ;;  %s2920_s2 = inlined_call_operand.vmem [shape: bf16[2,16,16,8], index: 2, kind: output, shape index: {0}]   ;;  %s2921_s3 = inlined_call_operand.vmem [shape: f32[2,2,1,8], index: 3, kind: output, shape index: {1}]   ;;  %s2922_s4 = inlined_call_operand.vmem [shape: f32[2,2,1,8], index: 4, kind: output, shape index: {2}]  }
   0x1   :  { %s2187_s17 = smov 0   ;;  %s2189_s18 = smov 0  }
   0x2   :  { %s2191_s19 = smov 0  }
   0x3 LB: > { %s24_s20 = sadd.s32 1, %s2139_s17  ;;  %s27_s21 = sadd.s32 1, %s2143_s18  ;;  %s2147_s19 = sphi %s2191_s19, %s15_s19   ;;  %s2143_s18 = sphi %s2189_s18, %s2929_s18   ;;  %s2139_s17 = sphi %s2187_s17, %s2928_s17   ;;  %s2135_s16 = sphi %s2185_s16, %s2927_s16   ;;  %s2131_s15 = sphi %s2183_s15, %s2926_s15  }
   0x4   : > { %p25_p0 = scmp.ge.s32.totalorder %s24_s20, 2  ;;  %p1625_p1 = scmp.ge.s32.totalorder %s2147_s19, 1 }
   0x5   : > { %p185_p2 = scmp.lt.s32.totalorder %s2147_s19, 5 }
   0x6   : > { %s2931_s20 = smov (%p25_p0, %s24_s20), 0  ;;  %s2933_s21 = smov (!%p25_p0, %s27_s21), %s2143_s18 }
   0x7   : > { %p186_p3 = pnand %p1625_p1, %p185_p2  ;;  %p29_p4 = scmp.ge.s32.totalorder %s2933_s21, 2 }
   0x8   : > { %p230_p5 = scmp.lt.s32.totalorder (!%p186_p3), %s2135_s16, 1  ;;  %s2216_s22 = sshll.u32 (!%p186_p3), %s2131_s15, 3 }
   0x9   : > { %s2935_s21 = smov (%p29_p4, %s2933_s21), 0  ;;  %189 = sbr.rel (%p186_p3) target bundleno = 494 (0x1ee), region = 28 }
   0xa   : > { %s2219_s23 = sadd.s32 (!%p186_p3), 4294967295, %s2216_s22  ;;  %s1679_s28 = sshll.u32 (!%p186_p3), %s2131_s15, 7 }
   0xb   : > { %p263_p6 = scmp.gt.s32.totalorder (!%p186_p3), %s2219_s23, 0  ;;  %s287_s30 = sadd.s32 (!%p186_p3), 8, %s2216_s22 }
   0xc   : > { %p2296_p7 = scmp.lt.s32.totalorder (!%p186_p3), %s287_s30, 15  ;;  %s2150_s7 = smov (!%p186_p3), 12  }
   0xd   : > { %s2151_s10 = smov (!%p186_p3), 8   ;;  %s2152_s12 = smov (!%p186_p3), 4  }
   0xe   : > { %s2937_s16 = smov (!%p230_p5, %s2135_s16), 1  ;;  %v2224_v0 = vstv %s2219_s23  ;;  %v2149_v5 = vmov 0.0   ;;  %vm394_vm11 = vcmask 1040384   ;;  %vm578_vm12 = vcmask 1045504   ;;  %s2939_s23 = smov (!%p263_p6, %s2219_s23), 0 }
   0xf   : > { %v296_v1 = vadd.s32 2, %v2224_v0  ;;  %v295_v2 = vadd.s32 1, %v2224_v0  ;;  %vm304_vm0 = vcmp.ge.s32.totalorder %v2224_v0, 0  ;;  %vm314_vm1 = vcmp.lt.s32.totalorder %v2224_v0, 16  ;;  %s1678_s24 = sshll.u32 %s2937_s16, 8  ;;  %s1636_s5 = sshll.u32 %s2939_s23, 4 }
  0x10   : > { %v297_v3 = vadd.s32 3, %v2224_v0  ;;  %s2235_s27 = scalar_lea.vmem %s2918_s0, %s1678_s24  ;;  %vm2237_vm6 = vmand %vm304_vm0, %vm314_vm1  ;;  %v2254_v17 = vadd.s32 4, %v2224_v0  ;;  %vm489_vm13 = vcmask 1046528   ;;  %v2259_v19 = vadd.s32 5, %v2224_v0  ;;  %s2941_s30 = smov (!%p2296_p7, %s287_s30), 15 }
  0x11   : > { %vm306_vm2 = vcmp.ge.s32.totalorder %v296_v1, 0  ;;  %vm316_vm3 = vcmp.lt.s32.totalorder %v296_v1, 16  ;;  %vm305_vm4 = vcmp.ge.s32.totalorder %v295_v2, 0  ;;  %vm315_vm5 = vcmp.lt.s32.totalorder %v295_v2, 16  ;;  %s2243_s29 = scalar_lea.vmem %s2235_s27, %s1679_s28  ;;  %s266_s8 = scalar_lea.vmem %s2235_s27, %s1636_s5 }
  0x12   : > { %vm326_vm7 = vmand %vm306_vm2, %vm316_vm3  ;;  %vm307_vm9 = vcmp.ge.s32.totalorder %v297_v3, 0  ;;  %vm317_vm10 = vcmp.lt.s32.totalorder %v297_v3, 16  ;;  %v273_v7 = vld [vmem:[%s2243_s29 + $0x10] sm:$0xff]  ;;  %v274_v8 = vld [vmem:[%s2243_s29 + $0x18] sm:$0xff]  ;;  %v1639_v25 = vsel %vm2237_vm6, 1.0, %v2149_v5  ;;  %vm308_vm15 = vcmp.ge.s32.totalorder %v2254_v17, 0 }
  0x13   : > { %v1641_v6 = vsel %vm326_vm7, 1.0, %v2149_v5  ;;  %vm325_vm8 = vmand %vm305_vm4, %vm315_vm5  ;;  %v271_v9 = vld [vmem:[%s2243_s29] sm:$0xff]  ;;  %v272_v13 = vld [vmem:[%s2243_s29 + $0x8] sm:$0xff]  ;;  %vm318_vm0 = vcmp.lt.s32.totalorder %v2254_v17, 16  ;;  %s1638_s9 = sshll.u32 %s2941_s30, 4  ;;  %vm309_vm1 = vcmp.ge.s32.totalorder %v2259_v19, 0 }
  0x14   : > { %v1640_v10 = vsel %vm325_vm8, 1.0, %v2149_v5  ;;  %v358_v11 = vmul.f32 %v1641_v6, %v273_v7  ;;  %v359_v12 = vmul.f32 %v1641_v6, %v274_v8  ;;  %v275_v15 = vld [vmem:[%s2243_s29 + $0x20] sm:$0xff]  ;;  %v276_v16 = vld [vmem:[%s2243_s29 + $0x28] sm:$0xff]  ;;  %vm327_vm14 = vmand %vm307_vm9, %vm317_vm10  ;;  %s2322_s11 = scalar_lea.vmem %s2235_s27, %s1638_s9  ;;  %s2153_s13 = smov 16   ;;  %vm319_vm3 = vcmp.lt.s32.totalorder %v2259_v19, 16 }
  0x15   : > { %v356_v14 = vmul.f32 %v1640_v10, %v271_v9  ;;  %v357_v18 = vmul.f32 %v1640_v10, %v272_v13  ;;  %v1642_v23 = vsel %vm327_vm14, 1.0, %v2149_v5  ;;  %v267_v48 = vld [vmem:[%s266_s8] sm:$0xff]  ;;  %v268_v53 = vld [vmem:[%s266_s8 + $0x8] sm:$0xff]  ;;  %vm328_vm2 = vmand %vm308_vm15, %vm318_vm0  ;;  %s2154_s14 = smov 20   ;;  %s2155_s23 = smov 24  }
  0x16   : > { %v401_v20 = vrot.slane %v358_v11, 7  ;;  %v402_v21 = vrot.slane %v359_v12, 7  ;;  %v2266_v26 = vmul.f32 %v1642_v23, %v275_v15  ;;  %v2268_v27 = vmul.f32 %v1642_v23, %v276_v16  ;;  %vm329_vm4 = vmand %vm309_vm1, %vm319_vm3  ;;  %v279_v19 = vld [vmem:[%s2243_s29 + $0x40] sm:$0xff]  ;;  %s2156_s24 = smov 28   ;;  %s2157_s25 = smov 32  }
  0x17   : > { %v398_v22 = vrot.slane %v356_v14, 7  ;;  %v399_v24 = vrot.slane %v357_v18, 7  ;;  %v354_v59 = vmul.f32 %v1639_v25, %v267_v48  ;;  %v355_v61 = vmul.f32 %v1639_v25, %v268_v53  ;;  %p238_p8 = scmp.lt.s32.totalorder %s2216_s22, 15  ;;  %p248_p9 = scmp.lt.s32.totalorder %s2131_s15, 1 }
  0x18   : > { %v2271_v28 = vsel %vm394_vm11, %v401_v20, %v402_v21  ;;  %v2274_v29 = vsel %vm394_vm11, 0.0, %v401_v20  ;;  %v465_v31 = vsel %vm394_vm11, %v402_v21, 0.0  ;;  %v404_v62 = vrot.slane %v2266_v26, 7  ;;  %v277_v26 = vld [vmem:[%s2243_s29 + $0x30] sm:$0xff] }
  0x19   : > { %v2277_v30 = vsel %vm394_vm11, 0.0, %v398_v22  ;;  %v2284_v32 = vpack.i.bf16 %v2271_v28, %v2274_v29  ;;  %v2287_v33 = vsel %vm394_vm11, %v398_v22, %v399_v24  ;;  %v464_v34 = vsel %vm394_vm11, %v399_v24, 0.0  ;;  %s2943_s22 = smov (!%p238_p8, %s2216_s22), 15  ;;  %s2945_s15 = smov (!%p248_p9, %s2131_s15), 1 }
  0x1a   : > { %v584_v35 = vrot.slane %v2277_v30, 2  ;;  %v1786_v36 = vpack.i.bf16 %v2287_v33, %v2277_v30  ;;  %v585_v37 = vrot.slane %v2287_v33, 2  ;;  %v587_v38 = vrot.slane %v464_v34, 2  ;;  %s1629_s6 = sshll.u32 %s2943_s22, 1  ;;  %s1632_s22 = sshll.u32 %s2937_s16, 1 }
  0x1b   : > { %v495_v39 = vrot.slane %v2277_v30, 1  ;;  %1792 = vrot.lane.b32.xlu1 %v2284_v32, %s2150_s7  ;;  %v496_v40 = vrot.slane %v2287_v33, 1  ;;  %v498_v41 = vrot.slane %v464_v34, 1  ;;  %v500_v42 = vrot.slane %v2274_v29, 1 }
  0x1c   : > { %v501_v43 = vrot.slane %v2271_v28, 1  ;;  %1787 = vrot.lane.b32.xlu0 %v1786_v36, %s2150_s7  ;;  %v586_v44 = vsel %vm578_vm12, %v584_v35, %v585_v37  ;;  %v588_v45 = vsel %vm578_vm12, %v585_v37, %v587_v38  ;;  %v503_v46 = vrot.slane %v465_v31, 1 }
  0x1d   : > { %v589_v47 = vrot.slane %v2274_v29, 2  ;;  %v1801_v49 = vpack.i.bf16 %v588_v45, %v586_v44  ;;  %v497_v50 = vsel %vm489_vm13, %v495_v39, %v496_v40  ;;  %v499_v51 = vsel %vm489_vm13, %v496_v40, %v498_v41  ;;  %v280_v44 = vld [vmem:[%s2243_s29 + $0x48] sm:$0xff] }
  0x1e   : > { %v502_v52 = vsel %vm489_vm13, %v500_v42, %v501_v43  ;;  %v1796_v54 = vpack.i.bf16 %v499_v51, %v497_v50  ;;  %v504_v55 = vsel %vm489_vm13, %v501_v43, %v503_v46  ;;  %v590_v56 = vrot.slane %v2271_v28, 2 }
  0x1f   : > { %1802 = vrot.lane.b32.xlu1 %v1801_v49, %s2151_s10  ;;  %v2319_v57 = vpack.i.bf16 %v504_v55, %v502_v52  ;;  %v592_v58 = vrot.slane %v465_v31, 2  ;;  %v405_v63 = vrot.slane %v2268_v27, 7  ;;  %v395_v2 = vrot.slane %v354_v59, 7  ;;  %v278_v27 = vld [vmem:[%s2243_s29 + $0x38] sm:$0xff] }
  0x20   : > { %1797 = vrot.lane.b32.xlu0 %v1796_v54, %s2152_s12  ;;  %v591_v60 = vsel %vm578_vm12, %v589_v47, %v590_v56  ;;  %v396_v4 = vrot.slane %v355_v61, 7  ;;  %v2341_v8 = vsel %vm394_vm11, 0.0, %v404_v62  ;;  %v1643_v21 = vsel %vm328_vm2, 1.0, %v2149_v5 }
  0x21   : > { %v593_v1 = vsel %vm578_vm12, %v590_v56, %v592_v58  ;;  %v2335_v6 = vsel %vm394_vm11, 0.0, %v395_v2  ;;  %v2338_v7 = vsel %vm394_vm11, %v404_v62, %v405_v63  ;;  %v2344_v9 = vsel %vm394_vm11, %v405_v63, 0.0 }
  0x22   : > { %v2329_v3 = vpack.i.bf16 %v593_v1, %v591_v60  ;;  %v2352_v10 = vsel %vm394_vm11, %v395_v2, %v396_v4  ;;  %v463_v11 = vsel %vm394_vm11, %v396_v4, 0.0  ;;  %v579_v12 = vrot.slane %v2335_v6, 2 }
  0x23   : > { %1812 = vrot.lane.b32.xlu1 %v2319_v57, %s2153_s13  ;;  %v490_v13 = vrot.slane %v2335_v6, 1  ;;  %v580_v14 = vrot.slane %v2352_v10, 2  ;;  %v582_v15 = vrot.slane %v463_v11, 2  ;;  %v491_v16 = vrot.slane %v2352_v10, 1 }
  0x24   : > { %1807 = vrot.lane.b32.xlu0 %v1796_v54, %s2153_s13  ;;  %v493_v17 = vrot.slane %v463_v11, 1  ;;  %v505_v18 = vrot.slane %v2341_v8, 1  ;;  %v506_v20 = vrot.slane %v2338_v7, 1  ;;  %v508_v35 = vrot.slane %v2344_v9, 1  ;;  %v281_v11 = vld [vmem:[%s2243_s29 + $0x50] sm:$0xff] }
  0x25   : > { %v581_v22 = vsel %vm578_vm12, %v579_v12, %v580_v14  ;;  %v583_v23 = vsel %vm578_vm12, %v580_v14, %v582_v15  ;;  %v492_v24 = vsel %vm489_vm13, %v490_v13, %v491_v16  ;;  %v362_v36 = vmul.f32 %v1643_v21, %v277_v26  ;;  %v282_v12 = vld [vmem:[%s2243_s29 + $0x58] sm:$0xff] }
  0x26   : > { %v494_v25 = vsel %vm489_vm13, %v491_v16, %v493_v17  ;;  %v1836_v31 = vpack.i.bf16 %v583_v23, %v581_v22  ;;  %v363_v37 = vmul.f32 %v1643_v21, %v278_v27  ;;  %v300_v38 = vadd.s32 6, %v2224_v0 }
  0x27   : > { %1822 = vrot.lane.b32.xlu1 %v2329_v3, %s2154_s14  ;;  %v1826_v34 = vpack.i.bf16 %v494_v25, %v492_v24  ;;  %v2379_v39 = vpack.i.bf16 %v2338_v7, %v2341_v8  ;;  %v507_v40 = vsel %vm489_vm13, %v505_v18, %v506_v20  ;;  %v509_v41 = vsel %vm489_vm13, %v506_v20, %v508_v35  ;;  %v283_v35 = vld [vmem:[%s2243_s29 + $0x60] sm:$0xff] }
  0x28   : > { %1817 = vrot.lane.b32.xlu0 %v1801_v49, %s2154_s14  ;;  %v407_v42 = vrot.slane %v362_v36, 7  ;;  %v408_v43 = vrot.slane %v363_v37, 7  ;;  %v1644_v45 = vsel %vm329_vm4, 1.0, %v2149_v5  ;;  %vm310_vm5 = vcmp.ge.s32.totalorder %v300_v38, 0 }
  0x29   : > { %vm320_vm6 = vcmp.lt.s32.totalorder %v300_v38, 16  ;;  %v2395_v48 = vpack.i.bf16 %v509_v41, %v507_v40  ;;  %v364_v50 = vmul.f32 %v1644_v45, %v279_v19  ;;  %v365_v51 = vmul.f32 %v1644_v45, %v280_v44  ;;  %v284_v40 = vld [vmem:[%s2243_s29 + $0x68] sm:$0xff] }
  0x2a   : > { %v2388_v46 = vsel %vm394_vm11, %v407_v42, %v408_v43  ;;  %v2391_v47 = vsel %vm394_vm11, 0.0, %v407_v42  ;;  %v467_v49 = vsel %vm394_vm11, %v408_v43, 0.0  ;;  %v594_v52 = vrot.slane %v2341_v8, 2  ;;  %vm330_vm7 = vmand %vm310_vm5, %vm320_vm6 }
  0x2b   : > { %1837 = vrot.lane.b32.xlu1 %v1836_v31, %s2151_s10  ;;  %v595_v53 = vrot.slane %v2338_v7, 2  ;;  %v597_v54 = vrot.slane %v2344_v9, 2  ;;  %v510_v55 = vrot.slane %v2391_v47, 1  ;;  %v511_v56 = vrot.slane %v2388_v46, 1 }
  0x2c   : > { %1827 = vrot.lane.b32.xlu0 %v1826_v34, %s2152_s12  ;;  %v301_v58 = vadd.s32 7, %v2224_v0  ;;  %v513_v59 = vrot.slane %v467_v49, 1  ;;  %v599_v60 = vrot.slane %v2391_v47, 2  ;;  %v600_v61 = vrot.slane %v2388_v46, 2 }
  0x2d   : > { %v410_v62 = vrot.slane %v364_v50, 7  ;;  %v411_v63 = vrot.slane %v365_v51, 7  ;;  %v302_v1 = vadd.s32 8, %v2224_v0  ;;  %v596_v2 = vsel %vm578_vm12, %v594_v52, %v595_v53 }
  0x2e   : > { %v598_v4 = vsel %vm578_vm12, %v595_v53, %v597_v54  ;;  %v512_v9 = vsel %vm489_vm13, %v510_v55, %v511_v56  ;;  %v514_v13 = vsel %vm489_vm13, %v511_v56, %v513_v59  ;;  %v601_v14 = vsel %vm578_vm12, %v599_v60, %v600_v61 }
  0x2f   : > { %1842 = vrot.lane.b32.xlu1 %v2379_v39, %s2155_s23  ;;  %v1645_v16 = vsel %vm330_vm7, 1.0, %v2149_v5  ;;  %v2426_v17 = vpack.i.bf16 %v598_v4, %v596_v2  ;;  %v2429_v18 = vsel %vm394_vm11, %v410_v62, %v411_v63  ;;  %v2432_v20 = vsel %vm394_vm11, 0.0, %v410_v62 }
  0x30   : > { %1832 = vrot.lane.b32.xlu0 %v2284_v32, %s2155_s23  ;;  %v602_v32 = vrot.slane %v467_v49, 2  ;;  %v2438_v21 = vpack.i.bf16 %v2388_v46, %v2391_v47  ;;  %v366_v22 = vmul.f32 %v1645_v16, %v281_v11  ;;  %v367_v23 = vmul.f32 %v1645_v16, %v282_v12 }
  0x31   : > { %vm311_vm8 = vcmp.ge.s32.totalorder %v301_v58, 0  ;;  %v2446_v25 = vpack.i.bf16 %v2429_v18, %v2432_v20  ;;  %vm321_vm9 = vcmp.lt.s32.totalorder %v301_v58, 16  ;;  %v2451_v31 = vsel %vm394_vm11, %v411_v63, 0.0  ;;  %v285_v63 = vld [vmem:[%s2243_s29 + $0x70] sm:$0xff] }
  0x32   : > { %v603_v15 = vsel %vm578_vm12, %v600_v61, %v602_v32  ;;  %v413_v26 = vrot.slane %v366_v22, 7  ;;  %v414_v27 = vrot.slane %v367_v23, 7  ;;  %v515_v34 = vrot.slane %v2432_v20, 1  ;;  %vm331_vm10 = vmand %vm311_vm8, %vm321_vm9 }
  0x33   : > { %1852 = vrot.lane.b32.xlu1 %v2395_v48, %s2156_s24  ;;  %v2442_v24 = vpack.i.bf16 %v603_v15, %v601_v14  ;;  %vm312_vm14 = vcmp.ge.s32.totalorder %v302_v1, 0  ;;  %vm322_vm15 = vcmp.lt.s32.totalorder %v302_v1, 16  ;;  %v1646_v41 = vsel %vm331_vm10, 1.0, %v2149_v5  ;;  %v286_v1 = vld [vmem:[%s2243_s29 + $0x78] sm:$0xff] }
  0x34   : > { %1847 = vrot.lane.b32.xlu0 %v2319_v57, %s2156_s24  ;;  %v2458_v36 = vsel %vm394_vm11, %v413_v26, %v414_v27  ;;  %v2461_v37 = vsel %vm394_vm11, 0.0, %v413_v26  ;;  %v469_v38 = vsel %vm394_vm11, %v414_v27, 0.0  ;;  %v516_v42 = vrot.slane %v2429_v18, 1  ;;  %vm332_vm0 = vmand %vm312_vm14, %vm322_vm15 }
  0x35   : > { %v520_v43 = vrot.slane %v2461_v37, 1  ;;  %v521_v19 = vrot.slane %v2458_v36, 1  ;;  %v523_v44 = vrot.slane %v469_v38, 1  ;;  %v609_v45 = vrot.slane %v2461_v37, 2 }
  0x36   : > { %v610_v49 = vrot.slane %v2458_v36, 2  ;;  %v612_v50 = vrot.slane %v469_v38, 2  ;;  %v368_v51 = vmul.f32 %v1646_v41, %v283_v35  ;;  %v369_v54 = vmul.f32 %v1646_v41, %v284_v40 }
  0x37   : > { %1862 = vrot.lane.b32.xlu1 %v2319_v57, %s2152_s12  ;;  %v2440_v57 = vpack.i.bf16 %v514_v13, %v512_v9  ;;  %v522_v52 = vsel %vm489_vm13, %v520_v43, %v521_v19  ;;  %v524_v53 = vsel %vm489_vm13, %v521_v19, %v523_v44  ;;  %v303_v55 = vadd.s32 9, %v2224_v0 }
  0x38   : > { %1857 = vrot.lane.b32.xlu0 %v2329_v3, %s2157_s25  ;;  %v2480_v56 = vpack.i.bf16 %v524_v53, %v522_v52  ;;  %v611_v58 = vsel %vm578_vm12, %v609_v45, %v610_v49  ;;  %v613_v59 = vsel %vm578_vm12, %v610_v49, %v612_v50  ;;  %v416_v60 = vrot.slane %v368_v51, 7  ;;  %v292_v51 = vld [vmem:[%s2322_s11] sm:$0xff] }
  0x39   : > { %v2484_v61 = vpack.i.bf16 %v613_v59, %v611_v58  ;;  %v417_v32 = vrot.slane %v369_v54, 7  ;;  %v1647_v0 = vsel %vm332_vm0, 1.0, %v2149_v5  ;;  %v518_v11 = vrot.slane %v2451_v31, 1  ;;  %v293_v54 = vld [vmem:[%s2322_s11 + $0x8] sm:$0xff] }
  0x3a   : > { %v2487_v62 = vsel %vm394_vm11, 0.0, %v416_v60  ;;  %v370_v16 = vmul.f32 %v1647_v0, %v285_v63  ;;  %v371_v22 = vmul.f32 %v1647_v0, %v286_v1  ;;  %vm313_vm1 = vcmp.ge.s32.totalorder %v303_v55, 0  ;;  %v2106_v0 = vld [vmem:[%s2919_s1 + $0x10] ss:$0 sps:$4 sm:$0x33]  }
  0x3b   : > { %1872 = vrot.lane.b32.xlu1 %v2395_v48, %s2152_s12  ;;  %v470_v2 = vsel %vm394_vm11, %v417_v32, 0.0  ;;  %v525_v4 = vrot.slane %v2487_v62, 1  ;;  %v614_v9 = vrot.slane %v2487_v62, 2  ;;  %v517_v43 = vsel %vm489_vm13, %v515_v34, %v516_v42 }
  0x3c   : > { %1867 = vrot.lane.b32.xlu0 %v2426_v17, %s2157_s25  ;;  %v528_v13 = vrot.slane %v470_v2, 1  ;;  %v617_v15 = vrot.slane %v470_v2, 2  ;;  %v419_v38 = vrot.slane %v370_v16, 7  ;;  %v420_v41 = vrot.slane %v371_v22, 7 }
  0x3d   : > { %vm323_vm2 = vcmp.lt.s32.totalorder %v303_v55, 16  ;;  %v519_v58 = vsel %vm489_vm13, %v516_v42, %v518_v11  ;;  %v2107_v11 = vld [vmem:[%s2919_s1 + $0x8] sm:$0xff]   ;;  %vm1168_vm4 = vcmask 1041408   ;;  %vm1030_vm5 = vcmask 130048  }
  0x3e   : > { %v461_v19 = vsel %vm394_vm11, 0.0, %v419_v38  ;;  %v421_v44 = vsel %vm394_vm11, %v419_v38, %v420_v41  ;;  %v471_v45 = vsel %vm394_vm11, %v420_v41, 0.0  ;;  %vm333_vm3 = vmand %vm313_vm1, %vm323_vm2  ;;  %1735 = vmatprep.subr.msk.bf16.mxu0 %vm1168_vm4, %v2106_v0  ;;  %v1170_v22 = vsel %vm1168_vm4, %v2106_v0, 0  ;;  %1736 = vmatprep.subr.msk.bf16.mxu1 %vm1168_vm4, %v2106_v0 }
  0x3f   : > { %1882 = vrot.lane.b32.xlu1 %v2426_v17, %s2151_s10  ;;  %v717_v49 = vrot.slane %v461_v19, 1  ;;  %v770_v50 = vrot.slane %v461_v19, 2  ;;  %v718_v52 = vrot.slane %v421_v44, 1  ;;  %v720_v53 = vrot.slane %v471_v45, 1  ;;  %1708 = vmatpush3.bf16.msra.mxu0 %v1170_v22 }
  0x40   : > { %1877 = vrot.lane.b32.xlu0 %v2329_v3, %s2151_s10  ;;  %v2495_v3 = vsel %vm394_vm11, %v416_v60, %v417_v32  ;;  %v771_v34 = vrot.slane %v421_v44, 2  ;;  %v773_v59 = vrot.slane %v471_v45, 2  ;;  %v1648_v55 = vsel %vm333_vm3, 1.0, %v2149_v5  ;;  %1732 = vmatpush3.bf16.msra.mxu1 %v1170_v22 }
  0x41   : > { %v526_v12 = vrot.slane %v2495_v3, 1  ;;  %v615_v14 = vrot.slane %v2495_v3, 2  ;;  %v719_v60 = vsel %vm489_vm13, %v717_v49, %v718_v52  ;;  %v721_v32 = vsel %vm489_vm13, %v718_v52, %v720_v53  ;;  %1709 = vmatprep.subr.bf16.mxu0 %v2107_v11  ;;  %1730 = vmatprep.subr.bf16.mxu1 %v2107_v11 }
  0x42   : > { %v772_v63 = vsel %vm578_vm12, %v770_v50, %v771_v34  ;;  %v372_v1 = vmul.f32 %v1648_v55, %v292_v51  ;;  %v2542_v2 = vpack.i.bf16 %v721_v32, %v719_v60  ;;  %v1931_v5 = vpack.i.bf16 %v519_v58, %v517_v43  ;;  %v2108_v43 = vld [vmem:[%s2919_s1] sm:$0xff]  }
  0x43   : > { %1892 = vrot.lane.b32.xlu1 %v2438_v21, %s2150_s7  ;;  %v527_v23 = vsel %vm489_vm13, %v525_v4, %v526_v12  ;;  %v529_v26 = vsel %vm489_vm13, %v526_v12, %v528_v13  ;;  %v616_v27 = vsel %vm578_vm12, %v614_v9, %v615_v14  ;;  %v618_v35 = vsel %vm578_vm12, %v615_v14, %v617_v15 }
  0x44   : > { %1887 = vrot.lane.b32.xlu0 %v2379_v39, %s2150_s7  ;;  %v2510_v39 = vpack.i.bf16 %v529_v26, %v527_v23  ;;  %v2515_v40 = vpack.i.bf16 %v618_v35, %v616_v27  ;;  %v373_v4 = vmul.f32 %v1648_v55, %v293_v54  ;;  %v422_v9 = vrot.slane %v372_v1, 7  ;;  %1710 = vmatpush3.bf16.msra.mxu0 %v2107_v11 }
  0x45   : > { %v604_v12 = vrot.slane %v2432_v20, 2  ;;  %v605_v13 = vrot.slane %v2429_v18, 2  ;;  %v607_v15 = vrot.slane %v2451_v31, 2  ;;  %1733 = vmatpush3.bf16.msra.mxu1 %v2107_v11  ;;  %1711 = vmatprep.subr.bf16.mxu0 %v2108_v43  ;;  %v1971_v58 = vpack.i.bf16 %v2458_v36, %v2461_v37 }
  0x46   : > { %v423_v14 = vrot.slane %v373_v4, 7  ;;  %v2558_v16 = vsel %vm394_vm11, 0.0, %v422_v9  ;;  %1731 = vmatprep.subr.bf16.mxu1 %v2108_v43  ;;  %vm1047_vm6 = vcmask 162816   ;;  %vm1064_vm7 = vcmask 195584  }
  0x47   : > { %1902 = vrot.lane.b32.xlu1 %v2440_v57, %s2153_s13  ;;  %v873_v26 = vrot.slane %v2558_v16, 1  ;;  %v608_v45 = vsel %vm578_vm12, %v605_v13, %v607_v15  ;;  %vm1081_vm8 = vcmask 228352   ;;  %vm1098_vm9 = vcmask 261120  }
  0x48   : > { %1897 = vrot.lane.b32.xlu0 %v2395_v48, %s2153_s13  ;;  %v2527_v48 = vpack.i.bf16 %v421_v44, %v461_v19  ;;  %v2561_v23 = vsel %vm394_vm11, %v422_v9, %v423_v14  ;;  %v472_v27 = vsel %vm394_vm11, %v423_v14, 0.0  ;;  %v606_v19 = vsel %vm578_vm12, %v604_v12, %v605_v13  ;;  %1712 = vmatpush3.bf16.msra.mxu0 %v2108_v43 }
  0x49   : > { %v2081_v31 = vpack.i.bf16 %v2561_v23, %v2558_v16  ;;  %v874_v35 = vrot.slane %v2561_v23, 1  ;;  %v927_v38 = vrot.slane %v2561_v23, 2  ;;  %v876_v41 = vrot.slane %v472_v27, 1  ;;  %1734 = vmatpush3.bf16.msra.mxu1 %v2108_v43 }
  0x4a   : > { %v929_v44 = vrot.slane %v472_v27, 2  ;;  %v1946_v54 = vpack.i.bf16 %v608_v45, %v606_v19  ;;  %vm979_vm11 = vcmask 31744   ;;  %vm1143_vm10 = vcmask 293888  }
  0x4b   : > { %1912 = vrot.lane.b32.xlu1 %v2442_v24, %s2154_s14  ;;  %v875_v49 = vsel %vm489_vm13, %v873_v26, %v874_v35  ;;  %v877_v50 = vsel %vm489_vm13, %v874_v35, %v876_v41  ;;  %vm1013_vm13 = vcmask 97280   ;;  %vm1426_vm14 = vcmask 60416  }
  0x4c   : > { %1907 = vrot.lane.b32.xlu0 %v2426_v17, %s2154_s14  ;;  %v774_v17 = vsel %vm578_vm12, %v771_v34, %v773_v59  ;;  %v2091_v52 = vpack.i.bf16 %v877_v50, %v875_v49  ;;  %v930_v53 = vsel %vm578_vm12, %v927_v38, %v929_v44  ;;  %vm1306_vm15 = vcmask 57344  }
  0x4d   : > { %v2547_v42 = vpack.i.bf16 %v774_v17, %v772_v63 }
  0x4f   : > { %1922 = vrot.lane.b32.xlu1 %v2446_v25, %s2155_s23 }
  0x50   : > { %1917 = vrot.lane.b32.xlu0 %v2438_v21, %s2155_s23  ;;  %v926_v21 = vrot.slane %v2558_v16, 2 }
  0x52   : > { %v928_v51 = vsel %vm578_vm12, %v926_v21, %v927_v38  ;;  %vm996_vm12 = vcmask 64512  }
  0x53   : > { %1932 = vrot.lane.b32.xlu1 %v1931_v5, %s2156_s24  ;;  %v2101_v34 = vpack.i.bf16 %v930_v53, %v928_v51 }
  0x54   : > { %1927 = vrot.lane.b32.xlu0 %v2440_v57, %s2156_s24 }
  0x57   : > { %1942 = vrot.lane.b32.xlu1 %v2440_v57, %s2152_s12  ;;  %v2001_v57 = vpack.i.bf16 %v2495_v3, %v2487_v62 }
  0x58   : > { %1937 = vrot.lane.b32.xlu0 %v2442_v24, %s2157_s25 }
  0x5b   : > { %1952 = vrot.lane.b32.xlu1 %v1931_v5, %s2152_s12 }
  0x5c   : > { %1947 = vrot.lane.b32.xlu0 %v1946_v54, %s2157_s25 }
  0x5f   : > { %1962 = vrot.lane.b32.xlu1 %v1946_v54, %s2151_s10 }
  0x60   : > { %1957 = vrot.lane.b32.xlu0 %v2442_v24, %s2151_s10 }
  0x63   : > { %1972 = vrot.lane.b32.xlu1 %v1971_v58, %s2150_s7 }
  0x64   : > { %1967 = vrot.lane.b32.xlu0 %v2446_v25, %s2150_s7 }
  0x67   : > { %1982 = vrot.lane.b32.xlu1 %v2480_v56, %s2153_s13 }
  0x68   : > { %1977 = vrot.lane.b32.xlu0 %v1931_v5, %s2153_s13 }
  0x6b   : > { %1992 = vrot.lane.b32.xlu1 %v2484_v61, %s2154_s14 }
  0x6c   : > { %1987 = vrot.lane.b32.xlu0 %v1946_v54, %s2154_s14 }
  0x6f   : > { %2002 = vrot.lane.b32.xlu1 %v2001_v57, %s2155_s23 }
  0x70   : > { %1997 = vrot.lane.b32.xlu0 %v1971_v58, %s2155_s23 }
  0x73   : > { %2012 = vrot.lane.b32.xlu1 %v2510_v39, %s2156_s24 }
  0x74   : > { %2007 = vrot.lane.b32.xlu0 %v2480_v56, %s2156_s24 }
  0x77   : > { %2022 = vrot.lane.b32.xlu1 %v2480_v56, %s2152_s12 }
  0x78   : > { %2017 = vrot.lane.b32.xlu0 %v2484_v61, %s2157_s25 }
  0x7b   : > { %2032 = vrot.lane.b32.xlu1 %v2510_v39, %s2152_s12 }
  0x7c   : > { %2027 = vrot.lane.b32.xlu0 %v2515_v40, %s2157_s25 }
  0x7f   : > { %2042 = vrot.lane.b32.xlu1 %v2515_v40, %s2151_s10 }
  0x80   : > { %2037 = vrot.lane.b32.xlu0 %v2484_v61, %s2151_s10 }
  0x83   : > { %2052 = vrot.lane.b32.xlu1 %v2527_v48, %s2150_s7 }
  0x84   : > { %2047 = vrot.lane.b32.xlu0 %v2001_v57, %s2150_s7  ;;  %s1630_s7 = sshll.u32 %s2937_s16, 5 }
  0x85   : > { %s242_s8 = sadd.s32 %s1630_s7, %s1629_s6 }
  0x86   : > { %s1631_s9 = sshll.u32 %s242_s8, 2 }
  0x87   : > { %2062 = vrot.lane.b32.xlu1 %v2542_v2, %s2153_s13  ;;  %s2828_s12 = scalar_lea.vmem %s2920_s2, %s1631_s9 }
  0x88   : > { %2057 = vrot.lane.b32.xlu0 %v2510_v39, %s2153_s13  ;;  %s251_s13 = sadd.s32 %s1632_s22, %s2945_s15 }
  0x89   : > { %s259_s27 = scalar_lea.vmem %s2922_s4, %s251_s13 }
  0x8b   : > { %2072 = vrot.lane.b32.xlu1 %v2547_v42, %s2154_s14 }
  0x8c   : > { %2067 = vrot.lane.b32.xlu0 %v2515_v40, %s2154_s14 }
  0x8d   : > { %v2633_v24 = vpop.permute.xlu1 %1792 }
  0x8e   : > { %v1788_v25 = vpop.permute.xlu0 %1787  ;;  %v1795_v19 = vunpack.i.h.bf16 %v2633_v24  ;;  %v1794_v44 = vunpack.i.l.bf16 %v2633_v24 }
  0x8f   : > { %2082 = vrot.lane.b32.xlu1 %v2081_v31, %s2155_s23  ;;  %v1790_v4 = vunpack.i.h.bf16 %v1788_v25  ;;  %v1789_v5 = vunpack.i.l.bf16 %v1788_v25 }
  0x90   : > { %2077 = vrot.lane.b32.xlu0 %v2527_v48, %s2155_s23 }
  0x91   : > { %v1803_v56 = vpop.permute.xlu1 %1802 }
  0x92   : > { %v1798_v61 = vpop.permute.xlu0 %1797  ;;  %v1805_v9 = vunpack.i.h.bf16 %v1803_v56  ;;  %v1804_v11 = vunpack.i.l.bf16 %v1803_v56 }
  0x93   : > { %2092 = vrot.lane.b32.xlu1 %v2091_v52, %s2156_s24  ;;  %v1800_v48 = vunpack.i.h.bf16 %v1798_v61  ;;  %v1799_v32 = vunpack.i.l.bf16 %v1798_v61 }
  0x94   : > { %2087 = vrot.lane.b32.xlu0 %v2542_v2, %s2156_s24  ;;  %s252_s24 = scalar_lea.vmem %s2921_s3, %s251_s13 }
  0x95   : > { %v2641_v39 = vpop.permute.xlu1 %1812  ;;  %v983_v14 = vsel %vm979_vm11, %v2287_v33, %v1800_v48  ;;  %v982_v15 = vsel %vm979_vm11, %v2277_v30, %v1799_v32 }
  0x96   : > { %v1808_v59 = vpop.permute.xlu0 %1807  ;;  %v1000_v31 = vsel %vm996_vm12, %v983_v14, %v1805_v9  ;;  %v999_v35 = vsel %vm996_vm12, %v982_v15, %v1804_v11  ;;  %v1814_v54 = vunpack.i.l.bf16 %v2641_v39 }
  0x97   : > { %2102 = vrot.lane.b32.xlu1 %v2101_v34, %s2157_s25  ;;  %v1810_v26 = vunpack.i.h.bf16 %v1808_v59  ;;  %v1809_v21 = vunpack.i.l.bf16 %v1808_v59  ;;  %v1815_v34 = vunpack.i.h.bf16 %v2641_v39  ;;  %v1016_v58 = vsel %vm1013_vm13, %v999_v35, %v1794_v44 }
  0x98   : > { %2097 = vrot.lane.b32.xlu0 %v2547_v42, %s2157_s25  ;;  %v1017_v57 = vsel %vm1013_vm13, %v1000_v31, %v1795_v19 }
  0x99   : > { %v2646_v40 = vpop.permute.xlu1 %1822 }
  0x9a   : > { %v1818_v55 = vpop.permute.xlu0 %1817  ;;  %v1825_v56 = vunpack.i.h.bf16 %v2646_v40  ;;  %v1824_v24 = vunpack.i.l.bf16 %v2646_v40 }
  0x9b   : > { %v1820_v38 = vunpack.i.h.bf16 %v1818_v55  ;;  %v1819_v41 = vunpack.i.l.bf16 %v1818_v55 }
  0x9d   : > { %v1838_v60 = vpop.permute.xlu1 %1837 }
  0x9e   : > { %v1840_v63 = vunpack.i.h.bf16 %v1838_v60  ;;  %v1839_v1 = vunpack.i.l.bf16 %v1838_v60  ;;  %v1828_v0 = vpop.permute.xlu0 %1827 }
  0x9f   : > { %v1830_v17 = vunpack.i.h.bf16 %v1828_v0  ;;  %v1829_v2 = vunpack.i.l.bf16 %v1828_v0 }
  0xa1   : > { %v981_v42 = vsel %vm979_vm11, %v2352_v10, %v1830_v17  ;;  %v980_v12 = vsel %vm979_vm11, %v2335_v6, %v1829_v2  ;;  %v1843_v13 = vpop.permute.xlu1 %1842  ;;  %v1033_v2 = vsel %vm1030_vm5, %v1016_v58, %v1814_v54 }
  0xa2   : > { %v998_v16 = vsel %vm996_vm12, %v981_v42, %v1840_v63  ;;  %v997_v22 = vsel %vm996_vm12, %v980_v12, %v1839_v1  ;;  %v1833_v23 = vpop.permute.xlu0 %1832  ;;  %v1845_v61 = vunpack.i.h.bf16 %v1843_v13  ;;  %v1844_v59 = vunpack.i.l.bf16 %v1843_v13 }
  0xa3   : > { %v1015_v27 = vsel %vm1013_vm13, %v998_v16, %v1790_v4  ;;  %v1014_v10 = vsel %vm1013_vm13, %v997_v22, %v1789_v5  ;;  %v1835_v45 = vunpack.i.h.bf16 %v1833_v23  ;;  %v1834_v49 = vunpack.i.l.bf16 %v1833_v23 }
  0xa4   : > { %v1031_v33 = vsel %vm1030_vm5, %v1014_v10, %v1809_v21  ;;  %v1032_v6 = vsel %vm1030_vm5, %v1015_v27, %v1810_v26  ;;  %v1034_v4 = vsel %vm1030_vm5, %v1017_v57, %v1815_v34  ;;  %v1050_v11 = vsel %vm1047_vm6, %v1033_v2, %v1824_v24 }
  0xa5   : > { %v1853_v30 = vpop.permute.xlu1 %1852  ;;  %v1048_v50 = vsel %vm1047_vm6, %v1031_v33, %v1819_v41  ;;  %v1049_v51 = vsel %vm1047_vm6, %v1032_v6, %v1820_v38  ;;  %v1051_v42 = vsel %vm1047_vm6, %v1034_v4, %v1825_v56  ;;  %v1067_v15 = vsel %vm1064_vm7, %v1050_v11, %v1844_v59 }
  0xa6   : > { %v1848_v43 = vpop.permute.xlu0 %1847  ;;  %v1065_v60 = vsel %vm1064_vm7, %v1048_v50, %v1834_v49  ;;  %v1066_v48 = vsel %vm1064_vm7, %v1049_v51, %v1835_v45  ;;  %v1855_v1 = vunpack.i.h.bf16 %v1853_v30  ;;  %v1854_v39 = vunpack.i.l.bf16 %v1853_v30 }
  0xa7   : > { %v1850_v52 = vunpack.i.h.bf16 %v1848_v43  ;;  %v1849_v53 = vunpack.i.l.bf16 %v1848_v43  ;;  %v1068_v14 = vsel %vm1064_vm7, %v1051_v42, %v1845_v61 }
  0xa8   : > { %v1084_v23 = vsel %vm1081_vm8, %v1067_v15, %v1854_v39  ;;  %v1085_v26 = vsel %vm1081_vm8, %v1068_v14, %v1855_v1 }
  0xa9   : > { %v1863_v25 = vpop.permute.xlu1 %1862  ;;  %v1082_v0 = vsel %vm1081_vm8, %v1065_v60, %v1849_v53  ;;  %v1083_v17 = vsel %vm1081_vm8, %v1066_v48, %v1850_v52 }
  0xaa   : > { %v1858_v55 = vpop.permute.xlu0 %1857  ;;  %v1865_v45 = vunpack.i.h.bf16 %v1863_v25  ;;  %v1864_v49 = vunpack.i.l.bf16 %v1863_v25 }
  0xab   : > { %v1860_v32 = vunpack.i.h.bf16 %v1858_v55  ;;  %v1859_v63 = vunpack.i.l.bf16 %v1858_v55 }
  0xac   : > { %v985_v55 = vsel %vm979_vm11, %v2271_v28, %v1865_v45  ;;  %v984_v25 = vsel %vm979_vm11, %v2274_v29, %v1864_v49 }
  0xad   : > { %v1873_v40 = vpop.permute.xlu1 %1872  ;;  %v1099_v5 = vsel %vm1098_vm9, %v1082_v0, %v1859_v63  ;;  %v1100_v9 = vsel %vm1098_vm9, %v1083_v17, %v1860_v32 }
  0xae   : > { %v1868_v12 = vpop.permute.xlu0 %1867  ;;  %v1115_v13 = vpack.c.bf16 %v1100_v9, %v1099_v5  ;;  %v1875_v19 = vunpack.i.h.bf16 %v1873_v40  ;;  %v1874_v44 = vunpack.i.l.bf16 %v1873_v40 }
  0xaf   : > { %v1870_v16 = vunpack.i.h.bf16 %v1868_v12  ;;  %v1869_v22 = vunpack.i.l.bf16 %v1868_v12 }
  0xb0   : > { %1713 = vmatprep.mubr.msk.bf16.mxu0 %vm1143_vm10, %v1115_v13  ;;  %v987_v56 = vsel %vm979_vm11, %v2338_v7, %v1875_v19  ;;  %v986_v24 = vsel %vm979_vm11, %v2341_v8, %v1874_v44 }
  0xb1   : > { %v1102_v21 = vsel %vm1098_vm9, %v1085_v26, %v1870_v16  ;;  %v1101_v27 = vsel %vm1098_vm9, %v1084_v23, %v1869_v22  ;;  %v1883_v10 = vpop.permute.xlu1 %1882 }
  0xb2   : > { %v1116_v33 = vpack.c.bf16 %v1102_v21, %v1101_v27  ;;  %v1878_v6 = vpop.permute.xlu0 %1877  ;;  %v1885_v50 = vunpack.i.h.bf16 %v1883_v10  ;;  %v1884_v51 = vunpack.i.l.bf16 %v1883_v10 }
  0xb3   : > { %v1880_v52 = vunpack.i.h.bf16 %v1878_v6  ;;  %v1879_v53 = vunpack.i.l.bf16 %v1878_v6 }
  0xb4   : > { %1714 = vmatmul.mubr.msk.bf16.vlgmr.msra.gmra.mxu0 %vm1143_vm10, %v1116_v33  ;;  %v1003_v60 = vsel %vm996_vm12, %v986_v24, %v1884_v51  ;;  %v1004_v48 = vsel %vm996_vm12, %v987_v56, %v1885_v50 }
  0xb5   : > { %v1893_v30 = vpop.permute.xlu1 %1892  ;;  %v1002_v32 = vsel %vm996_vm12, %v985_v55, %v1880_v52  ;;  %v1001_v63 = vsel %vm996_vm12, %v984_v25, %v1879_v53 }
  0xb6   : > { %v1888_v31 = vpop.permute.xlu0 %1887  ;;  %v1895_v54 = vunpack.i.h.bf16 %v1893_v30  ;;  %v1894_v58 = vunpack.i.l.bf16 %v1893_v30 }
  0xb7   : > { %v1890_v61 = vunpack.i.h.bf16 %v1888_v31  ;;  %v1889_v59 = vunpack.i.l.bf16 %v1888_v31 }
  0xb8   : > { %v1020_v8 = vsel %vm1013_vm13, %v1003_v60, %v1894_v58  ;;  %v1021_v0 = vsel %vm1013_vm13, %v1004_v48, %v1895_v54 }
  0xb9   : > { %v2692_v35 = vpop.permute.xlu1 %1902  ;;  %v1018_v29 = vsel %vm1013_vm13, %v1001_v63, %v1889_v59  ;;  %v1019_v4 = vsel %vm1013_vm13, %v1002_v32, %v1890_v61 }
  0xba   : > { %v1898_v38 = vpop.permute.xlu0 %1897  ;;  %v1905_v9 = vunpack.i.h.bf16 %v2692_v35  ;;  %v1904_v11 = vunpack.i.l.bf16 %v2692_v35 }
  0xbb   : > { %v1900_v7 = vunpack.i.h.bf16 %v1898_v38  ;;  %v1899_v1 = vunpack.i.l.bf16 %v1898_v38 }
  0xbc   : > { %v1037_v19 = vsel %vm1030_vm5, %v1020_v8, %v1904_v11  ;;  %v1038_v44 = vsel %vm1030_vm5, %v1021_v0, %v1905_v9 }
  0xbd   : > { %v2694_v41 = vpop.permute.xlu1 %1912  ;;  %v1035_v13 = vsel %vm1030_vm5, %v1018_v29, %v1899_v1  ;;  %v1036_v14 = vsel %vm1030_vm5, %v1019_v4, %v1900_v7 }
  0xbe   : > { %v1908_v43 = vpop.permute.xlu0 %1907  ;;  %v1915_v15 = vunpack.i.h.bf16 %v2694_v41  ;;  %v1914_v16 = vunpack.i.l.bf16 %v2694_v41 }
  0xbf   : > { %v1910_v17 = vunpack.i.h.bf16 %v1908_v43  ;;  %v1909_v28 = vunpack.i.l.bf16 %v1908_v43 }
  0xc0   : > { %v1054_v51 = vsel %vm1047_vm6, %v1037_v19, %v1914_v16  ;;  %v1055_v52 = vsel %vm1047_vm6, %v1038_v44, %v1915_v15 }
  0xc1   : > { %v1923_v34 = vpop.permute.xlu1 %1922  ;;  %v1052_v23 = vsel %vm1047_vm6, %v1035_v13, %v1909_v28  ;;  %v1053_v26 = vsel %vm1047_vm6, %v1036_v14, %v1910_v17 }
  0xc2   : > { %v1918_v57 = vpop.permute.xlu0 %1917  ;;  %v1925_v21 = vunpack.i.h.bf16 %v1923_v34  ;;  %v1924_v27 = vunpack.i.l.bf16 %v1923_v34 }
  0xc3   : > { %v1920_v40 = vunpack.i.h.bf16 %v1918_v57  ;;  %v1919_v5 = vunpack.i.l.bf16 %v1918_v57 }
  0xc4   : > { %v1071_v54 = vsel %vm1064_vm7, %v1054_v51, %v1924_v27  ;;  %v1072_v58 = vsel %vm1064_vm7, %v1055_v52, %v1925_v21 }
  0xc5   : > { %v1933_v39 = vpop.permute.xlu1 %1932  ;;  %v1069_v33 = vsel %vm1064_vm7, %v1052_v23, %v1919_v5  ;;  %v1070_v6 = vsel %vm1064_vm7, %v1053_v26, %v1920_v40 }
  0xc6   : > { %v1928_v2 = vpop.permute.xlu0 %1927  ;;  %v1935_v35 = vunpack.i.h.bf16 %v1933_v39  ;;  %v1934_v38 = vunpack.i.l.bf16 %v1933_v39 }
  0xc7   : > { %v1930_v42 = vunpack.i.h.bf16 %v1928_v2  ;;  %v1929_v12 = vunpack.i.l.bf16 %v1928_v2 }
  0xc8   : > { %v1088_v24 = vsel %vm1081_vm8, %v1071_v54, %v1934_v38  ;;  %v1089_v61 = vsel %vm1081_vm8, %v1072_v58, %v1935_v35 }
  0xc9   : > { %v1943_v22 = vpop.permute.xlu1 %1942  ;;  %v1086_v43 = vsel %vm1081_vm8, %v1069_v33, %v1929_v12  ;;  %v1087_v41 = vsel %vm1081_vm8, %v1070_v6, %v1930_v42 }
  0xca   : > { %v1938_v10 = vpop.permute.xlu0 %1937  ;;  %v1945_v28 = vunpack.i.h.bf16 %v1943_v22  ;;  %v1944_v2 = vunpack.i.l.bf16 %v1943_v22 }
  0xcb   : > { %v1940_v30 = vunpack.i.h.bf16 %v1938_v10  ;;  %v1939_v31 = vunpack.i.l.bf16 %v1938_v10 }
  0xcc   : > { %v989_v23 = vsel %vm979_vm11, %v2388_v46, %v1945_v28  ;;  %v988_v22 = vsel %vm979_vm11, %v2391_v47, %v1944_v2 }
  0xcd   : > { %v1103_v45 = vsel %vm1098_vm9, %v1086_v43, %v1939_v31  ;;  %v1104_v49 = vsel %vm1098_vm9, %v1087_v41, %v1940_v30  ;;  %v1953_v50 = vpop.permute.xlu1 %1952 }
  0xce   : > { %v1117_v53 = vpack.c.bf16 %v1104_v49, %v1103_v45  ;;  %v1948_v34 = vpop.permute.xlu0 %1947  ;;  %v1955_v0 = vunpack.i.h.bf16 %v1953_v50  ;;  %v1954_v17 = vunpack.i.l.bf16 %v1953_v50 }
  0xcf   : > { %v1950_v57 = vunpack.i.h.bf16 %v1948_v34  ;;  %v1949_v56 = vunpack.i.l.bf16 %v1948_v34 }
  0xd0   : > { %1717 = vmatprep.mubr.msk.bf16.mxu0 %vm1143_vm10, %v1117_v53  ;;  %v991_v13 = vsel %vm979_vm11, %v2429_v18, %v1955_v0  ;;  %v990_v14 = vsel %vm979_vm11, %v2432_v20, %v1954_v17 }
  0xd1   : > { %v1106_v59 = vsel %vm1098_vm9, %v1089_v61, %v1950_v57  ;;  %v1105_v55 = vsel %vm1098_vm9, %v1088_v24, %v1949_v56  ;;  %v1963_v25 = vpop.permute.xlu1 %1962 }
  0xd2   : > { %v1118_v60 = vpack.c.bf16 %v1106_v59, %v1105_v55  ;;  %v1958_v48 = vpop.permute.xlu0 %1957  ;;  %v1965_v29 = vunpack.i.h.bf16 %v1963_v25  ;;  %v1964_v4 = vunpack.i.l.bf16 %v1963_v25 }
  0xd3   : > { %v1960_v40 = vunpack.i.h.bf16 %v1958_v48  ;;  %v1959_v5 = vunpack.i.l.bf16 %v1958_v48 }
  0xd4   : > { %1718 = vmatmul.mubr.msk.bf16.gmra.mxu0 %vm1143_vm10, %v1118_v60  ;;  %v1007_v26 = vsel %vm996_vm12, %v990_v14, %v1964_v4  ;;  %v1008_v21 = vsel %vm996_vm12, %v991_v13, %v1965_v29 }
  0xd5   : > { %v1973_v32 = vpop.permute.xlu1 %1972  ;;  %v1006_v27 = vsel %vm996_vm12, %v989_v23, %v1960_v40  ;;  %v1005_v10 = vsel %vm996_vm12, %v988_v22, %v1959_v5 }
  0xd6   : > { %v1968_v63 = vpop.permute.xlu0 %1967  ;;  %v1975_v11 = vunpack.i.h.bf16 %v1973_v32  ;;  %v1974_v42 = vunpack.i.l.bf16 %v1973_v32 }
  0xd7   : > { %v1970_v15 = vunpack.i.h.bf16 %v1968_v63  ;;  %v1969_v16 = vunpack.i.l.bf16 %v1968_v63 }
  0xd8   : > { %v1024_v20 = vsel %vm1013_vm13, %v1007_v26, %v1974_v42  ;;  %v1025_v30 = vsel %vm1013_vm13, %v1008_v21, %v1975_v11 }
  0xd9   : > { %v2738_v7 = vpop.permute.xlu1 %1982  ;;  %v1022_v47 = vsel %vm1013_vm13, %v1005_v10, %v1969_v16  ;;  %v1023_v38 = vsel %vm1013_vm13, %v1006_v27, %v1970_v15 }
  0xda   : > { %v1978_v1 = vpop.permute.xlu0 %1977  ;;  %v1985_v19 = vunpack.i.h.bf16 %v2738_v7  ;;  %v1984_v44 = vunpack.i.l.bf16 %v2738_v7 }
  0xdb   : > { %v1980_v18 = vunpack.i.h.bf16 %v1978_v1  ;;  %v1979_v33 = vunpack.i.l.bf16 %v1978_v1 }
  0xdc   : > { %v1041_v7 = vsel %vm1030_vm5, %v1024_v20, %v1984_v44  ;;  %v1042_v1 = vsel %vm1030_vm5, %v1025_v30, %v1985_v19 }
  0xdd   : > { %v2740_v39 = vpop.permute.xlu1 %1992  ;;  %v1039_v50 = vsel %vm1030_vm5, %v1022_v47, %v1979_v33  ;;  %v1040_v51 = vsel %vm1030_vm5, %v1023_v38, %v1980_v18 }
  0xde   : > { %v1988_v8 = vpop.permute.xlu0 %1987  ;;  %v1995_v52 = vunpack.i.h.bf16 %v2740_v39  ;;  %v1994_v53 = vunpack.i.l.bf16 %v2740_v39 }
  0xdf   : > { %v1990_v31 = vunpack.i.h.bf16 %v1988_v8  ;;  %v1989_v46 = vunpack.i.l.bf16 %v1988_v8 }
  0xe0   : > { %v1058_v17 = vsel %vm1047_vm6, %v1041_v7, %v1994_v53  ;;  %v1059_v28 = vsel %vm1047_vm6, %v1042_v1, %v1995_v52 }
  0xe1   : > { %v2003_v9 = vpop.permute.xlu1 %2002  ;;  %v1056_v54 = vsel %vm1047_vm6, %v1039_v50, %v1989_v46  ;;  %v1057_v58 = vsel %vm1047_vm6, %v1040_v51, %v1990_v31 }
  0xe2   : > { %v1998_v12 = vpop.permute.xlu0 %1997  ;;  %v2005_v57 = vunpack.i.h.bf16 %v2003_v9  ;;  %v2004_v56 = vunpack.i.l.bf16 %v2003_v9 }
  0xe3   : > { %v2000_v43 = vunpack.i.h.bf16 %v1998_v12  ;;  %v1999_v41 = vunpack.i.l.bf16 %v1998_v12 }
  0xe4   : > { %v1075_v4 = vsel %vm1064_vm7, %v1058_v17, %v2004_v56  ;;  %v1076_v40 = vsel %vm1064_vm7, %v1059_v28, %v2005_v57 }
  0xe5   : > { %v2013_v6 = vpop.permute.xlu1 %2012  ;;  %v1073_v61 = vsel %vm1064_vm7, %v1056_v54, %v1999_v41  ;;  %v1074_v59 = vsel %vm1064_vm7, %v1057_v58, %v2000_v43 }
  0xe6   : > { %v2008_v35 = vpop.permute.xlu0 %2007  ;;  %v2015_v60 = vunpack.i.h.bf16 %v2013_v6  ;;  %v2014_v48 = vunpack.i.l.bf16 %v2013_v6 }
  0xe7   : > { %v2010_v45 = vunpack.i.h.bf16 %v2008_v35  ;;  %v2009_v49 = vunpack.i.l.bf16 %v2008_v35 }
  0xe8   : > { %v1092_v11 = vsel %vm1081_vm8, %v1075_v4, %v2014_v48  ;;  %v1093_v42 = vsel %vm1081_vm8, %v1076_v40, %v2015_v60 }
  0xe9   : > { %v2023_v34 = vpop.permute.xlu1 %2022  ;;  %v1090_v32 = vsel %vm1081_vm8, %v1073_v61, %v2009_v49  ;;  %v1091_v63 = vsel %vm1081_vm8, %v1074_v59, %v2010_v45 }
  0xea   : > { %v2018_v24 = vpop.permute.xlu0 %2017  ;;  %v2025_v18 = vunpack.i.h.bf16 %v2023_v34  ;;  %v2024_v33 = vunpack.i.l.bf16 %v2023_v34 }
  0xeb   : > { %v2020_v55 = vunpack.i.h.bf16 %v2018_v24  ;;  %v2019_v25 = vunpack.i.l.bf16 %v2018_v24 }
  0xec   : > { %v993_v45 = vsel %vm979_vm11, %v2458_v36, %v2025_v18  ;;  %v992_v49 = vsel %vm979_vm11, %v2461_v37, %v2024_v33 }
  0xed   : > { %v2033_v39 = vpop.permute.xlu1 %2032  ;;  %v1107_v8 = vsel %vm1098_vm9, %v1090_v32, %v2019_v25  ;;  %v1108_v0 = vsel %vm1098_vm9, %v1091_v63, %v2020_v55 }
  0xee   : > { %v2028_v2 = vpop.permute.xlu0 %2027  ;;  %v1119_v29 = vpack.c.bf16 %v1108_v0, %v1107_v8  ;;  %v2035_v27 = vunpack.i.h.bf16 %v2033_v39  ;;  %v2034_v10 = vunpack.i.l.bf16 %v2033_v39 }
  0xef   : > { %v2030_v5 = vunpack.i.h.bf16 %v2028_v2  ;;  %v2029_v9 = vunpack.i.l.bf16 %v2028_v2 }
  0xf0   : > { %1721 = vmatprep.mubr.msk.bf16.mxu1 %vm1143_vm10, %v1119_v29  ;;  %v995_v43 = vsel %vm979_vm11, %v2495_v3, %v2035_v27  ;;  %v994_v41 = vsel %vm979_vm11, %v2487_v62, %v2034_v10 }
  0xf1   : > { %v1110_v12 = vsel %vm1098_vm9, %v1093_v42, %v2030_v5  ;;  %v1109_v13 = vsel %vm1098_vm9, %v1092_v11, %v2029_v9  ;;  %v2043_v14 = vpop.permute.xlu1 %2042 }
  0xf2   : > { %v1120_v15 = vpack.c.bf16 %v1110_v12, %v1109_v13  ;;  %v2038_v16 = vpop.permute.xlu0 %2037  ;;  %v2045_v6 = vunpack.i.h.bf16 %v2043_v14  ;;  %v2044_v20 = vunpack.i.l.bf16 %v2043_v14 }
  0xf3   : > { %v2040_v31 = vunpack.i.h.bf16 %v2038_v16  ;;  %v2039_v46 = vunpack.i.l.bf16 %v2038_v16 }
  0xf4   : > { %1722 = vmatmul.mubr.msk.bf16.vlgmr.msra.gmra.mxu1 %vm1143_vm10, %v1120_v15  ;;  %v1011_v50 = vsel %vm996_vm12, %v994_v41, %v2044_v20  ;;  %v1012_v51 = vsel %vm996_vm12, %v995_v43, %v2045_v6 }
  0xf5   : > { %v2053_v23 = vpop.permute.xlu1 %2052  ;;  %v1010_v53 = vsel %vm996_vm12, %v993_v45, %v2040_v31  ;;  %v1009_v3 = vsel %vm996_vm12, %v992_v49, %v2039_v46 }
  0xf6   : > { %v2048_v22 = vpop.permute.xlu0 %2047  ;;  %v2055_v47 = vunpack.i.h.bf16 %v2053_v23  ;;  %v2054_v38 = vunpack.i.l.bf16 %v2053_v23 }
  0xf7   : > { %v2050_v19 = vunpack.i.h.bf16 %v2048_v22  ;;  %v2049_v44 = vunpack.i.l.bf16 %v2048_v22 }
  0xf8   : > { %v1028_v58 = vsel %vm1013_vm13, %v1011_v50, %v2054_v38  ;;  %v1029_v57 = vsel %vm1013_vm13, %v1012_v51, %v2055_v47 }
  0xf9   : > { %v2063_v26 = vpop.permute.xlu1 %2062  ;;  %v1026_v37 = vsel %vm1013_vm13, %v1009_v3, %v2049_v44  ;;  %v1027_v24 = vsel %vm1013_vm13, %v1010_v53, %v2050_v19 }
  0xfa   : > { %v2058_v21 = vpop.permute.xlu0 %2057  ;;  %v2065_v34 = vunpack.i.h.bf16 %v2063_v26  ;;  %v2064_v54 = vunpack.i.l.bf16 %v2063_v26 }
  0xfb   : > { %v2060_v36 = vunpack.i.h.bf16 %v2058_v21  ;;  %v2059_v56 = vunpack.i.l.bf16 %v2058_v21 }
  0xfc   : > { %v1045_v63 = vsel %vm1030_vm5, %v1028_v58, %v2064_v54  ;;  %v1046_v7 = vsel %vm1030_vm5, %v1029_v57, %v2065_v34 }
  0xfd   : > { %v2073_v30 = vpop.permute.xlu1 %2072  ;;  %v1043_v0 = vsel %vm1030_vm5, %v1026_v37, %v2059_v56  ;;  %v1044_v17 = vsel %vm1030_vm5, %v1027_v24, %v2060_v36 }
  0xfe   : > { %v2068_v35 = vpop.permute.xlu0 %2067  ;;  %v2075_v61 = vunpack.i.h.bf16 %v2073_v30  ;;  %v2074_v59 = vunpack.i.l.bf16 %v2073_v30 }
  0xff   : > { %v2070_v55 = vunpack.i.h.bf16 %v2068_v35  ;;  %v2069_v25 = vunpack.i.l.bf16 %v2068_v35 }
 0x100   : > { %v1062_v29 = vsel %vm1047_vm6, %v1045_v63, %v2074_v59  ;;  %v1063_v4 = vsel %vm1047_vm6, %v1046_v7, %v2075_v61 }
 0x101   : > { %v2083_v52 = vpop.permute.xlu1 %2082  ;;  %v1060_v9 = vsel %vm1047_vm6, %v1043_v0, %v2069_v25  ;;  %v1061_v11 = vsel %vm1047_vm6, %v1044_v17, %v2070_v55 }
 0x102   : > { %v2078_v62 = vpop.permute.xlu0 %2077  ;;  %v2085_v60 = vunpack.i.h.bf16 %v2083_v52  ;;  %v2084_v48 = vunpack.i.l.bf16 %v2083_v52 }
 0x103   : > { %v2080_v1 = vunpack.i.h.bf16 %v2078_v62  ;;  %v2079_v39 = vunpack.i.l.bf16 %v2078_v62 }
 0x104   : > { %v1079_v42 = vsel %vm1064_vm7, %v1062_v29, %v2084_v48  ;;  %v1080_v12 = vsel %vm1064_vm7, %v1063_v4, %v2085_v60 }
 0x105   : > { %v2093_v32 = vpop.permute.xlu1 %2092  ;;  %v1077_v14 = vsel %vm1064_vm7, %v1060_v9, %v2079_v39  ;;  %v1078_v15 = vsel %vm1064_vm7, %v1061_v11, %v2080_v1 }
 0x106   : > { %v2088_v8 = vpop.permute.xlu0 %2087  ;;  %v2095_v28 = vunpack.i.h.bf16 %v2093_v32  ;;  %v2094_v2 = vunpack.i.l.bf16 %v2093_v32 }
 0x107   : > { %v2090_v40 = vunpack.i.h.bf16 %v2088_v8  ;;  %v2089_v5 = vunpack.i.l.bf16 %v2088_v8 }
 0x108   : > { %v1096_v26 = vsel %vm1081_vm8, %v1079_v42, %v2094_v2  ;;  %v1097_v21 = vsel %vm1081_vm8, %v1080_v12, %v2095_v28 }
 0x109   : > { %v2103_v13 = vpop.permute.xlu1 %2102  ;;  %v1094_v18 = vsel %vm1081_vm8, %v1077_v14, %v2089_v5  ;;  %v1095_v33 = vsel %vm1081_vm8, %v1078_v15, %v2090_v40 }
 0x10a   : > { %v2105_v16 = vunpack.i.h.bf16 %v2103_v13  ;;  %v2104_v23 = vunpack.i.l.bf16 %v2103_v13  ;;  %v2098_v22 = vpop.permute.xlu0 %2097 }
 0x10b   : > { %v2100_v27 = vunpack.i.h.bf16 %v2098_v22  ;;  %v2099_v10 = vunpack.i.l.bf16 %v2098_v22 }
 0x10c   : > { %v1113_v6 = vsel %vm1098_vm9, %v1096_v26, %v2104_v23  ;;  %v1114_v20 = vsel %vm1098_vm9, %v1097_v21, %v2105_v16 }
 0x10d   : > { %v1122_v30 = vpack.c.bf16 %v1114_v20, %v1113_v6  ;;  %v1111_v31 = vsel %vm1098_vm9, %v1094_v18, %v2099_v10  ;;  %v1112_v46 = vsel %vm1098_vm9, %v1095_v33, %v2100_v27 }
 0x10e   : > { %v1121_v35 = vpack.c.bf16 %v1112_v46, %v1111_v31 }
 0x110   : > { %1725 = vmatprep.mubr.msk.bf16.mxu1 %vm1143_vm10, %v1121_v35 }
 0x111   : > { %1726 = vmatmul.mubr.msk.bf16.gmra.mxu1 %vm1143_vm10, %v1122_v30 }
 0x174   : > { %v1715_v47 = vpop.f32.mrf.mxu0 }
 0x175   : > { %v1682_v38 = vpack.c.bf16 %v1715_v47, %v1715_v47  ;;  %v1310_v49 = vmul.f32 %v1715_v47, %v1715_v47  ;;  %v1272_v54 = vsel %vm996_vm12, %v1715_v47, 0.0 }
 0x176   : > { %v1206_v43 = vpop.f32.mrf.mxu0 }
 0x177   : > { %1429 = vst.msk [vmem:[%s2828_s12 + $0x8] sm:$0xf] %vm1426_vm14, %v1682_v38  ;;  %v1680_v41 = vpack.c.bf16 %v1206_v43, %v1206_v43  ;;  %v1308_v44 = vmul.f32 %v1206_v43, %v1206_v43  ;;  %v1269_v51 = vsel %vm996_vm12, %v1206_v43, 0.0  ;;  %v1327_v37 = vsel %vm996_vm12, %v1310_v49, 0.0 }
 0x178   : > { %v1716_v19 = vpop.f32.mrf.mxu0 }
 0x179   : > { %1427 = vst.msk [vmem:[%s2828_s12] sm:$0xf] %vm1426_vm14, %v1680_v41  ;;  %v1683_v45 = vpack.c.bf16 %v1716_v19, %v1716_v19  ;;  %v1324_v62 = vsel %vm996_vm12, %v1308_v44, 0.0  ;;  %v1311_v58 = vmul.f32 %v1716_v19, %v1716_v19  ;;  %v1274_v24 = vsel %vm996_vm12, %v1716_v19, 0.0 }
 0x17a   : > { %v1209_v50 = vpop.f32.mrf.mxu0 }
 0x17b   : > { %1430 = vst.msk [vmem:[%s2828_s12 + $0xc] sm:$0xf] %vm1426_vm14, %v1683_v45  ;;  %v1270_v52 = vsel %vm996_vm12, %v1209_v50, 0.0  ;;  %v1309_v53 = vmul.f32 %v1209_v50, %v1209_v50  ;;  %v1681_v3 = vpack.c.bf16 %v1209_v50, %v1209_v50  ;;  %v1329_v55 = vsel %vm996_vm12, %v1311_v58, 0.0 }
 0x17c   : > { %v1271_v34 = vadd.f32 %v1270_v52, %v1269_v51 }
 0x17d   : > { %v1325_v57 = vsel %vm996_vm12, %v1309_v53, 0.0  ;;  %1428 = vst.msk [vmem:[%s2828_s12 + $0x4] sm:$0xf] %vm1426_vm14, %v1681_v3 }
 0x17e   : > { %v1273_v36 = vadd.f32 %v1272_v54, %v1271_v34  ;;  %v1326_v56 = vadd.f32 %v1325_v57, %v1324_v62 }
 0x180   : > { %v1328_v61 = vadd.f32 %v1327_v37, %v1326_v56  ;;  %v1275_v59 = vadd.f32 %v1274_v24, %v1273_v36 }
 0x182   : > { %v1330_v25 = vadd.f32 %v1329_v55, %v1328_v61 }
 0x194   : > { %v1719_v60 = vpop.f32.mrf.mxu0 }
 0x195   : > { %v1686_v48 = vpack.c.bf16 %v1719_v60, %v1719_v60  ;;  %v1314_v22 = vmul.f32 %v1719_v60, %v1719_v60  ;;  %v1280_v21 = vsel %vm996_vm12, %v1719_v60, 0.0 }
 0x196   : > { %v1222_v32 = vpop.f32.mrf.mxu0 }
 0x197   : > { %1433 = vst.msk [vmem:[%s2828_s12 + $0x18] sm:$0xf] %vm1426_vm14, %v1686_v48  ;;  %v1684_v63 = vpack.c.bf16 %v1222_v32, %v1222_v32  ;;  %v1312_v40 = vmul.f32 %v1222_v32, %v1222_v32  ;;  %v1276_v11 = vsel %vm996_vm12, %v1222_v32, 0.0  ;;  %v1335_v10 = vsel %vm996_vm12, %v1314_v22, 0.0 }
 0x198   : > { %v1720_v7 = vpop.f32.mrf.mxu0  ;;  %v1277_v14 = vadd.f32 %v1276_v11, %v1275_v59 }
 0x199   : > { %1431 = vst.msk [vmem:[%s2828_s12 + $0x10] sm:$0xf] %vm1426_vm14, %v1684_v63  ;;  %v1687_v1 = vpack.c.bf16 %v1720_v7, %v1720_v7  ;;  %v1331_v12 = vsel %vm996_vm12, %v1312_v40, 0.0  ;;  %v1315_v18 = vmul.f32 %v1720_v7, %v1720_v7  ;;  %v1282_v20 = vsel %vm996_vm12, %v1720_v7, 0.0 }
 0x19a   : > { %v1225_v39 = vpop.f32.mrf.mxu0  ;;  %v1332_v16 = vadd.f32 %v1331_v12, %v1330_v25 }
 0x19b   : > { %1434 = vst.msk [vmem:[%s2828_s12 + $0x1c] sm:$0xf] %vm1426_vm14, %v1687_v1  ;;  %v1685_v8 = vpack.c.bf16 %v1225_v39, %v1225_v39  ;;  %v1313_v42 = vmul.f32 %v1225_v39, %v1225_v39  ;;  %v1278_v13 = vsel %vm996_vm12, %v1225_v39, 0.0  ;;  %v1337_v35 = vsel %vm996_vm12, %v1315_v18, 0.0 }
 0x19c   : > { %v1279_v23 = vadd.f32 %v1278_v13, %v1277_v14 }
 0x19d   : > { %1432 = vst.msk [vmem:[%s2828_s12 + $0x14] sm:$0xf] %vm1426_vm14, %v1685_v8  ;;  %v1333_v15 = vsel %vm996_vm12, %v1313_v42, 0.0 }
 0x19e   : > { %v1334_v26 = vadd.f32 %v1333_v15, %v1332_v16  ;;  %v1281_v27 = vadd.f32 %v1280_v21, %v1279_v23 }
 0x1a0   : > { %v1336_v6 = vadd.f32 %v1335_v10, %v1334_v26  ;;  %v1283_v46 = vadd.f32 %v1282_v20, %v1281_v27 }
 0x1a2   : > { %v1338_v41 = vadd.f32 %v1337_v35, %v1336_v6 }
 0x1b4   : > { %v1723_v0 = vpop.f32.mrf.mxu1 }
 0x1b5   : > { %v1690_v17 = vpack.c.bf16 %v1723_v0, %v1723_v0  ;;  %v1318_v49 = vmul.f32 %v1723_v0, %v1723_v0  ;;  %v1288_v51 = vsel %vm996_vm12, %v1723_v0, 0.0 }
 0x1b6   : > { %v1238_v28 = vpop.f32.mrf.mxu1 }
 0x1b7   : > { %1437 = vst.msk [vmem:[%s2828_s12 + $0x28] sm:$0xf] %vm1426_vm14, %v1690_v17  ;;  %v1688_v2 = vpack.c.bf16 %v1238_v28, %v1238_v28  ;;  %v1316_v33 = vmul.f32 %v1238_v28, %v1238_v28  ;;  %v1284_v30 = vsel %vm996_vm12, %v1238_v28, 0.0  ;;  %v1343_v3 = vsel %vm996_vm12, %v1318_v49, 0.0 }
 0x1b8   : > { %v1724_v29 = vpop.f32.mrf.mxu1  ;;  %v1285_v43 = vadd.f32 %v1284_v30, %v1283_v46 }
 0x1b9   : > { %1435 = vst.msk [vmem:[%s2828_s12 + $0x20] sm:$0xf] %vm1426_vm14, %v1688_v2  ;;  %v1691_v4 = vpack.c.bf16 %v1724_v29, %v1724_v29  ;;  %v1339_v47 = vsel %vm996_vm12, %v1316_v33, 0.0  ;;  %v1319_v34 = vmul.f32 %v1724_v29, %v1724_v29  ;;  %v1290_v57 = vsel %vm996_vm12, %v1724_v29, 0.0 }
 0x1ba   : > { %v1241_v5 = vpop.f32.mrf.mxu1  ;;  %v1340_v44 = vadd.f32 %v1339_v47, %v1338_v41 }
 0x1bb   : > { %1438 = vst.msk [vmem:[%s2828_s12 + $0x2c] sm:$0xf] %vm1426_vm14, %v1691_v4  ;;  %v1689_v9 = vpack.c.bf16 %v1241_v5, %v1241_v5  ;;  %v1317_v31 = vmul.f32 %v1241_v5, %v1241_v5  ;;  %v1286_v38 = vsel %vm996_vm12, %v1241_v5, 0.0  ;;  %v1345_v59 = vsel %vm996_vm12, %v1319_v34, 0.0 }
 0x1bc   : > { %v1287_v45 = vadd.f32 %v1286_v38, %v1285_v43 }
 0x1bd   : > { %1436 = vst.msk [vmem:[%s2828_s12 + $0x24] sm:$0xf] %vm1426_vm14, %v1689_v9  ;;  %v1341_v19 = vsel %vm996_vm12, %v1317_v31, 0.0 }
 0x1be   : > { %v1342_v50 = vadd.f32 %v1341_v19, %v1340_v44  ;;  %v1289_v52 = vadd.f32 %v1288_v51, %v1287_v45 }
 0x1c0   : > { %v1344_v62 = vadd.f32 %v1343_v3, %v1342_v50  ;;  %v1291_v24 = vadd.f32 %v1290_v57, %v1289_v52 }
 0x1c2   : > { %v1346_v48 = vadd.f32 %v1345_v59, %v1344_v62 }
 0x1d1   : > { %v1727_v53 = vpop.f32.mrf.mxu1 }
 0x1d2   : > { %v1694_v54 = vpack.c.bf16 %v1727_v53, %v1727_v53  ;;  %v1322_v63 = vmul.f32 %v1727_v53, %v1727_v53  ;;  %v1296_v17 = vsel %vm996_vm12, %v1727_v53, 0.0 }
 0x1d3   : > { %v1254_v58 = vpop.f32.mrf.mxu1 }
 0x1d4   : > { %1441 = vst.msk [vmem:[%s2828_s12 + $0x38] sm:$0xf] %vm1426_vm14, %v1694_v54  ;;  %v1292_v36 = vsel %vm996_vm12, %v1254_v58, 0.0  ;;  %v1320_v56 = vmul.f32 %v1254_v58, %v1254_v58  ;;  %v1692_v37 = vpack.c.bf16 %v1254_v58, %v1254_v58  ;;  %v1351_v40 = vsel %vm996_vm12, %v1322_v63, 0.0 }
 0x1d5   : > { %v1728_v61 = vpop.f32.mrf.mxu1  ;;  %v1293_v60 = vadd.f32 %v1292_v36, %v1291_v24 }
 0x1d6   : > { %v1347_v55 = vsel %vm996_vm12, %v1320_v56, 0.0  ;;  %1439 = vst.msk [vmem:[%s2828_s12 + $0x30] sm:$0xf] %vm1426_vm14, %v1692_v37  ;;  %v1695_v25 = vpack.c.bf16 %v1728_v61, %v1728_v61  ;;  %v1323_v28 = vmul.f32 %v1728_v61, %v1728_v61  ;;  %v1298_v5 = vsel %vm996_vm12, %v1728_v61, 0.0 }
 0x1d7   : > { %v1257_v32 = vpop.f32.mrf.mxu1  ;;  %v1348_v8 = vadd.f32 %v1347_v55, %v1346_v48 }
 0x1d8   : > { %1442 = vst.msk [vmem:[%s2828_s12 + $0x3c] sm:$0xf] %vm1426_vm14, %v1695_v25  ;;  %v1294_v7 = vsel %vm996_vm12, %v1257_v32, 0.0  ;;  %v1321_v1 = vmul.f32 %v1257_v32, %v1257_v32  ;;  %v1693_v39 = vpack.c.bf16 %v1257_v32, %v1257_v32  ;;  %v1353_v42 = vsel %vm996_vm12, %v1323_v28, 0.0 }
 0x1d9   : > { %v1295_v0 = vadd.f32 %v1294_v7, %v1293_v60 }
 0x1da   : > { %v1349_v2 = vsel %vm996_vm12, %v1321_v1, 0.0  ;;  %1440 = vst.msk [vmem:[%s2828_s12 + $0x34] sm:$0xf] %vm1426_vm14, %v1693_v39 }
 0x1db   : > { %v1297_v29 = vadd.f32 %v1296_v17, %v1295_v0  ;;  %v1350_v4 = vadd.f32 %v1349_v2, %v1348_v8 }
 0x1dd   : > { %v1299_v9 = vadd.f32 %v1298_v5, %v1297_v29  ;;  %v1352_v11 = vadd.f32 %v1351_v40, %v1350_v4 }
 0x1df   : > { %v1300_v12 = vrot.slane %v1299_v9, 4  ;;  %v1354_v13 = vadd.f32 %v1353_v42, %v1352_v11 }
 0x1e1   : > { %v1301_v14 = vadd.f32 %v1300_v12, %v1299_v9  ;;  %v1355_v15 = vrot.slane %v1354_v13, 4 }
 0x1e3   : > { %v1302_v16 = vrot.slane %v1301_v14, 2  ;;  %v1356_v23 = vadd.f32 %v1355_v15, %v1354_v13 }
 0x1e5   : > { %v1303_v22 = vadd.f32 %v1302_v16, %v1301_v14  ;;  %v1357_v26 = vrot.slane %v1356_v23, 2 }
 0x1e7   : > { %v1304_v21 = vrot.slane %v1303_v22, 1  ;;  %v1358_v27 = vadd.f32 %v1357_v26, %v1356_v23 }
 0x1e9   : > { %v1305_v10 = vadd.f32 %v1304_v21, %v1303_v22  ;;  %v1359_v18 = vrot.slane %v1358_v27, 1 }
 0x1eb   : > { %1307 = vst.msk [vmem:[%s252_s24] sm:$0x1] %vm1306_vm15, %v1305_v10  ;;  %v1360_v33 = vadd.f32 %v1359_v18, %v1358_v27 }
 0x1ed   : > { %1361 = vst.msk [vmem:[%s259_s27] sm:$0x1] %vm1306_vm15, %v1360_v33 }
 0x1ee PF: > { %s15_s19 = sadd.s32 1, %s2147_s19   ;;  %s2926_s15 = smov %s2139_s17 }
 0x1ef   : > { %p12_p10 = scmp.ge.s32.totalorder %s15_s19, 6   ;;  %s2927_s16 = smov %s2143_s18 }
 0x1f0   : > { %s2928_s17 = smov %s2931_s20  ;;  %s2929_s18 = smov %s2935_s21 }
 0x1f1   :  { %14 = sbr.rel (!%p12_p10) target bundleno = 3 (0x3), region = 85 }

// kernel: double_conv_forward.5
= control target key start
LH: loop header
LB: loop body
LE: loop exit
PB: predicated region body
PF: predicated region fallthrough
CT: control target
= control target key end

     0   :  { %s581_s12 = smov 0   ;;  %s583_s13 = smov 0   ;;  %s722_s0 = inlined_call_operand.vmem [shape: f32[1,8], index: 0, kind: input, shape index: {}]   ;;  %s723_s1 = inlined_call_operand.vmem [shape: f32[1,8], index: 1, kind: input, shape index: {}]   ;;  %s724_s2 = inlined_call_operand.vmem [shape: bf16[2,16,16,8], index: 2, kind: input, shape index: {}]   ;;  %s725_s3 = inlined_call_operand.vmem [shape: f32[2,16,16,8], index: 3, kind: output, shape index: {}]  }
   0x1   :  { %s585_s14 = smov 0   ;;  %s587_s15 = smov 0  }
   0x2   :  { %s589_s16 = smov 0  }
   0x3 LB: > { %s22_s17 = sadd.s32 1, %s551_s14  ;;  %s25_s18 = sadd.s32 1, %s555_s15  ;;  %s559_s16 = sphi %s589_s16, %s13_s16   ;;  %s555_s15 = sphi %s587_s15, %s729_s15   ;;  %s551_s14 = sphi %s585_s14, %s728_s14   ;;  %s547_s13 = sphi %s583_s13, %s727_s13   ;;  %s543_s12 = sphi %s581_s12, %s726_s12  }
   0x4   : > { %p23_p0 = scmp.ge.s32.totalorder %s22_s17, 2  ;;  %p429_p1 = scmp.ge.s32.totalorder %s559_s16, 1 }
   0x5   : > { %p159_p2 = scmp.lt.s32.totalorder %s559_s16, 5 }
   0x6   : > { %s731_s17 = smov (%p23_p0, %s22_s17), 0  ;;  %s733_s18 = smov (!%p23_p0, %s25_s18), %s555_s15 }
   0x7   : > { %p160_p3 = pnand %p429_p1, %p159_p2  ;;  %p27_p4 = scmp.ge.s32.totalorder %s733_s18, 2 }
   0x8   : > { %s430_s19 = sshll.u32 (!%p160_p3), %s543_s12, 3  ;;  %p194_p5 = scmp.lt.s32.totalorder (!%p160_p3), %s547_s13, 1 }
   0x9   : > { %s735_s18 = smov (%p27_p4, %s733_s18), 0  ;;  %163 = sbr.rel (%p160_p3) target bundleno = 40 (0x28), region = 32 }
   0xa   : > { %p196_p6 = scmp.lt.s32.totalorder (!%p160_p3), %s430_s19, 15 }
   0xe   : > { %s737_s13 = smov (!%p194_p5, %s547_s13), 1  ;;  %s739_s19 = smov (!%p196_p6, %s430_s19), 15  ;;  %v622_v0 = vld [vmem:[%s722_s0] ss:$0 sm:$0xff]  ;;  %vm309_vm0 = vcmask 64512  }
   0xf   : > { %s432_s20 = sshll.u32 %s737_s13, 5  ;;  %s431_s21 = sshll.u32 %s739_s19, 1  ;;  %v631_v9 = vld [vmem:[%s723_s1] ss:$0 sm:$0xff] }
  0x10   : > { %s611_s22 = sadd.s32 %s432_s20, %s431_s21 }
  0x11   : > { %s433_s23 = sshll.u32 %s611_s22, 2  ;;  %s437_s4 = sshll.u32 %s611_s22, 3 }
  0x12   : > { %s617_s26 = scalar_lea.vmem %s724_s2, %s433_s23  ;;  %s649_s7 = scalar_lea.vmem %s725_s3, %s437_s4 }
  0x13   : > { %v443_v1 = vld [vmem:[%s617_s26] sm:$0xff]   ;;  %v474_v2 = vld [vmem:[%s617_s26 + $0x8] sm:$0xff]   ;;  %v475_v3 = vld [vmem:[%s617_s26 + $0x10] sm:$0xff]  }
  0x14   : > { %v444_v4 = vunpack.c.l.bf16 %v443_v1  ;;  %v445_v5 = vunpack.c.h.bf16 %v443_v1  ;;  %v448_v6 = vunpack.c.l.bf16 %v474_v2  ;;  %v449_v7 = vunpack.c.h.bf16 %v474_v2  ;;  %v476_v8 = vld [vmem:[%s617_s26 + $0x18] sm:$0xff]   ;;  %v477_v30 = vld [vmem:[%s617_s26 + $0x20] sm:$0xff]   ;;  %v478_v31 = vld [vmem:[%s617_s26 + $0x28] sm:$0xff]  }
  0x15   : > { %v452_v10 = vunpack.c.l.bf16 %v475_v3  ;;  %v453_v11 = vunpack.c.h.bf16 %v475_v3  ;;  %v456_v12 = vunpack.c.l.bf16 %v476_v8  ;;  %v457_v13 = vunpack.c.h.bf16 %v476_v8  ;;  %v479_v36 = vld [vmem:[%s617_s26 + $0x30] sm:$0xff]   ;;  %v480_v37 = vld [vmem:[%s617_s26 + $0x38] sm:$0xff]  }
  0x16   : > { %v254_v14 = vmul.f32 %v444_v4, %v622_v0  ;;  %v255_v15 = vmul.f32 %v445_v5, %v622_v0  ;;  %v256_v16 = vmul.f32 %v448_v6, %v622_v0  ;;  %v257_v17 = vmul.f32 %v449_v7, %v622_v0 }
  0x17   : > { %v258_v18 = vmul.f32 %v452_v10, %v622_v0  ;;  %v259_v19 = vmul.f32 %v453_v11, %v622_v0  ;;  %v260_v20 = vmul.f32 %v456_v12, %v622_v0  ;;  %v261_v21 = vmul.f32 %v457_v13, %v622_v0 }
  0x18   : > { %v277_v22 = vadd.f32 %v631_v9, %v254_v14  ;;  %v278_v23 = vadd.f32 %v631_v9, %v255_v15  ;;  %v279_v24 = vadd.f32 %v631_v9, %v256_v16  ;;  %v280_v25 = vadd.f32 %v631_v9, %v257_v17 }
  0x19   : > { %v281_v26 = vadd.f32 %v631_v9, %v258_v18  ;;  %v282_v27 = vadd.f32 %v631_v9, %v259_v19  ;;  %v283_v28 = vadd.f32 %v631_v9, %v260_v20  ;;  %v284_v29 = vadd.f32 %v631_v9, %v261_v21 }
  0x1a   : > { %v293_v32 = vmax.f32 %v277_v22, 0.0  ;;  %v294_v33 = vmax.f32 %v278_v23, 0.0  ;;  %v295_v34 = vmax.f32 %v279_v24, 0.0  ;;  %v296_v35 = vmax.f32 %v280_v25, 0.0 }
  0x1b   : > { %v297_v38 = vmax.f32 %v281_v26, 0.0  ;;  %v298_v39 = vmax.f32 %v282_v27, 0.0  ;;  %v299_v40 = vmax.f32 %v283_v28, 0.0  ;;  %v300_v41 = vmax.f32 %v284_v29, 0.0 }
  0x1c   : > { %310 = vst.msk [vmem:[%s649_s7] sm:$0xff] %vm309_vm0, %v293_v32  ;;  %311 = vst.msk [vmem:[%s649_s7 + $0x8] sm:$0xff] %vm309_vm0, %v294_v33  ;;  %v460_v42 = vunpack.c.l.bf16 %v477_v30  ;;  %v461_v43 = vunpack.c.h.bf16 %v477_v30  ;;  %v464_v44 = vunpack.c.l.bf16 %v478_v31  ;;  %v465_v45 = vunpack.c.h.bf16 %v478_v31 }
  0x1d   : > { %312 = vst.msk [vmem:[%s649_s7 + $0x10] sm:$0xff] %vm309_vm0, %v295_v34  ;;  %313 = vst.msk [vmem:[%s649_s7 + $0x18] sm:$0xff] %vm309_vm0, %v296_v35  ;;  %v468_v46 = vunpack.c.l.bf16 %v479_v36  ;;  %v469_v47 = vunpack.c.h.bf16 %v479_v36  ;;  %v472_v48 = vunpack.c.l.bf16 %v480_v37  ;;  %v473_v49 = vunpack.c.h.bf16 %v480_v37 }
  0x1e   : > { %314 = vst.msk [vmem:[%s649_s7 + $0x20] sm:$0xff] %vm309_vm0, %v297_v38  ;;  %315 = vst.msk [vmem:[%s649_s7 + $0x28] sm:$0xff] %vm309_vm0, %v298_v39  ;;  %v262_v50 = vmul.f32 %v460_v42, %v622_v0  ;;  %v263_v51 = vmul.f32 %v461_v43, %v622_v0  ;;  %v264_v52 = vmul.f32 %v464_v44, %v622_v0 }
  0x1f   : > { %316 = vst.msk [vmem:[%s649_s7 + $0x30] sm:$0xff] %vm309_vm0, %v299_v40  ;;  %317 = vst.msk [vmem:[%s649_s7 + $0x38] sm:$0xff] %vm309_vm0, %v300_v41  ;;  %v265_v53 = vmul.f32 %v465_v45, %v622_v0  ;;  %v266_v54 = vmul.f32 %v468_v46, %v622_v0  ;;  %v267_v55 = vmul.f32 %v469_v47, %v622_v0 }
  0x20   : > { %v268_v56 = vmul.f32 %v472_v48, %v622_v0  ;;  %v269_v57 = vmul.f32 %v473_v49, %v622_v0  ;;  %v285_v58 = vadd.f32 %v631_v9, %v262_v50  ;;  %v286_v59 = vadd.f32 %v631_v9, %v263_v51 }
  0x21   : > { %v287_v60 = vadd.f32 %v631_v9, %v264_v52  ;;  %v288_v61 = vadd.f32 %v631_v9, %v265_v53  ;;  %v289_v62 = vadd.f32 %v631_v9, %v266_v54  ;;  %v290_v63 = vadd.f32 %v631_v9, %v267_v55 }
  0x22   : > { %v291_v0 = vadd.f32 %v631_v9, %v268_v56  ;;  %v292_v1 = vadd.f32 %v631_v9, %v269_v57  ;;  %v301_v2 = vmax.f32 %v285_v58, 0.0  ;;  %v302_v3 = vmax.f32 %v286_v59, 0.0 }
  0x23   : > { %v303_v4 = vmax.f32 %v287_v60, 0.0  ;;  %v304_v5 = vmax.f32 %v288_v61, 0.0  ;;  %v305_v6 = vmax.f32 %v289_v62, 0.0  ;;  %v306_v7 = vmax.f32 %v290_v63, 0.0 }
  0x24   : > { %v307_v8 = vmax.f32 %v291_v0, 0.0  ;;  %v308_v10 = vmax.f32 %v292_v1, 0.0  ;;  %318 = vst.msk [vmem:[%s649_s7 + $0x40] sm:$0xff] %vm309_vm0, %v301_v2  ;;  %319 = vst.msk [vmem:[%s649_s7 + $0x48] sm:$0xff] %vm309_vm0, %v302_v3 }
  0x25   : > { %320 = vst.msk [vmem:[%s649_s7 + $0x50] sm:$0xff] %vm309_vm0, %v303_v4  ;;  %321 = vst.msk [vmem:[%s649_s7 + $0x58] sm:$0xff] %vm309_vm0, %v304_v5 }
  0x26   : > { %322 = vst.msk [vmem:[%s649_s7 + $0x60] sm:$0xff] %vm309_vm0, %v305_v6  ;;  %323 = vst.msk [vmem:[%s649_s7 + $0x68] sm:$0xff] %vm309_vm0, %v306_v7 }
  0x27   : > { %324 = vst.msk [vmem:[%s649_s7 + $0x70] sm:$0xff] %vm309_vm0, %v307_v8  ;;  %325 = vst.msk [vmem:[%s649_s7 + $0x78] sm:$0xff] %vm309_vm0, %v308_v10 }
  0x28 PF: > { %s13_s16 = sadd.s32 1, %s559_s16   ;;  %s726_s12 = smov %s551_s14 }
  0x29   : > { %p10_p7 = scmp.ge.s32.totalorder %s13_s16, 6   ;;  %s727_s13 = smov %s555_s15 }
  0x2a   : > { %s728_s14 = smov %s731_s17  ;;  %s729_s15 = smov %s735_s18 }
  0x2b   :  { %12 = sbr.rel (!%p10_p7) target bundleno = 3 (0x3), region = 62 }

// kernel: double_conv_forward.4
= control target key start
LH: loop header
LB: loop body
LE: loop exit
PB: predicated region body
PF: predicated region fallthrough
CT: control target
= control target key end

     0   :  { %s2429_s21 = smov 0   ;;  %s2431_s22 = smov 0   ;;  %s3141_s0 = inlined_call_operand.vmem [shape: f32[1,8], index: 0, kind: input, shape index: {}]   ;;  %s3142_s1 = inlined_call_operand.vmem [shape: f32[1,8], index: 1, kind: input, shape index: {}]   ;;  %s3143_s2 = inlined_call_operand.vmem [shape: bf16[2,16,16,8], index: 2, kind: input, shape index: {}]   ;;  %s3144_s3 = inlined_call_operand.vmem [shape: bf16[72,8], index: 3, kind: input, shape index: {}]   ;;  %s3145_s4 = inlined_call_operand.vmem [shape: bf16[2,16,16,8], index: 4, kind: output, shape index: {0}]   ;;  %s3146_s5 = inlined_call_operand.vmem [shape: f32[2,2,1,8], index: 5, kind: output, shape index: {1}]   ;;  %s3147_s6 = inlined_call_operand.vmem [shape: f32[2,2,1,8], index: 6, kind: output, shape index: {2}]  }
   0x1   :  { %s2433_s23 = smov 0   ;;  %s2435_s24 = smov 0  }
   0x2   :  { %s2437_s25 = smov 0  }
   0x3 LB: > { %s26_s26 = sadd.s32 1, %s2375_s23  ;;  %s29_s27 = sadd.s32 1, %s2379_s24  ;;  %s2383_s25 = sphi %s2437_s25, %s17_s25   ;;  %s2379_s24 = sphi %s2435_s24, %s3152_s24   ;;  %s2375_s23 = sphi %s2433_s23, %s3151_s23   ;;  %s2371_s22 = sphi %s2431_s22, %s3150_s22   ;;  %s2367_s21 = sphi %s2429_s21, %s3149_s21  }
   0x4   : > { %p27_p0 = scmp.ge.s32.totalorder %s26_s26, 2  ;;  %p1792_p1 = scmp.ge.s32.totalorder %s2383_s25, 1 }
   0x5   : > { %p235_p2 = scmp.lt.s32.totalorder %s2383_s25, 5 }
   0x6   : > { %s3154_s26 = smov (%p27_p0, %s26_s26), 0  ;;  %s3156_s27 = smov (!%p27_p0, %s29_s27), %s2379_s24 }
   0x7   : > { %p236_p3 = pnand %p1792_p1, %p235_p2  ;;  %p31_p4 = scmp.ge.s32.totalorder %s3156_s27, 2 }
   0x8   : > { %p284_p5 = scmp.lt.s32.totalorder (!%p236_p3), %s2371_s22, 1  ;;  %s2462_s28 = sshll.u32 (!%p236_p3), %s2367_s21, 3 }
   0x9   : > { %s3158_s27 = smov (%p31_p4, %s3156_s27), 0  ;;  %239 = sbr.rel (%p236_p3) target bundleno = 500 (0x1f4), region = 36 }
   0xa   : > { %s2465_s29 = sadd.s32 (!%p236_p3), 4294967295, %s2462_s28  ;;  %s1855_s10 = sshll.u32 (!%p236_p3), %s2367_s21, 6 }
   0xb   : > { %p319_p6 = scmp.gt.s32.totalorder (!%p236_p3), %s2465_s29, 0  ;;  %s345_s16 = sadd.s32 (!%p236_p3), 8, %s2462_s28 }
   0xc   : > { %p2520_p7 = scmp.lt.s32.totalorder (!%p236_p3), %s345_s16, 15  ;;  %s2387_s7 = smov (!%p236_p3), 48  }
   0xd   : > { %s2388_s8 = smov (!%p236_p3), 16   ;;  %s2391_s11 = smov (!%p236_p3), 40  }
   0xe   : > { %s3160_s22 = smov (!%p284_p5, %s2371_s22), 1  ;;  %v2470_v0 = vstv %s2465_s29  ;;  %v2485_v4 = vld [vmem:[%s3141_s0] ss:$0 sm:$0xff]  ;;  %v2385_v13 = vmov 0.0   ;;  %s3162_s29 = smov (!%p319_p6, %s2465_s29), 0  ;;  %vm545_vm9 = vcmask 1040384  }
   0xf   : > { %v447_v1 = vadd.s32 2, %v2470_v0  ;;  %v446_v2 = vadd.s32 1, %v2470_v0  ;;  %s1852_s30 = sshll.u32 %s3160_s22, 7  ;;  %v448_v3 = vadd.s32 3, %v2470_v0  ;;  %v2496_v12 = vld [vmem:[%s3142_s1] ss:$0 sm:$0xff] }
  0x10   : > { %s2479_s9 = scalar_lea.vmem %s3143_s2, %s1852_s30  ;;  %s1853_s18 = sshll.u32 %s3162_s29, 3  ;;  %vm729_vm10 = vcmask 1045504   ;;  %vm640_vm11 = vcmask 1046528   ;;  %vm455_vm12 = vcmp.ge.s32.totalorder %v2470_v0, 0  ;;  %vm465_vm13 = vcmp.lt.s32.totalorder %v2470_v0, 16 }
  0x11   : > { %vm457_vm0 = vcmp.ge.s32.totalorder %v447_v1, 0  ;;  %vm467_vm1 = vcmp.lt.s32.totalorder %v447_v1, 16  ;;  %vm456_vm2 = vcmp.ge.s32.totalorder %v446_v2, 0  ;;  %vm466_vm3 = vcmp.lt.s32.totalorder %v446_v2, 16  ;;  %s2488_s13 = scalar_lea.vmem %s2479_s9, %s1855_s10  ;;  %s3164_s16 = smov (!%p2520_p7, %s345_s16), 15  ;;  %vm475_vm14 = vmand %vm455_vm12, %vm465_vm13 }
  0x12   : > { %vm477_vm4 = vmand %vm457_vm0, %vm467_vm1  ;;  %v1913_v5 = vld [vmem:[%s2488_s13 + $0x8] sm:$0xff]   ;;  %v1878_v6 = vld [vmem:[%s2488_s13] sm:$0xff]   ;;  %vm458_vm5 = vcmp.ge.s32.totalorder %v448_v3, 0  ;;  %vm468_vm6 = vcmp.lt.s32.totalorder %v448_v3, 16  ;;  %s1856_s19 = sshll.u32 %s3164_s16, 3  ;;  %s323_s20 = scalar_lea.vmem %s2479_s9, %s1853_s18  ;;  %vm1335_vm13 = vcmask 1043456  }
  0x13   : > { %v1914_v7 = vld [vmem:[%s2488_s13 + $0x10] sm:$0xff]   ;;  %v1883_v8 = vunpack.c.l.bf16 %v1913_v5  ;;  %v1884_v9 = vunpack.c.h.bf16 %v1913_v5  ;;  %v1879_v10 = vunpack.c.l.bf16 %v1878_v6  ;;  %v1880_v11 = vunpack.c.h.bf16 %v1878_v6  ;;  %vm476_vm7 = vmand %vm456_vm2, %vm466_vm3  ;;  %v2526_v41 = vld [vmem:[%s2488_s13 + $0x18] sm:$0xff]   ;;  %s2547_s29 = scalar_lea.vmem %s2479_s9, %s1856_s19  ;;  %s2386_s30 = smov 24  }
  0x14   : > { %v1813_v14 = vsel %vm477_vm4, 1.0, %v2385_v13  ;;  %v1887_v15 = vunpack.c.l.bf16 %v1914_v7  ;;  %v1888_v16 = vunpack.c.h.bf16 %v1914_v7  ;;  %vm478_vm8 = vmand %vm458_vm5, %vm468_vm6  ;;  %v1812_v21 = vsel %vm476_vm7, 1.0, %v2385_v13  ;;  %v1874_v3 = vld [vmem:[%s323_s20] sm:$0xff]   ;;  %s2389_s9 = smov 8   ;;  %s2390_s10 = smov 32  }
  0x15   : > { %v383_v17 = vmul.f32 %v1883_v8, %v2485_v4  ;;  %v384_v18 = vmul.f32 %v1884_v9, %v2485_v4  ;;  %v381_v19 = vmul.f32 %v1879_v10, %v2485_v4  ;;  %v382_v20 = vmul.f32 %v1880_v11, %v2485_v4  ;;  %s2392_s12 = smov 56   ;;  %s2393_s14 = smov 64  }
  0x16   : > { %v385_v22 = vmul.f32 %v1887_v15, %v2485_v4  ;;  %v386_v23 = vmul.f32 %v1888_v16, %v2485_v4  ;;  %v1814_v30 = vsel %vm478_vm8, 1.0, %v2385_v13  ;;  %v1891_v50 = vunpack.c.l.bf16 %v2526_v41  ;;  %p292_p8 = scmp.lt.s32.totalorder %s2462_s28, 15  ;;  %p302_p9 = scmp.lt.s32.totalorder %s2367_s21, 1 }
  0x17   : > { %v409_v24 = vadd.f32 %v2496_v12, %v383_v17  ;;  %v410_v25 = vadd.f32 %v2496_v12, %v384_v18  ;;  %v407_v26 = vadd.f32 %v2496_v12, %v381_v19  ;;  %v408_v27 = vadd.f32 %v2496_v12, %v382_v20 }
  0x18   : > { %v411_v28 = vadd.f32 %v2496_v12, %v385_v22  ;;  %v412_v29 = vadd.f32 %v2496_v12, %v386_v23  ;;  %v1875_v16 = vunpack.c.l.bf16 %v1874_v3  ;;  %v1876_v17 = vunpack.c.h.bf16 %v1874_v3  ;;  %s3166_s28 = smov (!%p292_p8, %s2462_s28), 15  ;;  %s3168_s21 = smov (!%p302_p9, %s2367_s21), 1 }
  0x19   : > { %v429_v31 = vmax.f32 %v409_v24, 0.0  ;;  %v430_v32 = vmax.f32 %v410_v25, 0.0  ;;  %v427_v33 = vmax.f32 %v407_v26, 0.0  ;;  %v428_v34 = vmax.f32 %v408_v27, 0.0 }
  0x1a   : > { %v431_v35 = vmax.f32 %v411_v28, 0.0  ;;  %v432_v36 = vmax.f32 %v412_v29, 0.0  ;;  %v1892_v18 = vunpack.c.h.bf16 %v2526_v41  ;;  %v387_v27 = vmul.f32 %v1891_v50, %v2485_v4  ;;  %v1916_v50 = vld [vmem:[%s2488_s13 + $0x20] sm:$0xff]  }
  0x1b   : > { %v509_v37 = vmul.f32 %v1813_v14, %v429_v31  ;;  %v510_v38 = vmul.f32 %v1813_v14, %v430_v32  ;;  %v507_v39 = vmul.f32 %v1812_v21, %v427_v33  ;;  %v508_v40 = vmul.f32 %v1812_v21, %v428_v34 }
  0x1c   : > { %v511_v42 = vmul.f32 %v1814_v30, %v431_v35  ;;  %v512_v43 = vmul.f32 %v1814_v30, %v432_v36  ;;  %v449_v28 = vadd.s32 4, %v2470_v0  ;;  %v379_v29 = vmul.f32 %v1875_v16, %v2485_v4 }
  0x1d   : > { %v552_v44 = vrot.slane %v509_v37, 7  ;;  %v553_v45 = vrot.slane %v510_v38, 7  ;;  %v549_v46 = vrot.slane %v507_v39, 7  ;;  %v550_v47 = vrot.slane %v508_v40, 7 }
  0x1e   : > { %v555_v48 = vrot.slane %v511_v42, 7  ;;  %v556_v49 = vrot.slane %v512_v43, 7  ;;  %v380_v30 = vmul.f32 %v1876_v17, %v2485_v4  ;;  %v388_v31 = vmul.f32 %v1892_v18, %v2485_v4 }
  0x1f   : > { %v2534_v51 = vsel %vm545_vm9, %v552_v44, %v553_v45  ;;  %v2537_v52 = vsel %vm545_vm9, 0.0, %v552_v44  ;;  %v2540_v53 = vsel %vm545_vm9, %v549_v46, %v550_v47  ;;  %v2543_v54 = vsel %vm545_vm9, 0.0, %v549_v46 }
  0x20   : > { %v2025_v55 = vpack.i.bf16 %v2534_v51, %v2537_v52  ;;  %v2020_v56 = vpack.i.bf16 %v2540_v53, %v2543_v54  ;;  %v2554_v57 = vsel %vm545_vm9, %v555_v48, %v556_v49  ;;  %v2557_v58 = vsel %vm545_vm9, 0.0, %v555_v48 }
  0x21   : > { %v2561_v59 = vpack.i.bf16 %v2554_v57, %v2557_v58  ;;  %v615_v60 = vsel %vm545_vm9, %v550_v47, 0.0  ;;  %v735_v61 = vrot.slane %v2543_v54, 2  ;;  %v736_v62 = vrot.slane %v2540_v53, 2 }
  0x22   : > { %2026 = vrot.lane.b32.xlu1 %v2025_v55, %s2386_s30  ;;  %2021 = vrot.lane.b32.xlu0 %v2020_v56, %s2386_s30  ;;  %v738_v63 = vrot.slane %v615_v60, 2  ;;  %v646_v1 = vrot.slane %v2543_v54, 1  ;;  %v647_v2 = vrot.slane %v2540_v53, 1  ;;  %v649_v5 = vrot.slane %v615_v60, 1 }
  0x23   : > { %v616_v6 = vsel %vm545_vm9, %v553_v45, 0.0  ;;  %v651_v7 = vrot.slane %v2537_v52, 1  ;;  %v652_v8 = vrot.slane %v2534_v51, 1  ;;  %v737_v9 = vsel %vm729_vm10, %v735_v61, %v736_v62 }
  0x24   : > { %v739_v10 = vsel %vm729_vm10, %v736_v62, %v738_v63  ;;  %v648_v11 = vsel %vm640_vm11, %v646_v1, %v647_v2  ;;  %v654_v14 = vrot.slane %v616_v6, 1  ;;  %v650_v15 = vsel %vm640_vm11, %v647_v2, %v649_v5 }
  0x25   : > { %v2045_v19 = vpack.i.bf16 %v739_v10, %v737_v9  ;;  %v2040_v20 = vpack.i.bf16 %v650_v15, %v648_v11  ;;  %v740_v21 = vrot.slane %v2537_v52, 2  ;;  %v741_v22 = vrot.slane %v2534_v51, 2 }
  0x26   : > { %2036 = vrot.lane.b32.xlu1 %v2561_v59, %s2387_s7  ;;  %2031 = vrot.lane.b32.xlu0 %v2025_v55, %s2387_s7  ;;  %v653_v23 = vsel %vm640_vm11, %v651_v7, %v652_v8  ;;  %v655_v24 = vsel %vm640_vm11, %v652_v8, %v654_v14  ;;  %v743_v25 = vrot.slane %v616_v6, 2  ;;  %v2586_v26 = vsel %vm545_vm9, %v556_v49, 0.0 }
  0x27   : > { %v2599_v32 = vpack.i.bf16 %v655_v24, %v653_v23  ;;  %v742_v33 = vsel %vm729_vm10, %v740_v21, %v741_v22  ;;  %v656_v34 = vrot.slane %v2557_v58, 1  ;;  %v657_v35 = vrot.slane %v2554_v57, 1 }
  0x28   : > { %v744_v36 = vsel %vm729_vm10, %v741_v22, %v743_v25  ;;  %v659_v37 = vrot.slane %v2586_v26, 1  ;;  %v405_v38 = vadd.f32 %v2496_v12, %v379_v29  ;;  %v406_v39 = vadd.f32 %v2496_v12, %v380_v30 }
  0x29   : > { %v1811_v40 = vsel %vm475_vm14, 1.0, %v2385_v13  ;;  %vm459_vm15 = vcmp.ge.s32.totalorder %v449_v28, 0  ;;  %vm469_vm0 = vcmp.lt.s32.totalorder %v449_v28, 16  ;;  %v413_v43 = vadd.f32 %v2496_v12, %v387_v27 }
  0x2a   : > { %2046 = vrot.lane.b32.xlu1 %v2045_v19, %s2388_s8  ;;  %2041 = vrot.lane.b32.xlu0 %v2040_v20, %s2389_s9  ;;  %v425_v41 = vmax.f32 %v405_v38, 0.0  ;;  %v426_v42 = vmax.f32 %v406_v39, 0.0  ;;  %v414_v44 = vadd.f32 %v2496_v12, %v388_v31  ;;  %v2614_v45 = vpack.i.bf16 %v744_v36, %v742_v33  ;;  %vm479_vm1 = vmand %vm459_vm15, %vm469_vm0 }
  0x2b   : > { %v658_v46 = vsel %vm640_vm11, %v656_v34, %v657_v35  ;;  %v660_v47 = vsel %vm640_vm11, %v657_v35, %v659_v37  ;;  %v450_v55 = vadd.s32 5, %v2470_v0  ;;  %v433_v61 = vmax.f32 %v413_v43, 0.0 }
  0x2c   : > { %v505_v48 = vmul.f32 %v1811_v40, %v425_v41  ;;  %v506_v49 = vmul.f32 %v1811_v40, %v426_v42  ;;  %v434_v62 = vmax.f32 %v414_v44, 0.0  ;;  %v2623_v63 = vpack.i.bf16 %v660_v47, %v658_v46 }
  0x2d   : > { %v745_v1 = vrot.slane %v2557_v58, 2  ;;  %v1815_v2 = vsel %vm479_vm1, 1.0, %v2385_v13  ;;  %v1895_v7 = vunpack.c.l.bf16 %v1916_v50  ;;  %v746_v16 = vrot.slane %v2554_v57, 2 }
  0x2e   : > { %2056 = vrot.lane.b32.xlu1 %v2599_v32, %s2390_s10  ;;  %2051 = vrot.lane.b32.xlu0 %v2040_v20, %s2390_s10  ;;  %v546_v56 = vrot.slane %v505_v48, 7  ;;  %v547_v60 = vrot.slane %v506_v49, 7  ;;  %v1896_v17 = vunpack.c.h.bf16 %v1916_v50  ;;  %v748_v20 = vrot.slane %v2586_v26, 2  ;;  %v1917_v48 = vld [vmem:[%s2488_s13 + $0x28] sm:$0xff]  }
  0x2f   : > { %v513_v21 = vmul.f32 %v1815_v2, %v433_v61  ;;  %v514_v25 = vmul.f32 %v1815_v2, %v434_v62  ;;  %v389_v28 = vmul.f32 %v1895_v7, %v2485_v4  ;;  %vm460_vm2 = vcmp.ge.s32.totalorder %v450_v55, 0 }
  0x30   : > { %v2628_v3 = vsel %vm545_vm9, %v546_v56, %v547_v60  ;;  %v2631_v5 = vsel %vm545_vm9, 0.0, %v546_v56  ;;  %v614_v6 = vsel %vm545_vm9, %v547_v60, 0.0  ;;  %v390_v29 = vmul.f32 %v1896_v17, %v2485_v4 }
  0x31   : > { %v730_v8 = vrot.slane %v2631_v5, 2  ;;  %v731_v9 = vrot.slane %v2628_v3, 2  ;;  %v733_v10 = vrot.slane %v614_v6, 2  ;;  %v641_v11 = vrot.slane %v2631_v5, 1 }
  0x32   : > { %2066 = vrot.lane.b32.xlu1 %v2614_v45, %s2391_s11  ;;  %2061 = vrot.lane.b32.xlu0 %v2045_v19, %s2391_s11  ;;  %v642_v14 = vrot.slane %v2628_v3, 1  ;;  %v644_v15 = vrot.slane %v614_v6, 1  ;;  %vm470_vm3 = vcmp.lt.s32.totalorder %v450_v55, 16  ;;  %v747_v26 = vsel %vm729_vm10, %v745_v1, %v746_v16 }
  0x33   : > { %v732_v18 = vsel %vm729_vm10, %v730_v8, %v731_v9  ;;  %v734_v19 = vsel %vm729_vm10, %v731_v9, %v733_v10  ;;  %v749_v30 = vsel %vm729_vm10, %v746_v16, %v748_v20  ;;  %v558_v31 = vrot.slane %v513_v21, 7  ;;  %vm480_vm4 = vmand %vm460_vm2, %vm470_vm3  ;;  %v1918_v21 = vld [vmem:[%s2488_s13 + $0x30] sm:$0xff]  }
  0x34   : > { %v2090_v22 = vpack.i.bf16 %v734_v19, %v732_v18  ;;  %v643_v23 = vsel %vm640_vm11, %v641_v11, %v642_v14  ;;  %v645_v24 = vsel %vm640_vm11, %v642_v14, %v644_v15  ;;  %v559_v33 = vrot.slane %v514_v25, 7 }
  0x35   : > { %v2080_v27 = vpack.i.bf16 %v645_v24, %v643_v23  ;;  %v415_v34 = vadd.f32 %v2496_v12, %v389_v28  ;;  %v416_v35 = vadd.f32 %v2496_v12, %v390_v29  ;;  %v2100_v36 = vpack.i.bf16 %v749_v30, %v747_v26 }
  0x36   : > { %2076 = vrot.lane.b32.xlu1 %v2623_v63, %s2392_s12  ;;  %2071 = vrot.lane.b32.xlu0 %v2599_v32, %s2392_s12  ;;  %v2661_v37 = vsel %vm545_vm9, %v558_v31, %v559_v33  ;;  %v2664_v38 = vsel %vm545_vm9, 0.0, %v558_v31  ;;  %v618_v39 = vsel %vm545_vm9, %v559_v33, 0.0  ;;  %v1816_v42 = vsel %vm480_vm4, 1.0, %v2385_v13 }
  0x37   : > { %v435_v40 = vmax.f32 %v415_v34, 0.0  ;;  %v436_v41 = vmax.f32 %v416_v35, 0.0  ;;  %v662_v43 = vrot.slane %v2661_v37, 1  ;;  %v664_v44 = vrot.slane %v618_v39, 1 }
  0x38   : > { %v2125_v49 = vpack.i.bf16 %v2661_v37, %v2664_v38  ;;  %v750_v55 = vrot.slane %v2664_v38, 2  ;;  %v751_v60 = vrot.slane %v2661_v37, 2  ;;  %v753_v61 = vrot.slane %v618_v39, 2 }
  0x39   : > { %v515_v46 = vmul.f32 %v1816_v42, %v435_v40  ;;  %v516_v47 = vmul.f32 %v1816_v42, %v436_v41  ;;  %v665_v56 = vsel %vm640_vm11, %v662_v43, %v664_v44  ;;  %v1899_v62 = vunpack.c.l.bf16 %v1917_v48  ;;  %v2340_v42 = vld [vmem:[%s3144_s3 + $0x20] ss:$0 sps:$4 sm:$0xff]  }
  0x3a   : > { %2091 = vrot.lane.b32.xlu1 %v2090_v22, %s2388_s8  ;;  %2081 = vrot.lane.b32.xlu0 %v2080_v27, %s2389_s9  ;;  %v1900_v6 = vunpack.c.h.bf16 %v1917_v48  ;;  %v451_v7 = vadd.s32 6, %v2470_v0  ;;  %v752_v8 = vsel %vm729_vm10, %v750_v55, %v751_v60  ;;  %v754_v9 = vsel %vm729_vm10, %v751_v60, %v753_v61 }
  0x3b   : > { %v561_v1 = vrot.slane %v515_v46, 7  ;;  %v562_v2 = vrot.slane %v516_v47, 7  ;;  %v391_v10 = vmul.f32 %v1899_v62, %v2485_v4  ;;  %v2701_v16 = vpack.i.bf16 %v754_v9, %v752_v8  ;;  %1969 = vmatprep.subr.msk.bf16.mxu0 %vm1335_vm13, %v2340_v42  ;;  %1970 = vmatprep.subr.msk.bf16.mxu1 %vm1335_vm13, %v2340_v42 }
  0x3c   : > { %vm461_vm5 = vcmp.ge.s32.totalorder %v451_v7, 0  ;;  %vm471_vm6 = vcmp.lt.s32.totalorder %v451_v7, 16  ;;  %v1903_v23 = vunpack.c.l.bf16 %v1918_v21  ;;  %v1904_v26 = vunpack.c.h.bf16 %v1918_v21 }
  0x3d   : > { %v2691_v11 = vsel %vm545_vm9, %v561_v1, %v562_v2  ;;  %v2694_v14 = vsel %vm545_vm9, 0.0, %v561_v1  ;;  %v619_v15 = vsel %vm545_vm9, %v562_v2, 0.0  ;;  %v417_v20 = vadd.f32 %v2496_v12, %v391_v10  ;;  %vm481_vm7 = vmand %vm461_vm5, %vm471_vm6 }
  0x3e   : > { %2096 = vrot.lane.b32.xlu1 %v2599_v32, %s2389_s9  ;;  %2086 = vrot.lane.b32.xlu0 %v2614_v45, %s2393_s14  ;;  %v661_v32 = vrot.slane %v2664_v38, 1  ;;  %v666_v17 = vrot.slane %v2694_v14, 1  ;;  %v667_v18 = vrot.slane %v2691_v11, 1  ;;  %v669_v19 = vrot.slane %v619_v15, 1 }
  0x3f   : > { %v437_v27 = vmax.f32 %v417_v20, 0.0  ;;  %v1817_v29 = vsel %vm481_vm7, 1.0, %v2385_v13  ;;  %v393_v31 = vmul.f32 %v1903_v23, %v2485_v4  ;;  %v452_v33 = vadd.s32 7, %v2470_v0 }
  0x40   : > { %v663_v50 = vsel %vm640_vm11, %v661_v32, %v662_v43  ;;  %v668_v24 = vsel %vm640_vm11, %v666_v17, %v667_v18  ;;  %v670_v25 = vsel %vm640_vm11, %v667_v18, %v669_v19  ;;  %v755_v34 = vrot.slane %v2694_v14, 2 }
  0x41   : > { %v2721_v30 = vpack.i.bf16 %v670_v25, %v668_v24  ;;  %v756_v35 = vrot.slane %v2691_v11, 2  ;;  %v517_v39 = vmul.f32 %v1817_v29, %v437_v27  ;;  %v394_v41 = vmul.f32 %v1904_v26, %v2485_v4 }
  0x42   : > { %2106 = vrot.lane.b32.xlu1 %v2623_v63, %s2389_s9  ;;  %2101 = vrot.lane.b32.xlu0 %v2100_v36, %s2393_s14  ;;  %vm462_vm8 = vcmp.ge.s32.totalorder %v452_v33, 0  ;;  %vm472_vm12 = vcmp.lt.s32.totalorder %v452_v33, 16  ;;  %v419_v46 = vadd.f32 %v2496_v12, %v393_v31  ;;  %v453_v33 = vadd.s32 8, %v2470_v0 }
  0x43   : > { %v757_v32 = vsel %vm729_vm10, %v755_v34, %v756_v35  ;;  %v564_v44 = vrot.slane %v517_v39, 7  ;;  %v420_v48 = vadd.f32 %v2496_v12, %v394_v41  ;;  %vm482_vm14 = vmand %vm462_vm8, %vm472_vm12  ;;  %vm1181_vm5 = vcmask 261120  }
  0x44   : > { %v439_v60 = vmax.f32 %v419_v46, 0.0  ;;  %v1818_v2 = vsel %vm482_vm14, 1.0, %v2385_v13  ;;  %vm463_vm15 = vcmp.ge.s32.totalorder %v453_v33, 0  ;;  %vm473_vm0 = vcmp.lt.s32.totalorder %v453_v33, 16 }
  0x45   : > { %v440_v1 = vmax.f32 %v420_v48, 0.0  ;;  %vm483_vm1 = vmand %vm463_vm15, %vm473_vm0  ;;  %vm1198_vm6 = vcmask 326656   ;;  %vm1215_vm7 = vcmask 392192   ;;  %vm1232_vm8 = vcmask 457728  }
  0x46   : > { %2116 = vrot.lane.b32.xlu1 %v2100_v36, %s2388_s8  ;;  %2111 = vrot.lane.b32.xlu0 %v2614_v45, %s2388_s8  ;;  %v2135_v45 = vpack.i.bf16 %v665_v56, %v663_v50  ;;  %v1337_v50 = vsel %vm1335_vm13, %v2340_v42, 0  ;;  %v2747_v56 = vsel %vm545_vm9, 0.0, %v564_v44  ;;  %v519_v9 = vmul.f32 %v1818_v2, %v439_v60 }
  0x47   : > { %1934 = vmatpush3.bf16.msra.mxu0 %v1337_v50  ;;  %1964 = vmatpush3.bf16.msra.mxu1 %v1337_v50  ;;  %v520_v10 = vmul.f32 %v1818_v2, %v440_v1  ;;  %v760_v18 = vrot.slane %v2747_v56, 2  ;;  %vm1249_vm12 = vcmask 523264   ;;  %vm1310_vm13 = vcmask 588800  }
  0x48   : > { %v567_v23 = vrot.slane %v519_v9, 7  ;;  %vm1593_vm14 = vcmask 60416   ;;  %vm1473_vm15 = vcmask 57344  }
  0x49   : > { %v568_v24 = vrot.slane %v520_v10, 7 }
  0x4a   : > { %2126 = vrot.lane.b32.xlu1 %v2125_v49, %s2386_s30  ;;  %2121 = vrot.lane.b32.xlu0 %v2561_v59, %s2386_s30  ;;  %v392_v59 = vmul.f32 %v1900_v6, %v2485_v4  ;;  %v2342_v6 = vld [vmem:[%s3144_s3 + $0x10] sm:$0xff]   ;;  %v2786_v31 = vsel %vm545_vm9, 0.0, %v567_v23 }
  0x4b   : > { %v2790_v34 = vsel %vm545_vm9, %v567_v23, %v568_v24 }
  0x4c   : > { %v418_v22 = vadd.f32 %v2496_v12, %v392_v59  ;;  %v1919_v59 = vld [vmem:[%s2488_s13 + $0x38] sm:$0xff]   ;;  %v677_v41 = vrot.slane %v2790_v34, 1  ;;  %v766_v2 = vrot.slane %v2790_v34, 2 }
  0x4d   : > { %v1907_v25 = vunpack.c.l.bf16 %v1919_v59  ;;  %v1908_v27 = vunpack.c.h.bf16 %v1919_v59 }
  0x4e   : > { %2136 = vrot.lane.b32.xlu1 %v2135_v45, %s2390_s10  ;;  %2131 = vrot.lane.b32.xlu0 %v2623_v63, %s2390_s10  ;;  %v2713_v63 = vpack.i.bf16 %v2691_v11, %v2694_v14  ;;  %v438_v28 = vmax.f32 %v418_v22, 0.0 }
  0x50   : > { %v518_v40 = vmul.f32 %v1817_v29, %v438_v28 }
  0x52   : > { %2146 = vrot.lane.b32.xlu1 %v2701_v16, %s2391_s11  ;;  %2141 = vrot.lane.b32.xlu0 %v2100_v36, %s2391_s11  ;;  %v758_v36 = vrot.slane %v619_v15, 2  ;;  %v565_v47 = vrot.slane %v518_v40, 7  ;;  %v2343_v15 = vld [vmem:[%s3144_s3 + $0x8] sm:$0xff]   ;;  %v676_v40 = vrot.slane %v2786_v31, 1 }
  0x54   : > { %v759_v43 = vsel %vm729_vm10, %v756_v35, %v758_v36  ;;  %v2750_v61 = vsel %vm545_vm9, %v564_v44, %v565_v47  ;;  %v620_v62 = vsel %vm545_vm9, %v565_v47, 0.0  ;;  %v621_v35 = vsel %vm545_vm9, %v568_v24, 0.0  ;;  %v1910_v44 = vld [vmem:[%s2547_s29] sm:$0xff]   ;;  %s1796_s29 = sshll.u32 %s3166_s28, 1  ;;  %s1799_s28 = sshll.u32 %s3160_s22, 1 }
  0x55   : > { %v2744_v55 = vpack.i.bf16 %v759_v43, %v757_v32  ;;  %v672_v7 = vrot.slane %v2750_v61, 1  ;;  %v674_v8 = vrot.slane %v620_v62, 1  ;;  %v2205_v17 = vpack.i.bf16 %v2750_v61, %v2747_v56 }
  0x56   : > { %2156 = vrot.lane.b32.xlu1 %v2713_v63, %s2387_s7  ;;  %2151 = vrot.lane.b32.xlu0 %v2125_v49, %s2387_s7  ;;  %v2341_v49 = vld [vmem:[%s3144_s3 + $0x18] sm:$0xff]   ;;  %v761_v19 = vrot.slane %v2750_v61, 2  ;;  %v763_v22 = vrot.slane %v620_v62, 2  ;;  %v395_v36 = vmul.f32 %v1907_v25, %v2485_v4  ;;  %v679_v42 = vrot.slane %v621_v35, 1 }
  0x57   : > { %1935 = vmatprep.subr.bf16.mxu0 %v2341_v49  ;;  %1960 = vmatprep.subr.bf16.mxu1 %v2341_v49  ;;  %v675_v21 = vsel %vm640_vm11, %v672_v7, %v674_v8  ;;  %v678_v46 = vsel %vm640_vm11, %v676_v40, %v677_v41  ;;  %v1911_v48 = vunpack.c.l.bf16 %v1910_v44  ;;  %v1912_v60 = vunpack.c.h.bf16 %v1910_v44 }
  0x58   : > { %1936 = vmatpush3.bf16.msra.mxu0 %v2341_v49  ;;  %1965 = vmatpush3.bf16.msra.mxu1 %v2341_v49  ;;  %v762_v29 = vsel %vm729_vm10, %v760_v18, %v761_v19  ;;  %v764_v26 = vsel %vm729_vm10, %v761_v19, %v763_v22  ;;  %v421_v32 = vadd.f32 %v2496_v12, %v395_v36  ;;  %v1819_v62 = vsel %vm483_vm1, 1.0, %v2385_v13 }
  0x59   : > { %1937 = vmatprep.subr.bf16.mxu0 %v2342_v6  ;;  %1961 = vmatprep.subr.bf16.mxu1 %v2342_v6  ;;  %v2225_v39 = vpack.i.bf16 %v764_v26, %v762_v29  ;;  %v680_v47 = vsel %vm640_vm11, %v677_v41, %v679_v42  ;;  %v398_v10 = vmul.f32 %v1912_v60, %v2485_v4 }
  0x5a   : > { %2166 = vrot.lane.b32.xlu1 %v2721_v30, %s2392_s12  ;;  %2161 = vrot.lane.b32.xlu0 %v2135_v45, %s2392_s12  ;;  %v441_v49 = vmax.f32 %v421_v32, 0.0  ;;  %v2245_v1 = vpack.i.bf16 %v680_v47, %v678_v46 }
  0x5c   : > { %1938 = vmatpush3.bf16.msra.mxu0 %v2342_v6  ;;  %1966 = vmatpush3.bf16.msra.mxu1 %v2342_v6  ;;  %v768_v6 = vrot.slane %v621_v35, 2  ;;  %v521_v8 = vmul.f32 %v1819_v62, %v441_v49 }
  0x5d   : > { %1939 = vmatprep.subr.bf16.mxu0 %v2343_v15  ;;  %1962 = vmatprep.subr.bf16.mxu1 %v2343_v15 }
  0x5e   : > { %2176 = vrot.lane.b32.xlu1 %v2135_v45, %s2389_s9  ;;  %2171 = vrot.lane.b32.xlu0 %v2701_v16, %s2393_s14  ;;  %v671_v45 = vrot.slane %v2747_v56, 1  ;;  %v769_v59 = vsel %vm729_vm10, %v766_v2, %v768_v6  ;;  %v570_v18 = vrot.slane %v521_v8, 7 }
  0x60   : > { %v673_v20 = vsel %vm640_vm11, %v671_v45, %v672_v7  ;;  %1940 = vmatpush3.bf16.msra.mxu0 %v2343_v15  ;;  %1967 = vmatpush3.bf16.msra.mxu1 %v2343_v15  ;;  %v397_v45 = vmul.f32 %v1911_v48, %v2485_v4  ;;  %v454_v7 = vadd.s32 9, %v2470_v0  ;;  %v424_v0 = vadd.f32 %v2496_v12, %v398_v10 }
  0x61   : > { %v2215_v28 = vpack.i.bf16 %v675_v21, %v673_v20  ;;  %v612_v22 = vsel %vm545_vm9, 0.0, %v570_v18 }
  0x62   : > { %2186 = vrot.lane.b32.xlu1 %v2721_v30, %s2389_s9  ;;  %2181 = vrot.lane.b32.xlu0 %v2744_v55, %s2393_s14  ;;  %vm464_vm2 = vcmp.ge.s32.totalorder %v454_v7, 0  ;;  %vm474_vm3 = vcmp.lt.s32.totalorder %v454_v7, 16  ;;  %v444_v24 = vmax.f32 %v424_v0, 0.0  ;;  %v921_v33 = vrot.slane %v612_v22, 2 }
  0x63   : > { %vm484_vm4 = vmand %vm464_vm2, %vm474_vm3 }
  0x64   : > { %v1820_v25 = vsel %vm484_vm4, 1.0, %v2385_v13 }
  0x65   : > { %v524_v29 = vmul.f32 %v1820_v25, %v444_v24 }
  0x66   : > { %2196 = vrot.lane.b32.xlu1 %v2744_v55, %s2388_s8  ;;  %2191 = vrot.lane.b32.xlu0 %v2701_v16, %s2388_s8  ;;  %v2344_v16 = vld [vmem:[%s3144_s3] sm:$0xff]  }
  0x67   : > { %1941 = vmatprep.subr.bf16.mxu0 %v2344_v16  ;;  %1963 = vmatprep.subr.bf16.mxu1 %v2344_v16  ;;  %v574_v41 = vrot.slane %v524_v29, 7 }
  0x68   : > { %1942 = vmatpush3.bf16.msra.mxu0 %v2344_v16  ;;  %1968 = vmatpush3.bf16.msra.mxu1 %v2344_v16 }
  0x69   : > { %v623_v46 = vsel %vm545_vm9, %v574_v41, 0.0 }
  0x6a   : > { %2206 = vrot.lane.b32.xlu1 %v2205_v17, %s2386_s30  ;;  %2201 = vrot.lane.b32.xlu0 %v2713_v63, %s2386_s30  ;;  %v396_v63 = vmul.f32 %v1908_v27, %v2485_v4  ;;  %v1080_v6 = vrot.slane %v623_v46, 2 }
  0x6c   : > { %v422_v43 = vadd.f32 %v2496_v12, %v396_v63 }
  0x6e   : > { %2216 = vrot.lane.b32.xlu1 %v2215_v28, %s2390_s10  ;;  %2211 = vrot.lane.b32.xlu0 %v2721_v30, %s2390_s10  ;;  %v2235_v30 = vpack.i.bf16 %v2790_v34, %v2786_v31  ;;  %v442_v50 = vmax.f32 %v422_v43, 0.0 }
  0x70   : > { %v522_v9 = vmul.f32 %v1819_v62, %v442_v50  ;;  %v1027_v50 = vrot.slane %v623_v46, 1 }
  0x72   : > { %2226 = vrot.lane.b32.xlu1 %v2225_v39, %s2391_s11  ;;  %2221 = vrot.lane.b32.xlu0 %v2744_v55, %s2391_s11  ;;  %v765_v55 = vrot.slane %v2786_v31, 2  ;;  %v571_v19 = vrot.slane %v522_v9, 7 }
  0x74   : > { %v767_v15 = vsel %vm729_vm10, %v765_v55, %v766_v2  ;;  %v572_v21 = vsel %vm545_vm9, %v570_v18, %v571_v19  ;;  %v622_v23 = vsel %vm545_vm9, %v571_v19, 0.0 }
  0x75   : > { %v2260_v4 = vpack.i.bf16 %v769_v59, %v767_v15  ;;  %v869_v27 = vrot.slane %v572_v21, 1  ;;  %v871_v16 = vrot.slane %v622_v23, 1  ;;  %v2285_v26 = vpack.i.bf16 %v572_v21, %v612_v22 }
  0x76   : > { %2236 = vrot.lane.b32.xlu1 %v2235_v30, %s2387_s7  ;;  %2231 = vrot.lane.b32.xlu0 %v2205_v17, %s2387_s7  ;;  %v423_v17 = vadd.f32 %v2496_v12, %v397_v45  ;;  %v868_v12 = vrot.slane %v612_v22, 1  ;;  %v922_v13 = vrot.slane %v572_v21, 2  ;;  %v924_v63 = vrot.slane %v622_v23, 2 }
  0x77   : > { %v872_v36 = vsel %vm640_vm11, %v869_v27, %v871_v16 }
  0x78   : > { %v443_v20 = vmax.f32 %v423_v17, 0.0  ;;  %v870_v35 = vsel %vm640_vm11, %v868_v12, %v869_v27  ;;  %v923_v32 = vsel %vm729_vm10, %v921_v33, %v922_v13  ;;  %v925_v43 = vsel %vm729_vm10, %v922_v13, %v924_v63 }
  0x79   : > { %v2295_v42 = vpack.i.bf16 %v872_v36, %v870_v35  ;;  %v2305_v47 = vpack.i.bf16 %v925_v43, %v923_v32 }
  0x7a   : > { %2246 = vrot.lane.b32.xlu1 %v2245_v1, %s2392_s12  ;;  %2241 = vrot.lane.b32.xlu0 %v2215_v28, %s2392_s12 }
  0x7e   : > { %2256 = vrot.lane.b32.xlu1 %v2215_v28, %s2389_s9  ;;  %2251 = vrot.lane.b32.xlu0 %v2225_v39, %s2393_s14  ;;  %v523_v28 = vmul.f32 %v1820_v25, %v443_v20 }
  0x80   : > { %v573_v40 = vrot.slane %v523_v28, 7 }
  0x82   : > { %2266 = vrot.lane.b32.xlu1 %v2245_v1, %s2389_s9  ;;  %2261 = vrot.lane.b32.xlu0 %v2260_v4, %s2393_s14  ;;  %v613_v44 = vsel %vm545_vm9, 0.0, %v573_v40 }
  0x83   : > { %v1024_v48 = vrot.slane %v613_v44, 1 }
  0x86   : > { %2276 = vrot.lane.b32.xlu1 %v2260_v4, %s2388_s8  ;;  %2271 = vrot.lane.b32.xlu0 %v2225_v39, %s2388_s8  ;;  %v575_v39 = vsel %vm545_vm9, %v573_v40, %v574_v41  ;;  %vm1130_vm9 = vcmask 64512  }
  0x87   : > { %v1025_v49 = vrot.slane %v575_v39, 1  ;;  %v2315_v60 = vpack.i.bf16 %v575_v39, %v613_v44  ;;  %v1078_v62 = vrot.slane %v575_v39, 2 }
  0x89   : > { %v1026_v55 = vsel %vm640_vm11, %v1024_v48, %v1025_v49  ;;  %v1028_v2 = vsel %vm640_vm11, %v1025_v49, %v1027_v50  ;;  %v1081_v9 = vsel %vm729_vm10, %v1078_v62, %v1080_v6  ;;  %vm1164_vm11 = vcmask 195584  }
  0x8a   : > { %2286 = vrot.lane.b32.xlu1 %v2285_v26, %s2386_s30  ;;  %2281 = vrot.lane.b32.xlu0 %v2235_v30, %s2386_s30  ;;  %v1077_v30 = vrot.slane %v613_v44, 2  ;;  %s1797_s30 = sshll.u32 %s3160_s22, 5 }
  0x8c   : > { %v1079_v8 = vsel %vm729_vm10, %v1077_v30, %v1078_v62  ;;  %vm1147_vm10 = vcmask 130048  }
  0x8d   : > { %v2335_v59 = vpack.i.bf16 %v1081_v9, %v1079_v8 }
  0x8e   : > { %2296 = vrot.lane.b32.xlu1 %v2295_v42, %s2390_s10  ;;  %2291 = vrot.lane.b32.xlu0 %v2245_v1, %s2390_s10  ;;  %v2325_v1 = vpack.i.bf16 %v1028_v2, %v1026_v55 }
  0x92   : > { %2306 = vrot.lane.b32.xlu1 %v2305_v47, %s2391_s11  ;;  %2301 = vrot.lane.b32.xlu0 %v2260_v4, %s2391_s11 }
  0x94   : > { %v2027_v45 = vpop.permute.xlu1 %2026  ;;  %v2849_v7 = vpop.permute.xlu0 %2021 }
  0x95   : > { %v2028_v33 = vunpack.i.l.bf16 %v2027_v45 }
  0x96   : > { %2316 = vrot.lane.b32.xlu1 %v2315_v60, %s2387_s7  ;;  %2311 = vrot.lane.b32.xlu0 %v2285_v26, %s2387_s7  ;;  %v2029_v26 = vunpack.i.h.bf16 %v2027_v45  ;;  %s296_s7 = sadd.s32 %s1797_s30, %s1796_s29 }
  0x97   : > { %s1798_s8 = sshll.u32 %s296_s7, 2 }
  0x98   : > { %v2855_v10 = vpop.permute.xlu1 %2036  ;;  %v2857_v15 = vpop.permute.xlu0 %2031  ;;  %s3051_s11 = scalar_lea.vmem %s3145_s4, %s1798_s8 }
  0x99   : > { %v2039_v40 = vunpack.i.h.bf16 %v2855_v10  ;;  %v2038_v41 = vunpack.i.l.bf16 %v2855_v10 }
  0x9a   : > { %2326 = vrot.lane.b32.xlu1 %v2325_v1, %s2392_s12  ;;  %2321 = vrot.lane.b32.xlu0 %v2295_v42, %s2392_s12  ;;  %s305_s12 = sadd.s32 %s1799_s28, %s3168_s21 }
  0x9b   : > { %s306_s19 = scalar_lea.vmem %s3146_s5, %s305_s12  ;;  %s313_s16 = scalar_lea.vmem %s3147_s6, %s305_s12 }
  0x9c   : > { %v2047_v17 = vpop.permute.xlu1 %2046  ;;  %v2042_v18 = vpop.permute.xlu0 %2041 }
  0x9d   : > { %v2044_v4 = vunpack.i.h.bf16 %v2042_v18  ;;  %v2043_v20 = vunpack.i.l.bf16 %v2042_v18  ;;  %v2049_v21 = vunpack.i.h.bf16 %v2047_v17  ;;  %v2048_v22 = vunpack.i.l.bf16 %v2047_v17 }
  0x9e   : > { %2336 = vrot.lane.b32.xlu1 %v2335_v59, %s2393_s14  ;;  %2331 = vrot.lane.b32.xlu0 %v2305_v47, %s2393_s14 }
  0x9f   : > { %v1134_v25 = vsel %vm1130_vm9, %v2540_v53, %v2044_v4  ;;  %v1133_v12 = vsel %vm1130_vm9, %v2543_v54, %v2043_v20  ;;  %v2024_v53 = vunpack.i.h.bf16 %v2849_v7  ;;  %v2023_v54 = vunpack.i.l.bf16 %v2849_v7 }
  0xa0   : > { %v2057_v19 = vpop.permute.xlu1 %2056  ;;  %v2052_v0 = vpop.permute.xlu0 %2051  ;;  %v1151_v27 = vsel %vm1147_vm10, %v1134_v25, %v2049_v21  ;;  %v1150_v16 = vsel %vm1147_vm10, %v1133_v12, %v2048_v22 }
  0xa1   : > { %v2059_v35 = vunpack.i.h.bf16 %v2057_v19  ;;  %v2058_v36 = vunpack.i.l.bf16 %v2057_v19  ;;  %v1167_v13 = vsel %vm1164_vm11, %v1150_v16, %v2028_v33  ;;  %v1168_v63 = vsel %vm1164_vm11, %v1151_v27, %v2029_v26 }
  0xa2   : > { %v2054_v30 = vunpack.i.h.bf16 %v2052_v0  ;;  %v2053_v60 = vunpack.i.l.bf16 %v2052_v0  ;;  %v2034_v19 = vunpack.i.h.bf16 %v2857_v15 }
  0xa3   : > { %v1184_v49 = vsel %vm1181_vm5, %v1167_v13, %v2058_v36  ;;  %v1185_v50 = vsel %vm1181_vm5, %v1168_v63, %v2059_v35 }
  0xa4   : > { %v2067_v23 = vpop.permute.xlu1 %2066  ;;  %v2062_v24 = vpop.permute.xlu0 %2061 }
  0xa5   : > { %v2069_v42 = vunpack.i.h.bf16 %v2067_v23  ;;  %v2068_v32 = vunpack.i.l.bf16 %v2067_v23  ;;  %v2064_v62 = vunpack.i.h.bf16 %v2062_v24  ;;  %v2063_v55 = vunpack.i.l.bf16 %v2062_v24 }
  0xa7   : > { %v1201_v45 = vsel %vm1198_vm6, %v1184_v49, %v2068_v32  ;;  %v1202_v7 = vsel %vm1198_vm6, %v1185_v50, %v2069_v42 }
  0xa8   : > { %v2077_v28 = vpop.permute.xlu1 %2076  ;;  %v2869_v29 = vpop.permute.xlu0 %2071  ;;  %v1218_v20 = vsel %vm1215_vm7, %v1201_v45, %v2038_v41  ;;  %v1219_v21 = vsel %vm1215_vm7, %v1202_v7, %v2039_v40 }
  0xa9   : > { %v2079_v59 = vunpack.i.h.bf16 %v2077_v28  ;;  %v2078_v17 = vunpack.i.l.bf16 %v2077_v28  ;;  %v2074_v24 = vunpack.i.h.bf16 %v2869_v29  ;;  %v2073_v25 = vunpack.i.l.bf16 %v2869_v29 }
  0xab   : > { %v1235_v28 = vsel %vm1232_vm8, %v1218_v20, %v2078_v17  ;;  %v1236_v26 = vsel %vm1232_vm8, %v1219_v21, %v2079_v59 }
  0xac   : > { %v2092_v43 = vpop.permute.xlu1 %2091  ;;  %v2082_v39 = vpop.permute.xlu0 %2081 }
  0xad   : > { %v2094_v44 = vunpack.i.h.bf16 %v2092_v43  ;;  %v2093_v46 = vunpack.i.l.bf16 %v2092_v43  ;;  %v2084_v47 = vunpack.i.h.bf16 %v2082_v39  ;;  %v2083_v48 = vunpack.i.l.bf16 %v2082_v39 }
  0xaf   : > { %v1132_v2 = vsel %vm1130_vm9, %v2628_v3, %v2084_v47  ;;  %v1131_v6 = vsel %vm1130_vm9, %v2631_v5, %v2083_v48  ;;  %v2033_v5 = vunpack.i.l.bf16 %v2857_v15 }
  0xb0   : > { %v1149_v1 = vsel %vm1147_vm10, %v1132_v2, %v2094_v44  ;;  %v1148_v8 = vsel %vm1147_vm10, %v1131_v6, %v2093_v46  ;;  %v2887_v9 = vpop.permute.xlu1 %2096  ;;  %v2087_v10 = vpop.permute.xlu0 %2086 }
  0xb1   : > { %v1166_v18 = vsel %vm1164_vm11, %v1149_v1, %v2024_v53  ;;  %v1165_v3 = vsel %vm1164_vm11, %v1148_v8, %v2023_v54  ;;  %v2089_v36 = vunpack.i.h.bf16 %v2087_v10  ;;  %v2088_v53 = vunpack.i.l.bf16 %v2087_v10 }
  0xb2   : > { %v1182_v0 = vsel %vm1181_vm5, %v1165_v3, %v2053_v60  ;;  %v1183_v4 = vsel %vm1181_vm5, %v1166_v18, %v2054_v30 }
  0xb3   : > { %v1199_v22 = vsel %vm1198_vm6, %v1182_v0, %v2063_v55  ;;  %v1200_v23 = vsel %vm1198_vm6, %v1183_v4, %v2064_v62  ;;  %v2099_v62 = vunpack.i.h.bf16 %v2887_v9  ;;  %v2098_v55 = vunpack.i.l.bf16 %v2887_v9 }
  0xb4   : > { %v2107_v12 = vpop.permute.xlu1 %2106  ;;  %v2102_v27 = vpop.permute.xlu0 %2101  ;;  %v1216_v15 = vsel %vm1215_vm7, %v1199_v22, %v2033_v5  ;;  %v1217_v16 = vsel %vm1215_vm7, %v1200_v23, %v2034_v19 }
  0xb5   : > { %v2104_v33 = vunpack.i.h.bf16 %v2102_v27  ;;  %v2103_v35 = vunpack.i.l.bf16 %v2102_v27  ;;  %v1233_v54 = vsel %vm1232_vm8, %v1216_v15, %v2073_v25  ;;  %v1234_v13 = vsel %vm1232_vm8, %v1217_v16, %v2074_v24 }
  0xb6   : > { %v1250_v42 = vsel %vm1249_vm12, %v1233_v54, %v2088_v53  ;;  %v1251_v32 = vsel %vm1249_vm12, %v1234_v13, %v2089_v36  ;;  %v2109_v30 = vunpack.i.h.bf16 %v2107_v12  ;;  %v2108_v60 = vunpack.i.l.bf16 %v2107_v12 }
  0xb7   : > { %v1253_v29 = vsel %vm1249_vm12, %v1236_v26, %v2104_v33  ;;  %v1252_v63 = vsel %vm1249_vm12, %v1235_v28, %v2103_v35  ;;  %v1266_v39 = vpack.c.bf16 %v1251_v32, %v1250_v42  ;;  %v1136_v5 = vsel %vm1130_vm9, %v2534_v51, %v2099_v62 }
  0xb8   : > { %v2117_v40 = vpop.permute.xlu1 %2116  ;;  %v2112_v41 = vpop.permute.xlu0 %2111  ;;  %v1267_v43 = vpack.c.bf16 %v1253_v29, %v1252_v63  ;;  %v1138_v17 = vsel %vm1130_vm9, %v2554_v57, %v2109_v30  ;;  %v1137_v18 = vsel %vm1130_vm9, %v2557_v58, %v2108_v60  ;;  %v1135_v9 = vsel %vm1130_vm9, %v2537_v52, %v2098_v55 }
  0xb9   : > { %1943 = vmatprep.mubr.msk.bf16.mxu0 %vm1310_vm13, %v1266_v39  ;;  %v2119_v2 = vunpack.i.h.bf16 %v2117_v40  ;;  %v2118_v6 = vunpack.i.l.bf16 %v2117_v40  ;;  %v2114_v45 = vunpack.i.h.bf16 %v2112_v41  ;;  %v2113_v7 = vunpack.i.l.bf16 %v2112_v41 }
  0xba   : > { %1944 = vmatmul.mubr.msk.bf16.vlgmr.msra.gmra.mxu0 %vm1310_vm13, %v1267_v43 }
  0xbb   : > { %v1154_v0 = vsel %vm1147_vm10, %v1137_v18, %v2118_v6  ;;  %v1155_v4 = vsel %vm1147_vm10, %v1138_v17, %v2119_v2  ;;  %v1153_v20 = vsel %vm1147_vm10, %v1136_v5, %v2114_v45  ;;  %v1152_v21 = vsel %vm1147_vm10, %v1135_v9, %v2113_v7 }
  0xbc   : > { %v2127_v44 = vpop.permute.xlu1 %2126  ;;  %v2122_v46 = vpop.permute.xlu0 %2121 }
  0xbd   : > { %v2129_v1 = vunpack.i.h.bf16 %v2127_v44  ;;  %v2128_v8 = vunpack.i.l.bf16 %v2127_v44  ;;  %v2124_v3 = vunpack.i.h.bf16 %v2122_v46  ;;  %v2123_v19 = vunpack.i.l.bf16 %v2122_v46 }
  0xbf   : > { %v1171_v58 = vsel %vm1164_vm11, %v1154_v0, %v2128_v8  ;;  %v1172_v23 = vsel %vm1164_vm11, %v1155_v4, %v2129_v1  ;;  %v1169_v52 = vsel %vm1164_vm11, %v1152_v21, %v2123_v19  ;;  %v1170_v27 = vsel %vm1164_vm11, %v1153_v20, %v2124_v3 }
  0xc0   : > { %v2913_v47 = vpop.permute.xlu1 %2136  ;;  %v2132_v48 = vpop.permute.xlu0 %2131 }
  0xc1   : > { %v2134_v57 = vunpack.i.h.bf16 %v2132_v48  ;;  %v2133_v22 = vunpack.i.l.bf16 %v2132_v48  ;;  %v2139_v28 = vunpack.i.h.bf16 %v2913_v47  ;;  %v2138_v26 = vunpack.i.l.bf16 %v2913_v47 }
  0xc3   : > { %v1186_v36 = vsel %vm1181_vm5, %v1169_v52, %v2133_v22  ;;  %v1187_v53 = vsel %vm1181_vm5, %v1170_v27, %v2134_v57  ;;  %v1188_v30 = vsel %vm1181_vm5, %v1171_v58, %v2138_v26  ;;  %v1189_v60 = vsel %vm1181_vm5, %v1172_v23, %v2139_v28 }
  0xc4   : > { %v2915_v49 = vpop.permute.xlu1 %2146  ;;  %v2142_v50 = vpop.permute.xlu0 %2141 }
  0xc5   : > { %v2144_v24 = vunpack.i.h.bf16 %v2142_v50  ;;  %v2143_v25 = vunpack.i.l.bf16 %v2142_v50  ;;  %v2149_v54 = vunpack.i.h.bf16 %v2915_v49  ;;  %v2148_v13 = vunpack.i.l.bf16 %v2915_v49 }
  0xc7   : > { %v1203_v29 = vsel %vm1198_vm6, %v1186_v36, %v2143_v25  ;;  %v1204_v63 = vsel %vm1198_vm6, %v1187_v53, %v2144_v24  ;;  %v1205_v2 = vsel %vm1198_vm6, %v1188_v30, %v2148_v13  ;;  %v1206_v6 = vsel %vm1198_vm6, %v1189_v60, %v2149_v54 }
  0xc8   : > { %v2157_v10 = vpop.permute.xlu1 %2156  ;;  %v2152_v59 = vpop.permute.xlu0 %2151 }
  0xc9   : > { %v2154_v15 = vunpack.i.h.bf16 %v2152_v59  ;;  %v2153_v16 = vunpack.i.l.bf16 %v2152_v59  ;;  %v2159_v40 = vunpack.i.h.bf16 %v2157_v10  ;;  %v2158_v41 = vunpack.i.l.bf16 %v2157_v10 }
  0xcb   : > { %v1220_v43 = vsel %vm1215_vm7, %v1203_v29, %v2153_v16  ;;  %v1221_v39 = vsel %vm1215_vm7, %v1204_v63, %v2154_v15  ;;  %v1222_v8 = vsel %vm1215_vm7, %v1205_v2, %v2158_v41  ;;  %v1223_v10 = vsel %vm1215_vm7, %v1206_v6, %v2159_v40 }
  0xcc   : > { %v2167_v51 = vpop.permute.xlu1 %2166  ;;  %v2162_v12 = vpop.permute.xlu0 %2161 }
  0xcd   : > { %v2164_v33 = vunpack.i.h.bf16 %v2162_v12  ;;  %v2163_v35 = vunpack.i.l.bf16 %v2162_v12  ;;  %v2169_v47 = vunpack.i.h.bf16 %v2167_v51  ;;  %v2168_v48 = vunpack.i.l.bf16 %v2167_v51 }
  0xcf   : > { %v1237_v50 = vsel %vm1232_vm8, %v1220_v43, %v2163_v35  ;;  %v1238_v49 = vsel %vm1232_vm8, %v1221_v39, %v2164_v33  ;;  %v1239_v18 = vsel %vm1232_vm8, %v1222_v8, %v2168_v48  ;;  %v1240_v3 = vsel %vm1232_vm8, %v1223_v10, %v2169_v47 }
  0xd0   : > { %v2177_v42 = vpop.permute.xlu1 %2176  ;;  %v2172_v32 = vpop.permute.xlu0 %2171 }
  0xd1   : > { %v2174_v44 = vunpack.i.h.bf16 %v2172_v32  ;;  %v2173_v46 = vunpack.i.l.bf16 %v2172_v32  ;;  %v2179_v51 = vunpack.i.h.bf16 %v2177_v42  ;;  %v2178_v12 = vunpack.i.l.bf16 %v2177_v42 }
  0xd3   : > { %v1254_v62 = vsel %vm1249_vm12, %v1237_v50, %v2173_v46  ;;  %v1255_v55 = vsel %vm1249_vm12, %v1238_v49, %v2174_v44  ;;  %v1140_v29 = vsel %vm1130_vm9, %v2661_v37, %v2179_v51  ;;  %v1139_v63 = vsel %vm1130_vm9, %v2664_v38, %v2178_v12 }
  0xd4   : > { %v1268_v45 = vpack.c.bf16 %v1255_v55, %v1254_v62  ;;  %v2187_v7 = vpop.permute.xlu1 %2186  ;;  %v2182_v1 = vpop.permute.xlu0 %2181 }
  0xd5   : > { %v2184_v59 = vunpack.i.h.bf16 %v2182_v1  ;;  %v2183_v17 = vunpack.i.l.bf16 %v2182_v1  ;;  %v2189_v24 = vunpack.i.h.bf16 %v2187_v7  ;;  %v2188_v25 = vunpack.i.l.bf16 %v2187_v7 }
  0xd6   : > { %1947 = vmatprep.mubr.msk.bf16.mxu0 %vm1310_vm13, %v1268_v45 }
  0xd7   : > { %v1257_v19 = vsel %vm1249_vm12, %v1240_v3, %v2184_v59  ;;  %v1256_v5 = vsel %vm1249_vm12, %v1239_v18, %v2183_v17  ;;  %v1142_v36 = vsel %vm1130_vm9, %v2691_v11, %v2189_v24  ;;  %v1141_v53 = vsel %vm1130_vm9, %v2694_v14, %v2188_v25 }
  0xd8   : > { %v1269_v9 = vpack.c.bf16 %v1257_v19, %v1256_v5  ;;  %v2197_v0 = vpop.permute.xlu1 %2196  ;;  %v2192_v4 = vpop.permute.xlu0 %2191 }
  0xd9   : > { %v2199_v52 = vunpack.i.h.bf16 %v2197_v0  ;;  %v2198_v27 = vunpack.i.l.bf16 %v2197_v0  ;;  %v2194_v15 = vunpack.i.h.bf16 %v2192_v4  ;;  %v2193_v16 = vunpack.i.l.bf16 %v2192_v4 }
  0xda   : > { %1948 = vmatmul.mubr.msk.bf16.gmra.mxu0 %vm1310_vm13, %v1269_v9 }
  0xdb   : > { %v1158_v40 = vsel %vm1147_vm10, %v1141_v53, %v2198_v27  ;;  %v1159_v41 = vsel %vm1147_vm10, %v1142_v36, %v2199_v52  ;;  %v1157_v42 = vsel %vm1147_vm10, %v1140_v29, %v2194_v15  ;;  %v1156_v32 = vsel %vm1147_vm10, %v1139_v63, %v2193_v16 }
  0xdc   : > { %v2207_v20 = vpop.permute.xlu1 %2206  ;;  %v2202_v21 = vpop.permute.xlu0 %2201 }
  0xdd   : > { %v2209_v28 = vunpack.i.h.bf16 %v2207_v20  ;;  %v2208_v26 = vunpack.i.l.bf16 %v2207_v20  ;;  %v2204_v54 = vunpack.i.h.bf16 %v2202_v21  ;;  %v2203_v13 = vunpack.i.l.bf16 %v2202_v21 }
  0xdf   : > { %v1175_v14 = vsel %vm1164_vm11, %v1158_v40, %v2208_v26  ;;  %v1176_v39 = vsel %vm1164_vm11, %v1159_v41, %v2209_v28  ;;  %v1173_v38 = vsel %vm1164_vm11, %v1156_v32, %v2203_v13  ;;  %v1174_v48 = vsel %vm1164_vm11, %v1157_v42, %v2204_v54 }
  0xe0   : > { %v2961_v57 = vpop.permute.xlu1 %2216  ;;  %v2212_v22 = vpop.permute.xlu0 %2211 }
  0xe1   : > { %v2214_v11 = vunpack.i.h.bf16 %v2212_v22  ;;  %v2213_v43 = vunpack.i.l.bf16 %v2212_v22  ;;  %v2219_v30 = vunpack.i.h.bf16 %v2961_v57  ;;  %v2218_v60 = vunpack.i.l.bf16 %v2961_v57 }
  0xe3   : > { %v1190_v2 = vsel %vm1181_vm5, %v1173_v38, %v2213_v43  ;;  %v1191_v6 = vsel %vm1181_vm5, %v1174_v48, %v2214_v11  ;;  %v1192_v57 = vsel %vm1181_vm5, %v1175_v14, %v2218_v60  ;;  %v1193_v22 = vsel %vm1181_vm5, %v1176_v39, %v2219_v30 }
  0xe4   : > { %v2963_v58 = vpop.permute.xlu1 %2226  ;;  %v2222_v23 = vpop.permute.xlu0 %2221 }
  0xe5   : > { %v2224_v44 = vunpack.i.h.bf16 %v2222_v23  ;;  %v2223_v46 = vunpack.i.l.bf16 %v2222_v23  ;;  %v2229_v45 = vunpack.i.h.bf16 %v2963_v58  ;;  %v2228_v7 = vunpack.i.l.bf16 %v2963_v58 }
  0xe7   : > { %v1207_v1 = vsel %vm1198_vm6, %v1190_v2, %v2223_v46  ;;  %v1208_v8 = vsel %vm1198_vm6, %v1191_v6, %v2224_v44  ;;  %v1209_v24 = vsel %vm1198_vm6, %v1192_v57, %v2228_v7  ;;  %v1210_v25 = vsel %vm1198_vm6, %v1193_v22, %v2229_v45 }
  0xe8   : > { %v2237_v33 = vpop.permute.xlu1 %2236  ;;  %v2232_v35 = vpop.permute.xlu0 %2231 }
  0xe9   : > { %v2234_v50 = vunpack.i.h.bf16 %v2232_v35  ;;  %v2233_v49 = vunpack.i.l.bf16 %v2232_v35  ;;  %v2239_v10 = vunpack.i.h.bf16 %v2237_v33  ;;  %v2238_v59 = vunpack.i.l.bf16 %v2237_v33 }
  0xeb   : > { %v1224_v3 = vsel %vm1215_vm7, %v1207_v1, %v2233_v49  ;;  %v1225_v19 = vsel %vm1215_vm7, %v1208_v8, %v2234_v50  ;;  %v1226_v27 = vsel %vm1215_vm7, %v1209_v24, %v2238_v59  ;;  %v1227_v15 = vsel %vm1215_vm7, %v1210_v25, %v2239_v10 }
  0xec   : > { %v2247_v37 = vpop.permute.xlu1 %2246  ;;  %v2242_v47 = vpop.permute.xlu0 %2241 }
  0xed   : > { %v2244_v62 = vunpack.i.h.bf16 %v2242_v47  ;;  %v2243_v55 = vunpack.i.l.bf16 %v2242_v47  ;;  %v2249_v0 = vunpack.i.h.bf16 %v2247_v37  ;;  %v2248_v4 = vunpack.i.l.bf16 %v2247_v37 }
  0xef   : > { %v1241_v20 = vsel %vm1232_vm8, %v1224_v3, %v2243_v55  ;;  %v1242_v21 = vsel %vm1232_vm8, %v1225_v19, %v2244_v62  ;;  %v1243_v26 = vsel %vm1232_vm8, %v1226_v27, %v2248_v4  ;;  %v1244_v33 = vsel %vm1232_vm8, %v1227_v15, %v2249_v0 }
  0xf0   : > { %v2257_v17 = vpop.permute.xlu1 %2256  ;;  %v2252_v18 = vpop.permute.xlu0 %2251 }
  0xf1   : > { %v2254_v5 = vunpack.i.h.bf16 %v2252_v18  ;;  %v2253_v9 = vunpack.i.l.bf16 %v2252_v18  ;;  %v2259_v42 = vunpack.i.h.bf16 %v2257_v17  ;;  %v2258_v32 = vunpack.i.l.bf16 %v2257_v17 }
  0xf3   : > { %v1258_v58 = vsel %vm1249_vm12, %v1241_v20, %v2253_v9  ;;  %v1259_v23 = vsel %vm1249_vm12, %v1242_v21, %v2254_v5  ;;  %v1144_v30 = vsel %vm1130_vm9, %v2750_v61, %v2259_v42  ;;  %v1143_v60 = vsel %vm1130_vm9, %v2747_v56, %v2258_v32 }
  0xf4   : > { %v2267_v51 = vpop.permute.xlu1 %2266  ;;  %v2262_v12 = vpop.permute.xlu0 %2261  ;;  %v1270_v52 = vpack.c.bf16 %v1259_v23, %v1258_v58 }
  0xf5   : > { %v2264_v16 = vunpack.i.h.bf16 %v2262_v12  ;;  %v2263_v28 = vunpack.i.l.bf16 %v2262_v12  ;;  %v2269_v11 = vunpack.i.h.bf16 %v2267_v51  ;;  %v2268_v43 = vunpack.i.l.bf16 %v2267_v51 }
  0xf6   : > { %1951 = vmatprep.mubr.msk.bf16.mxu1 %vm1310_vm13, %v1270_v52 }
  0xf7   : > { %v1261_v35 = vsel %vm1249_vm12, %v1244_v33, %v2264_v16  ;;  %v1260_v36 = vsel %vm1249_vm12, %v1243_v26, %v2263_v28  ;;  %v1146_v62 = vsel %vm1130_vm9, %v2790_v34, %v2269_v11  ;;  %v1145_v55 = vsel %vm1130_vm9, %v2786_v31, %v2268_v43 }
  0xf8   : > { %v1271_v53 = vpack.c.bf16 %v1261_v35, %v1260_v36  ;;  %v2277_v54 = vpop.permute.xlu1 %2276  ;;  %v2272_v13 = vpop.permute.xlu0 %2271 }
  0xf9   : > { %v2279_v14 = vunpack.i.h.bf16 %v2277_v54  ;;  %v2278_v39 = vunpack.i.l.bf16 %v2277_v54  ;;  %v2274_v44 = vunpack.i.h.bf16 %v2272_v13  ;;  %v2273_v46 = vunpack.i.l.bf16 %v2272_v13 }
  0xfa   : > { %1952 = vmatmul.mubr.msk.bf16.vlgmr.msra.gmra.mxu1 %vm1310_vm13, %v1271_v53 }
  0xfb   : > { %v1162_v2 = vsel %vm1147_vm10, %v1145_v55, %v2278_v39  ;;  %v1163_v6 = vsel %vm1147_vm10, %v1146_v62, %v2279_v14  ;;  %v1161_v45 = vsel %vm1147_vm10, %v1144_v30, %v2274_v44  ;;  %v1160_v7 = vsel %vm1147_vm10, %v1143_v60, %v2273_v46 }
  0xfc   : > { %v2287_v29 = vpop.permute.xlu1 %2286  ;;  %v2282_v63 = vpop.permute.xlu0 %2281 }
  0xfd   : > { %v2289_v38 = vunpack.i.h.bf16 %v2287_v29  ;;  %v2288_v48 = vunpack.i.l.bf16 %v2287_v29  ;;  %v2284_v50 = vunpack.i.h.bf16 %v2282_v63  ;;  %v2283_v49 = vunpack.i.l.bf16 %v2282_v63 }
  0xff   : > { %v1179_v17 = vsel %vm1164_vm11, %v1162_v2, %v2288_v48  ;;  %v1180_v34 = vsel %vm1164_vm11, %v1163_v6, %v2289_v38  ;;  %v1177_v31 = vsel %vm1164_vm11, %v1160_v7, %v2283_v49  ;;  %v1178_v18 = vsel %vm1164_vm11, %v1161_v45, %v2284_v50 }
 0x100   : > { %v2297_v40 = vpop.permute.xlu1 %2296  ;;  %v2292_v41 = vpop.permute.xlu0 %2291 }
 0x101   : > { %v2299_v61 = vunpack.i.h.bf16 %v2297_v40  ;;  %v2298_v10 = vunpack.i.l.bf16 %v2297_v40  ;;  %v2294_v59 = vunpack.i.h.bf16 %v2292_v41  ;;  %v2293_v56 = vunpack.i.l.bf16 %v2292_v41 }
 0x103   : > { %v1196_v58 = vsel %vm1181_vm5, %v1179_v17, %v2298_v10  ;;  %v1197_v23 = vsel %vm1181_vm5, %v1180_v34, %v2299_v61  ;;  %v1194_v24 = vsel %vm1181_vm5, %v1177_v31, %v2293_v56  ;;  %v1195_v25 = vsel %vm1181_vm5, %v1178_v18, %v2294_v59 }
 0x104   : > { %v2307_v37 = vpop.permute.xlu1 %2306  ;;  %v2302_v47 = vpop.permute.xlu0 %2301 }
 0x105   : > { %v2309_v3 = vunpack.i.h.bf16 %v2307_v37  ;;  %v2308_v19 = vunpack.i.l.bf16 %v2307_v37  ;;  %v2304_v5 = vunpack.i.h.bf16 %v2302_v47  ;;  %v2303_v9 = vunpack.i.l.bf16 %v2302_v47 }
 0x107   : > { %v1213_v15 = vsel %vm1198_vm6, %v1196_v58, %v2308_v19  ;;  %v1214_v16 = vsel %vm1198_vm6, %v1197_v23, %v2309_v3  ;;  %v1211_v28 = vsel %vm1198_vm6, %v1194_v24, %v2303_v9  ;;  %v1212_v26 = vsel %vm1198_vm6, %v1195_v25, %v2304_v5 }
 0x108   : > { %v2317_v1 = vpop.permute.xlu1 %2316  ;;  %v2312_v8 = vpop.permute.xlu0 %2311 }
 0x109   : > { %v2319_v0 = vunpack.i.h.bf16 %v2317_v1  ;;  %v2318_v4 = vunpack.i.l.bf16 %v2317_v1  ;;  %v2314_v20 = vunpack.i.h.bf16 %v2312_v8  ;;  %v2313_v21 = vunpack.i.l.bf16 %v2312_v8 }
 0x10b   : > { %v1230_v33 = vsel %vm1215_vm7, %v1213_v15, %v2318_v4  ;;  %v1231_v35 = vsel %vm1215_vm7, %v1214_v16, %v2319_v0  ;;  %v1228_v36 = vsel %vm1215_vm7, %v1211_v28, %v2313_v21  ;;  %v1229_v53 = vsel %vm1215_vm7, %v1212_v26, %v2314_v20 }
 0x10c   : > { %v2327_v57 = vpop.permute.xlu1 %2326  ;;  %v2322_v22 = vpop.permute.xlu0 %2321 }
 0x10d   : > { %v2329_v51 = vunpack.i.h.bf16 %v2327_v57  ;;  %v2328_v12 = vunpack.i.l.bf16 %v2327_v57  ;;  %v2324_v52 = vunpack.i.h.bf16 %v2322_v22  ;;  %v2323_v27 = vunpack.i.l.bf16 %v2322_v22 }
 0x10f   : > { %v1247_v42 = vsel %vm1232_vm8, %v1230_v33, %v2328_v12  ;;  %v1248_v32 = vsel %vm1232_vm8, %v1231_v35, %v2329_v51  ;;  %v1245_v11 = vsel %vm1232_vm8, %v1228_v36, %v2323_v27  ;;  %v1246_v43 = vsel %vm1232_vm8, %v1229_v53, %v2324_v52 }
 0x110   : > { %v2337_v54 = vpop.permute.xlu1 %2336  ;;  %v2332_v13 = vpop.permute.xlu0 %2331 }
 0x111   : > { %v2339_v29 = vunpack.i.h.bf16 %v2337_v54  ;;  %v2338_v63 = vunpack.i.l.bf16 %v2337_v54  ;;  %v2334_v40 = vunpack.i.h.bf16 %v2332_v13  ;;  %v2333_v41 = vunpack.i.l.bf16 %v2332_v13 }
 0x113   : > { %v1264_v14 = vsel %vm1249_vm12, %v1247_v42, %v2338_v63  ;;  %v1265_v39 = vsel %vm1249_vm12, %v1248_v32, %v2339_v29  ;;  %v1262_v44 = vsel %vm1249_vm12, %v1245_v11, %v2333_v41  ;;  %v1263_v46 = vsel %vm1249_vm12, %v1246_v43, %v2334_v40 }
 0x114   : > { %v1273_v37 = vpack.c.bf16 %v1265_v39, %v1264_v14  ;;  %v1272_v47 = vpack.c.bf16 %v1263_v46, %v1262_v44 }
 0x116   : > { %1955 = vmatprep.mubr.msk.bf16.mxu1 %vm1310_vm13, %v1272_v47 }
 0x117   : > { %1956 = vmatmul.mubr.msk.bf16.gmra.mxu1 %vm1310_vm13, %v1273_v37 }
 0x17a   : > { %v1945_v38 = vpop.f32.mrf.mxu0 }
 0x17b   : > { %v1859_v48 = vpack.c.bf16 %v1945_v38, %v1945_v38  ;;  %v1477_v55 = vmul.f32 %v1945_v38, %v1945_v38  ;;  %v1439_v61 = vsel %vm1130_vm9, %v1945_v38, 0.0 }
 0x17c   : > { %v1373_v50 = vpop.f32.mrf.mxu0 }
 0x17d   : > { %1596 = vst.msk [vmem:[%s3051_s11 + $0x8] sm:$0xf] %vm1593_vm14, %v1859_v48  ;;  %v1857_v49 = vpack.c.bf16 %v1373_v50, %v1373_v50  ;;  %v1475_v60 = vmul.f32 %v1373_v50, %v1373_v50  ;;  %v1436_v6 = vsel %vm1130_vm9, %v1373_v50, 0.0  ;;  %v1494_v31 = vsel %vm1130_vm9, %v1477_v55, 0.0 }
 0x17e   : > { %v1946_v30 = vpop.f32.mrf.mxu0 }
 0x17f   : > { %1594 = vst.msk [vmem:[%s3051_s11] sm:$0xf] %vm1593_vm14, %v1857_v49  ;;  %v1860_v62 = vpack.c.bf16 %v1946_v30, %v1946_v30  ;;  %v1491_v10 = vsel %vm1130_vm9, %v1475_v60, 0.0  ;;  %v1478_v59 = vmul.f32 %v1946_v30, %v1946_v30  ;;  %v1441_v18 = vsel %vm1130_vm9, %v1946_v30, 0.0 }
 0x180   : > { %v1376_v2 = vpop.f32.mrf.mxu0 }
 0x181   : > { %1597 = vst.msk [vmem:[%s3051_s11 + $0xc] sm:$0xf] %vm1593_vm14, %v1860_v62  ;;  %v1437_v45 = vsel %vm1130_vm9, %v1376_v2, 0.0  ;;  %v1476_v7 = vmul.f32 %v1376_v2, %v1376_v2  ;;  %v1858_v1 = vpack.c.bf16 %v1376_v2, %v1376_v2  ;;  %v1496_v5 = vsel %vm1130_vm9, %v1478_v59, 0.0 }
 0x182   : > { %v1438_v8 = vadd.f32 %v1437_v45, %v1436_v6 }
 0x183   : > { %v1492_v56 = vsel %vm1130_vm9, %v1476_v7, 0.0  ;;  %1595 = vst.msk [vmem:[%s3051_s11 + $0x4] sm:$0xf] %vm1593_vm14, %v1858_v1 }
 0x184   : > { %v1440_v17 = vadd.f32 %v1439_v61, %v1438_v8  ;;  %v1493_v34 = vadd.f32 %v1492_v56, %v1491_v10 }
 0x186   : > { %v1495_v3 = vadd.f32 %v1494_v31, %v1493_v34  ;;  %v1442_v19 = vadd.f32 %v1441_v18, %v1440_v17 }
 0x188   : > { %v1497_v9 = vadd.f32 %v1496_v5, %v1495_v3 }
 0x19a   : > { %v1949_v0 = vpop.f32.mrf.mxu0 }
 0x19b   : > { %v1863_v4 = vpack.c.bf16 %v1949_v0, %v1949_v0  ;;  %v1481_v63 = vmul.f32 %v1949_v0, %v1949_v0  ;;  %v1447_v41 = vsel %vm1130_vm9, %v1949_v0, 0.0 }
 0x19c   : > { %v1389_v20 = vpop.f32.mrf.mxu0 }
 0x19d   : > { %1600 = vst.msk [vmem:[%s3051_s11 + $0x18] sm:$0xf] %vm1593_vm14, %v1863_v4  ;;  %v1861_v21 = vpack.c.bf16 %v1389_v20, %v1389_v20  ;;  %v1479_v15 = vmul.f32 %v1389_v20, %v1389_v20  ;;  %v1443_v26 = vsel %vm1130_vm9, %v1389_v20, 0.0  ;;  %v1502_v32 = vsel %vm1130_vm9, %v1481_v63, 0.0 }
 0x19e   : > { %v1950_v57 = vpop.f32.mrf.mxu0  ;;  %v1444_v53 = vadd.f32 %v1443_v26, %v1442_v19 }
 0x19f   : > { %1598 = vst.msk [vmem:[%s3051_s11 + $0x10] sm:$0xf] %vm1593_vm14, %v1861_v21  ;;  %v1864_v22 = vpack.c.bf16 %v1950_v57, %v1950_v57  ;;  %v1498_v35 = vsel %vm1130_vm9, %v1479_v15, 0.0  ;;  %v1482_v11 = vmul.f32 %v1950_v57, %v1950_v57  ;;  %v1449_v39 = vsel %vm1130_vm9, %v1950_v57, 0.0 }
 0x1a0   : > { %v1392_v58 = vpop.f32.mrf.mxu0  ;;  %v1499_v13 = vadd.f32 %v1498_v35, %v1497_v9 }
 0x1a1   : > { %1601 = vst.msk [vmem:[%s3051_s11 + $0x1c] sm:$0xf] %vm1593_vm14, %v1864_v22  ;;  %v1862_v23 = vpack.c.bf16 %v1392_v58, %v1392_v58  ;;  %v1480_v33 = vmul.f32 %v1392_v58, %v1392_v58  ;;  %v1445_v36 = vsel %vm1130_vm9, %v1392_v58, 0.0  ;;  %v1504_v47 = vsel %vm1130_vm9, %v1482_v11, 0.0 }
 0x1a2   : > { %v1446_v29 = vadd.f32 %v1445_v36, %v1444_v53 }
 0x1a3   : > { %1599 = vst.msk [vmem:[%s3051_s11 + $0x14] sm:$0xf] %vm1593_vm14, %v1862_v23  ;;  %v1500_v54 = vsel %vm1130_vm9, %v1480_v33, 0.0 }
 0x1a4   : > { %v1501_v40 = vadd.f32 %v1500_v54, %v1499_v13  ;;  %v1448_v42 = vadd.f32 %v1447_v41, %v1446_v29 }
 0x1a6   : > { %v1503_v14 = vadd.f32 %v1502_v32, %v1501_v40  ;;  %v1450_v37 = vadd.f32 %v1449_v39, %v1448_v42 }
 0x1a8   : > { %v1505_v49 = vadd.f32 %v1504_v47, %v1503_v14 }
 0x1ba   : > { %v1953_v24 = vpop.f32.mrf.mxu1 }
 0x1bb   : > { %v1867_v25 = vpack.c.bf16 %v1953_v24, %v1953_v24  ;;  %v1485_v55 = vmul.f32 %v1953_v24, %v1953_v24  ;;  %v1455_v6 = vsel %vm1130_vm9, %v1953_v24, 0.0 }
 0x1bc   : > { %v1405_v51 = vpop.f32.mrf.mxu1 }
 0x1bd   : > { %1604 = vst.msk [vmem:[%s3051_s11 + $0x28] sm:$0xf] %vm1593_vm14, %v1867_v25  ;;  %v1865_v12 = vpack.c.bf16 %v1405_v51, %v1405_v51  ;;  %v1483_v43 = vmul.f32 %v1405_v51, %v1405_v51  ;;  %v1451_v44 = vsel %vm1130_vm9, %v1405_v51, 0.0  ;;  %v1510_v1 = vsel %vm1130_vm9, %v1485_v55, 0.0 }
 0x1be   : > { %v1954_v52 = vpop.f32.mrf.mxu1  ;;  %v1452_v50 = vadd.f32 %v1451_v44, %v1450_v37 }
 0x1bf   : > { %1602 = vst.msk [vmem:[%s3051_s11 + $0x20] sm:$0xf] %vm1593_vm14, %v1865_v12  ;;  %v1868_v27 = vpack.c.bf16 %v1954_v52, %v1954_v52  ;;  %v1506_v38 = vsel %vm1130_vm9, %v1483_v43, 0.0  ;;  %v1486_v8 = vmul.f32 %v1954_v52, %v1954_v52  ;;  %v1457_v56 = vsel %vm1130_vm9, %v1954_v52, 0.0 }
 0x1c0   : > { %v1408_v16 = vpop.f32.mrf.mxu1  ;;  %v1507_v60 = vadd.f32 %v1506_v38, %v1505_v49 }
 0x1c1   : > { %1605 = vst.msk [vmem:[%s3051_s11 + $0x2c] sm:$0xf] %vm1593_vm14, %v1868_v27  ;;  %v1866_v28 = vpack.c.bf16 %v1408_v16, %v1408_v16  ;;  %v1484_v46 = vmul.f32 %v1408_v16, %v1408_v16  ;;  %v1453_v48 = vsel %vm1130_vm9, %v1408_v16, 0.0  ;;  %v1512_v19 = vsel %vm1130_vm9, %v1486_v8, 0.0 }
 0x1c2   : > { %v1454_v62 = vadd.f32 %v1453_v48, %v1452_v50 }
 0x1c3   : > { %1603 = vst.msk [vmem:[%s3051_s11 + $0x24] sm:$0xf] %vm1593_vm14, %v1866_v28  ;;  %v1508_v30 = vsel %vm1130_vm9, %v1484_v46, 0.0 }
 0x1c4   : > { %v1509_v2 = vadd.f32 %v1508_v30, %v1507_v60  ;;  %v1456_v45 = vadd.f32 %v1455_v6, %v1454_v62 }
 0x1c6   : > { %v1511_v10 = vadd.f32 %v1510_v1, %v1509_v2  ;;  %v1458_v18 = vadd.f32 %v1457_v56, %v1456_v45 }
 0x1c8   : > { %v1513_v4 = vadd.f32 %v1512_v19, %v1511_v10 }
 0x1d7   : > { %v1957_v7 = vpop.f32.mrf.mxu1 }
 0x1d8   : > { %v1871_v61 = vpack.c.bf16 %v1957_v7, %v1957_v7  ;;  %v1489_v21 = vmul.f32 %v1957_v7, %v1957_v7  ;;  %v1463_v25 = vsel %vm1130_vm9, %v1957_v7, 0.0 }
 0x1d9   : > { %v1421_v59 = vpop.f32.mrf.mxu1 }
 0x1da   : > { %1608 = vst.msk [vmem:[%s3051_s11 + $0x38] sm:$0xf] %vm1593_vm14, %v1871_v61  ;;  %v1459_v17 = vsel %vm1130_vm9, %v1421_v59, 0.0  ;;  %v1487_v34 = vmul.f32 %v1421_v59, %v1421_v59  ;;  %v1869_v31 = vpack.c.bf16 %v1421_v59, %v1421_v59  ;;  %v1518_v15 = vsel %vm1130_vm9, %v1489_v21, 0.0 }
 0x1db   : > { %v1958_v3 = vpop.f32.mrf.mxu1  ;;  %v1460_v0 = vadd.f32 %v1459_v17, %v1458_v18 }
 0x1dc   : > { %v1514_v5 = vsel %vm1130_vm9, %v1487_v34, 0.0  ;;  %1606 = vst.msk [vmem:[%s3051_s11 + $0x30] sm:$0xf] %vm1593_vm14, %v1869_v31  ;;  %v1872_v9 = vpack.c.bf16 %v1958_v3, %v1958_v3  ;;  %v1490_v51 = vmul.f32 %v1958_v3, %v1958_v3  ;;  %v1465_v16 = vsel %vm1130_vm9, %v1958_v3, 0.0 }
 0x1dd   : > { %v1424_v20 = vpop.f32.mrf.mxu1  ;;  %v1515_v23 = vadd.f32 %v1514_v5, %v1513_v4 }
 0x1de   : > { %1609 = vst.msk [vmem:[%s3051_s11 + $0x3c] sm:$0xf] %vm1593_vm14, %v1872_v9  ;;  %v1461_v57 = vsel %vm1130_vm9, %v1424_v20, 0.0  ;;  %v1488_v22 = vmul.f32 %v1424_v20, %v1424_v20  ;;  %v1870_v58 = vpack.c.bf16 %v1424_v20, %v1424_v20  ;;  %v1520_v33 = vsel %vm1130_vm9, %v1490_v51, 0.0 }
 0x1df   : > { %v1462_v24 = vadd.f32 %v1461_v57, %v1460_v0 }
 0x1e0   : > { %v1516_v12 = vsel %vm1130_vm9, %v1488_v22, 0.0  ;;  %1607 = vst.msk [vmem:[%s3051_s11 + $0x34] sm:$0xf] %vm1593_vm14, %v1870_v58 }
 0x1e1   : > { %v1464_v52 = vadd.f32 %v1463_v25, %v1462_v24  ;;  %v1517_v27 = vadd.f32 %v1516_v12, %v1515_v23 }
 0x1e3   : > { %v1466_v28 = vadd.f32 %v1465_v16, %v1464_v52  ;;  %v1519_v26 = vadd.f32 %v1518_v15, %v1517_v27 }
 0x1e5   : > { %v1467_v35 = vrot.slane %v1466_v28, 4  ;;  %v1521_v36 = vadd.f32 %v1520_v33, %v1519_v26 }
 0x1e7   : > { %v1468_v53 = vadd.f32 %v1467_v35, %v1466_v28  ;;  %v1522_v54 = vrot.slane %v1521_v36, 4 }
 0x1e9   : > { %v1469_v13 = vrot.slane %v1468_v53, 2  ;;  %v1523_v29 = vadd.f32 %v1522_v54, %v1521_v36 }
 0x1eb   : > { %v1470_v63 = vadd.f32 %v1469_v13, %v1468_v53  ;;  %v1524_v40 = vrot.slane %v1523_v29, 2 }
 0x1ed   : > { %v1471_v41 = vrot.slane %v1470_v63, 1  ;;  %v1525_v42 = vadd.f32 %v1524_v40, %v1523_v29 }
 0x1ef   : > { %v1472_v32 = vadd.f32 %v1471_v41, %v1470_v63  ;;  %v1526_v11 = vrot.slane %v1525_v42, 1 }
 0x1f1   : > { %1474 = vst.msk [vmem:[%s306_s19] sm:$0x1] %vm1473_vm15, %v1472_v32  ;;  %v1527_v43 = vadd.f32 %v1526_v11, %v1525_v42 }
 0x1f3   : > { %1528 = vst.msk [vmem:[%s313_s16] sm:$0x1] %vm1473_vm15, %v1527_v43 }
 0x1f4 PF: > { %s17_s25 = sadd.s32 1, %s2383_s25   ;;  %s3149_s21 = smov %s2375_s23 }
 0x1f5   : > { %p14_p10 = scmp.ge.s32.totalorder %s17_s25, 6   ;;  %s3150_s22 = smov %s2379_s24 }
 0x1f6   : > { %s3151_s23 = smov %s3154_s26  ;;  %s3152_s24 = smov %s3158_s27 }
 0x1f7   :  { %16 = sbr.rel (!%p14_p10) target bundleno = 3 (0x3), region = 93 }

</bundles_post_ra>
